<compile_context>
chip_gen: v7x
topology: tpu7x:2x2x1
jax: 0.10.0
libtpu: 0.0.40
codegen_flags: <defaults>
</compile_context>

<pallas_src>
import math

import jax
import jax.numpy as jnp
from jax.experimental import pallas as pl
from jax.experimental.pallas import tpu as pltpu

# ----------------------- model configuration (small) -----------------------
B = 2               # batch
S = 16              # sequence length
BS = B * S          # folded batch*seq rows
INPUT_DIM = 8       # vocab_dim (EmbeddingLayer is a Linear on dense vectors)
OUTPUT_DIM = 8
OUT_PAD = 128       # lane-dense padded output width (wrapper slices :OUTPUT_DIM)
HIDDEN = 64         # hidden_size
N_HEADS = 4
HEAD_DIM = HIDDEN // N_HEADS
COND_DIM = 64
N_BLOCKS = 2
MLP_RATIO = 4
MLP_HIDDEN = MLP_RATIO * HIDDEN
FREQ_EMB = 256      # TimestepEmbedder frequency_embedding_size
LN_EPS = 1e-5


# ----------------------------- shared math ---------------------------------
def _bf16_dot(a, b):
    # autocast-style matmul: bf16 operands, f32 accumulation (MXU).
    return jnp.dot(a.astype(jnp.bfloat16), b.astype(jnp.bfloat16),
                   preferred_element_type=jnp.float32)


def _layernorm(x, w):
    # LayerNorm with learnable weight only (no bias), computed in f32.
    mu = jnp.mean(x, axis=-1, keepdims=True)
    xc = x - mu
    var = jnp.mean(xc * xc, axis=-1, keepdims=True)
    return (xc * jax.lax.rsqrt(var + LN_EPS)) * w


def _gelu_tanh(x):
    c = math.sqrt(2.0 / math.pi)
    return 0.5 * x * (1.0 + jnp.tanh(c * (x + 0.044715 * x * x * x)))


# ------------------------------ fused kernel --------------------------------
def _dit_fused_kernel(xin_ref, ew_ref, eb_ref, c_ref, cos_ref, sin_ref,
                      ada_w_ref, ada_b_ref, n1w_ref, wqkv_ref, wo_ref,
                      n2w_ref, m1w_ref, m1b_ref, m2w_ref, m2b_ref,
                      fnw_ref, fada_w_ref, fada_b_ref, flw_ref, flb_ref,
                      o_ref):
    f32 = jnp.float32
    bf16 = jnp.bfloat16
    D = HIDDEN

    # --- embedding (f32; runs outside autocast in the reference module) ---
    x = jnp.dot(xin_ref[...], ew_ref[...], preferred_element_type=f32) + eb_ref[...]

    c_bf = c_ref[...].astype(bf16)     # (BS, COND) per-row conditioning
    cos = cos_ref[...]                 # (BS, D) rotary cos tiled across heads
    sin_s = sin_ref[...]               # (BS, D) rotary sin, rotate-half sign folded

    for l in range(N_BLOCKS):          # static unroll: weights stay VMEM-resident
        # adaLN modulation: one lane-wide matmul, sliced at 64-aligned offsets.
        mod = (jnp.dot(c_bf, ada_w_ref[l], preferred_element_type=f32)
               + ada_b_ref[l])                                  # (BS, 6D)
        shift_msa = mod[:, 0 * D:1 * D]
        scale_msa = mod[:, 1 * D:2 * D]
        gate_msa = mod[:, 2 * D:3 * D]
        shift_mlp = mod[:, 3 * D:4 * D]
        scale_mlp = mod[:, 4 * D:5 * D]
        gate_mlp = mod[:, 5 * D:6 * D]

        # ----- attention branch -----
        xm = (_layernorm(x, n1w_ref[l]) * (1.0 + scale_msa) + shift_msa).astype(bf16)

        # fused QKV(+rolled-for-rotary) projection: (BS, D) x (D, 5D), one push.
        qkv5 = jnp.dot(xm, wqkv_ref[l], preferred_element_type=f32)    # (BS, 5D) f32
        # rotary via column-rolled weights: full-width VPU combine, no shuffles.
        q = (qkv5[:, 0 * D:1 * D] * cos + qkv5[:, 1 * D:2 * D] * sin_s).astype(bf16)
        k = (qkv5[:, 2 * D:3 * D] * cos + qkv5[:, 3 * D:4 * D] * sin_s).astype(bf16)
        v = qkv5[:, 4 * D:5 * D].astype(bf16)

        attn_rows = []
        for b in range(B):                    # static: batches never attend across
            r0 = b * S
            head_outs = []
            for h in range(N_HEADS):          # slice q/k/v lazily (short live ranges)
                c0 = h * HEAD_DIM
                qb = q[r0:r0 + S, c0:c0 + HEAD_DIM]          # (S, hd) bf16
                kb = k[r0:r0 + S, c0:c0 + HEAD_DIM]
                vb = v[r0:r0 + S, c0:c0 + HEAD_DIM]
                # softmax scale already folded into the Q weight columns.
                s = jax.lax.dot_general(qb, kb, (((1,), (1,)), ((), ())),
                                        preferred_element_type=f32)
                s = s - jnp.max(s, axis=-1, keepdims=True)
                p = jnp.exp(s)
                p = p * pl.reciprocal(jnp.sum(p, axis=-1, keepdims=True), approx=True)
                head_outs.append(jnp.dot(p.astype(bf16), vb,
                                         preferred_element_type=f32))
            attn_rows.append(jnp.concatenate(head_outs, axis=-1))      # (S, D)
        # head-concat folded into ONE output projection matmul (K = D).
        attn_cat = jnp.concatenate(attn_rows, axis=0).astype(bf16)     # (BS, D)
        attn = jnp.dot(attn_cat, wo_ref[l], preferred_element_type=f32)

        # bias_dropout_add_scale (inference): residual + gate * x
        x = x + gate_msa * attn

        # ----- MLP branch -----
        xm2 = (_layernorm(x, n2w_ref[l]) * (1.0 + scale_mlp) + shift_mlp).astype(bf16)
        h1 = jnp.dot(xm2, m1w_ref[l], preferred_element_type=f32) + m1b_ref[l]
        h1 = _gelu_tanh(h1).astype(bf16)
        mlp = jnp.dot(h1, m2w_ref[l], preferred_element_type=f32) + m2b_ref[l]
        x = x + gate_mlp * mlp

    # ----- final layer -----
    fmod = (jnp.dot(c_bf, fada_w_ref[...], preferred_element_type=f32)
            + fada_b_ref[...])                                  # (BS, 2D)
    shift_f, scale_f = fmod[:, 0 * D:1 * D], fmod[:, 1 * D:2 * D]
    xmf = (_layernorm(x, fnw_ref[...]) * (1.0 + scale_f) + shift_f).astype(bf16)
    # lane-dense (BS, 128) store; wrapper slices the first OUTPUT_DIM columns.
    o_ref[...] = jnp.dot(xmf, flw_ref[...], preferred_element_type=f32) + flb_ref[...]


# ------------------------------ wrapper / glue -------------------------------
def timestep_embedding(t, dim=FREQ_EMB, max_period=10000.0):
    half = dim // 2
    freqs = jnp.exp(-math.log(max_period) *
                    jnp.arange(half, dtype=jnp.float32) / half)
    args = t[:, None].astype(jnp.float32) * freqs[None, :]
    return jnp.concatenate([jnp.cos(args), jnp.sin(args)], axis=-1)


def rotary_cos_sin(seq_len, head_dim):
    inv_freq = 1.0 / (10000.0 ** (jnp.arange(0, head_dim, 2, dtype=jnp.float32)
                                  / head_dim))
    t = jnp.arange(seq_len, dtype=jnp.float32)
    freqs = jnp.outer(t, inv_freq)                        # (S, hd/2)
    emb = jnp.concatenate([freqs, freqs], axis=-1)        # (S, hd)
    return jnp.cos(emb), jnp.sin(emb)


def compute_cond(p, t):
    # sigma_map (TimestepEmbedder MLP) followed by the outer SiLU.
    t_freq = timestep_embedding(t)
    h = jax.nn.silu(t_freq @ p["t_w1"] + p["t_b1"])
    sigma = h @ p["t_w2"] + p["t_b2"]
    return jax.nn.silu(sigma)                             # (B, COND)


def prepare_params(params):
    """One-time repack: fused bf16 [Q|Qroll|K|Kroll|V] projection weight per block
    (rotary roll + softmax scale folded in), bf16 adaLN weights for in-kernel
    modulation, head-tiled rotary rows, lane-padded final projection."""
    cos, sin = rotary_cos_sin(S, HEAD_DIM)
    sin_signed = jnp.concatenate(
        [-sin[:, :HEAD_DIM // 2], sin[:, HEAD_DIM // 2:]], axis=-1)
    cos_rows = jnp.tile(cos, (B, N_HEADS))                # (BS, D)
    sin_rows = jnp.tile(sin_signed, (B, N_HEADS))         # (BS, D)

    attn_scale = 1.0 / math.sqrt(HEAD_DIM)                # exactly 0.25: exact fold

    def roll_heads(w):
        # roll columns by -hd/2 within each head's hd-wide chunk (rotate-half).
        wr = w.reshape(HIDDEN, N_HEADS, HEAD_DIM)
        wr = jnp.roll(wr, -HEAD_DIM // 2, axis=-1)
        return wr.reshape(HIDDEN, HIDDEN)

    lists = {k: [] for k in ["wqkv", "wo", "n1w", "n2w", "m1w", "m1b", "m2w", "m2b",
                             "ada_w", "ada_b"]}
    for blk in params["blocks"]:
        wq = blk["qkv_w"][:, 0 * HIDDEN:1 * HIDDEN]
        wk = blk["qkv_w"][:, 1 * HIDDEN:2 * HIDDEN]
        wv = blk["qkv_w"][:, 2 * HIDDEN:3 * HIDDEN]
        wqkv = jnp.concatenate(
            [wq * attn_scale, roll_heads(wq) * attn_scale,
             wk, roll_heads(wk), wv], axis=1)                          # (D, 5D)
        lists["wqkv"].append(wqkv.astype(jnp.bfloat16))
        lists["wo"].append(blk["attn_out_w"].astype(jnp.bfloat16))
        lists["n1w"].append(blk["norm1_w"])
        lists["n2w"].append(blk["norm2_w"])
        lists["m1w"].append(blk["mlp_w1"].astype(jnp.bfloat16))
        lists["m1b"].append(blk["mlp_b1"])
        lists["m2w"].append(blk["mlp_w2"].astype(jnp.bfloat16))
        lists["m2b"].append(blk["mlp_b2"])
        lists["ada_w"].append(blk["ada_w"].astype(jnp.bfloat16))
        lists["ada_b"].append(blk["ada_b"])

    prep = {k: jnp.stack(v, axis=0) for k, v in lists.items()}

    flw_pad = jnp.zeros((HIDDEN, OUT_PAD), jnp.float32)
    flw_pad = flw_pad.at[:, :OUTPUT_DIM].set(params["final_lin_w"])
    flb_pad = jnp.zeros((1, OUT_PAD), jnp.float32)
    flb_pad = flb_pad.at[:, :OUTPUT_DIM].set(params["final_lin_b"])

    prep.update({
        "embed_w": params["embed_w"], "embed_b": params["embed_b"],
        "t_w1": params["t_w1"], "t_b1": params["t_b1"],
        "t_w2": params["t_w2"], "t_b2": params["t_b2"],
        "cos_rows": cos_rows,
        "sin_rows": sin_rows,
        "final_norm_w": params["final_norm_w"],
        "final_lin_w": flw_pad.astype(jnp.bfloat16),
        "final_lin_b": flb_pad,
        "final_ada_w": params["final_ada_w"].astype(jnp.bfloat16),
        "final_ada_b": params["final_ada_b"],
    })
    return prep


def dit_forward(prep, input_vector, t):
    c = compute_cond(prep, t)                             # (B, COND)
    c_rows = jnp.repeat(c, S, axis=0)                     # (BS, COND) per-row cond
    x_rows = input_vector.reshape(BS, INPUT_DIM).astype(jnp.float32)

    y = pl.pallas_call(
        _dit_fused_kernel,
        out_shape=jax.ShapeDtypeStruct((BS, OUT_PAD), jnp.float32),
        # <0.5 MiB resident; limit fine on v5e/v6e (128 MiB) and v7x (64 MiB).
        compiler_params=pltpu.CompilerParams(vmem_limit_bytes=32 * 1024 * 1024),
    )(x_rows, prep["embed_w"], prep["embed_b"], c_rows,
      prep["cos_rows"], prep["sin_rows"],
      prep["ada_w"], prep["ada_b"],
      prep["n1w"], prep["wqkv"], prep["wo"],
      prep["n2w"], prep["m1w"], prep["m1b"], prep["m2w"], prep["m2b"],
      prep["final_norm_w"], prep["final_ada_w"], prep["final_ada_b"],
      prep["final_lin_w"], prep["final_lin_b"])

    return y[:, :OUTPUT_DIM].reshape(B, S, OUTPUT_DIM).astype(jnp.bfloat16)


# ------------------------- pure-JAX reference (check) ------------------------
def _embed_math(x, w, b):
    return jnp.dot(x, w, preferred_element_type=jnp.float32) + b


def _block_math(x_skip, c, cos, sin,
                n1w, qkvw, outw, n2w, m1w, m1b, m2w, m2b, adaw, adab, n_heads):
    D = x_skip.shape[-1]
    hd = D // n_heads
    mod = _bf16_dot(c, adaw) + adab
    shift_msa = mod[:, 0 * D:1 * D]
    scale_msa = mod[:, 1 * D:2 * D]
    gate_msa = mod[:, 2 * D:3 * D]
    shift_mlp = mod[:, 3 * D:4 * D]
    scale_mlp = mod[:, 4 * D:5 * D]
    gate_mlp = mod[:, 5 * D:6 * D]

    xm = _layernorm(x_skip, n1w) * (1.0 + scale_msa) + shift_msa
    qkv = _bf16_dot(xm, qkvw)
    scale = 1.0 / math.sqrt(hd)

    def _rot(tt):
        t1 = tt[:, :hd // 2]
        t2 = tt[:, hd // 2:]
        return tt * cos + jnp.concatenate([-t2, t1], axis=-1) * sin

    head_outs = []
    for h in range(n_heads):
        q = _rot(qkv[:, 0 * D + h * hd:0 * D + (h + 1) * hd])
        k = _rot(qkv[:, 1 * D + h * hd:1 * D + (h + 1) * hd])
        v = qkv[:, 2 * D + h * hd:2 * D + (h + 1) * hd]
        s = _bf16_dot(q, k.T) * scale
        s = s - jnp.max(s, axis=-1, keepdims=True)
        p = jnp.exp(s)
        p = p / jnp.sum(p, axis=-1, keepdims=True)
        head_outs.append(_bf16_dot(p, v))
    attn = jnp.concatenate(head_outs, axis=-1)

    x = x_skip + gate_msa * _bf16_dot(attn, outw)
    xm2 = _layernorm(x, n2w) * (1.0 + scale_mlp) + shift_mlp
    h1 = _gelu_tanh(_bf16_dot(xm2, m1w) + m1b)
    mlp = _bf16_dot(h1, m2w) + m2b
    return x + gate_mlp * mlp


def _final_math(x, c, nw, lw, lb, adaw, adab):
    D = x.shape[-1]
    mod = _bf16_dot(c, adaw) + adab
    shift, scl = mod[:, :D], mod[:, D:]
    xm = _layernorm(x, nw) * (1.0 + scl) + shift
    return _bf16_dot(xm, lw) + lb


def dit_forward_reference(params, input_vector, t):
    cos, sin = rotary_cos_sin(S, HEAD_DIM)
    c = compute_cond(params, t)
    outs = []
    for b in range(B):
        xb = _embed_math(input_vector[b].astype(jnp.float32),
                         params["embed_w"], params["embed_b"])
        cb = c[b:b + 1]
        for blk in params["blocks"]:
            xb = _block_math(xb, cb, cos, sin,
                             blk["norm1_w"], blk["qkv_w"], blk["attn_out_w"],
                             blk["norm2_w"], blk["mlp_w1"], blk["mlp_b1"],
                             blk["mlp_w2"], blk["mlp_b2"],
                             blk["ada_w"], blk["ada_b"], N_HEADS)
        yb = _final_math(xb, cb, params["final_norm_w"], params["final_lin_w"],
                         params["final_lin_b"], params["final_ada_w"],
                         params["final_ada_b"])
        outs.append(yb.astype(jnp.bfloat16))
    return jnp.stack(outs, axis=0)


# ------------------------------ parameter init ------------------------------
def init_params(key):
    keys = jax.random.split(key, 128)
    it = iter(keys)

    def w(shape, scale=0.05):
        return (scale * jax.random.normal(next(it), shape)).astype(jnp.float32)

    params = {
        "embed_w": w((INPUT_DIM, HIDDEN), 0.2),
        "embed_b": w((1, HIDDEN), 0.1),
        "t_w1": w((FREQ_EMB, COND_DIM), 0.05),
        "t_b1": w((1, COND_DIM), 0.05),
        "t_w2": w((COND_DIM, COND_DIM), 0.05),
        "t_b2": w((1, COND_DIM), 0.05),
        "final_norm_w": jnp.ones((1, HIDDEN), jnp.float32),
        "final_lin_w": w((HIDDEN, OUTPUT_DIM), 0.05),
        "final_lin_b": w((1, OUTPUT_DIM), 0.05),
        "final_ada_w": w((COND_DIM, 2 * HIDDEN), 0.02),
        "final_ada_b": w((1, 2 * HIDDEN), 0.02),
        "blocks": [],
    }
    for _ in range(N_BLOCKS):
        params["blocks"].append({
            "norm1_w": jnp.ones((1, HIDDEN), jnp.float32),
            "qkv_w": w((HIDDEN, 3 * HIDDEN), 0.05),
            "attn_out_w": w((HIDDEN, HIDDEN), 0.05),
            "norm2_w": jnp.ones((1, HIDDEN), jnp.float32),
            "mlp_w1": w((HIDDEN, MLP_HIDDEN), 0.05),
            "mlp_b1": w((1, MLP_HIDDEN), 0.05),
            "mlp_w2": w((MLP_HIDDEN, HIDDEN), 0.05),
            "mlp_b2": w((1, HIDDEN), 0.05),
            # NOTE: PyTorch zero-inits adaLN (block == identity at init); we use
            # small random values so the whole compute path is exercised.
            "ada_w": w((COND_DIM, 6 * HIDDEN), 0.02),
            "ada_b": w((1, 6 * HIDDEN), 0.02),
        })
    return params


# ----------------------------------- main -----------------------------------
if __name__ == "__main__":
    key = jax.random.PRNGKey(0)
    k_param, k_x, k_t = jax.random.split(key, 3)

    params = init_params(k_param)
    prep = prepare_params(params)

    input_vector = jax.random.normal(k_x, (B, S, INPUT_DIM), dtype=jnp.float32)
    t = jax.random.uniform(k_t, (B,), dtype=jnp.float32)

    out = jax.jit(dit_forward)(prep, input_vector, t)
    out = jax.block_until_ready(out)
    assert out.shape == (B, S, OUTPUT_DIM) and out.dtype == jnp.bfloat16

    ref = jax.block_until_ready(dit_forward_reference(params, input_vector, t))
    err = jnp.max(jnp.abs(out.astype(jnp.float32) - ref.astype(jnp.float32)))
    if not bool(err < 1e-2):
        raise AssertionError(f"Pallas output mismatch vs reference: {err}")

    # TODO(synk): training-mode (stochastic) dropout is not implemented; the
    # kernel follows the fused *inference* bias-dropout-scale path (identity).
    print("KERNEL_OK")
</pallas_src>

<mosaic_0001>
module attributes {stable_mosaic.version = 11 : i64} {
  func.func @_dit_fused_kernel(%arg0: memref<32x8xf32, #tpu.memory_space<vmem>>, %arg1: memref<8x64xf32, #tpu.memory_space<vmem>>, %arg2: memref<1x64xf32, #tpu.memory_space<vmem>>, %arg3: memref<32x64xf32, #tpu.memory_space<vmem>>, %arg4: memref<32x64xf32, #tpu.memory_space<vmem>>, %arg5: memref<32x64xf32, #tpu.memory_space<vmem>>, %arg6: memref<2x64x384xbf16, #tpu.memory_space<vmem>>, %arg7: memref<2x1x384xf32, #tpu.memory_space<vmem>>, %arg8: memref<2x1x64xf32, #tpu.memory_space<vmem>>, %arg9: memref<2x64x320xbf16, #tpu.memory_space<vmem>>, %arg10: memref<2x64x64xbf16, #tpu.memory_space<vmem>>, %arg11: memref<2x1x64xf32, #tpu.memory_space<vmem>>, %arg12: memref<2x64x256xbf16, #tpu.memory_space<vmem>>, %arg13: memref<2x1x256xf32, #tpu.memory_space<vmem>>, %arg14: memref<2x256x64xbf16, #tpu.memory_space<vmem>>, %arg15: memref<2x1x64xf32, #tpu.memory_space<vmem>>, %arg16: memref<1x64xf32, #tpu.memory_space<vmem>>, %arg17: memref<64x128xbf16, #tpu.memory_space<vmem>>, %arg18: memref<1x128xf32, #tpu.memory_space<vmem>>, %arg19: memref<64x128xbf16, #tpu.memory_space<vmem>>, %arg20: memref<1x128xf32, #tpu.memory_space<vmem>>, %arg21: memref<32x128xf32, #tpu.memory_space<vmem>>) attributes {dimension_semantics = [], scalar_prefetch = 0 : i64, scratch_operands = 0 : i64, tpu.core_type = #tpu.core_type<tc>} {
    %c0 = arith.constant 0 : index
    %c0_0 = arith.constant 0 : index
    %0 = vector.load %arg0[%c0, %c0_0] : memref<32x8xf32, #tpu.memory_space<vmem>>, vector<32x8xf32>
    %c0_1 = arith.constant 0 : index
    %c0_2 = arith.constant 0 : index
    %1 = vector.load %arg1[%c0_1, %c0_2] : memref<8x64xf32, #tpu.memory_space<vmem>>, vector<8x64xf32>
    %cst = arith.constant dense<0.000000e+00> : vector<32x64xf32>
    %2 = tpu.matmul %0, %1, %cst {dimension_numbers = #tpu.dot_dimension_numbers<[1], [0], [0], [1], [0, 0, 1, 1], [], []>} : vector<32x8xf32>, vector<8x64xf32>, vector<32x64xf32> -> vector<32x64xf32>
    %c0_3 = arith.constant 0 : index
    %c0_4 = arith.constant 0 : index
    %3 = vector.load %arg2[%c0_3, %c0_4] : memref<1x64xf32, #tpu.memory_space<vmem>>, vector<1x64xf32>
    %4 = vector.broadcast %3 : vector<1x64xf32> to vector<32x64xf32>
    %5 = arith.addf %2, %4 : vector<32x64xf32>
    %c0_5 = arith.constant 0 : index
    %c0_6 = arith.constant 0 : index
    %6 = vector.load %arg3[%c0_5, %c0_6] : memref<32x64xf32, #tpu.memory_space<vmem>>, vector<32x64xf32>
    %7 = arith.truncf %6 : vector<32x64xf32> to vector<32x64xbf16>
    %c0_7 = arith.constant 0 : index
    %c0_8 = arith.constant 0 : index
    %8 = vector.load %arg4[%c0_7, %c0_8] : memref<32x64xf32, #tpu.memory_space<vmem>>, vector<32x64xf32>
    %c0_9 = arith.constant 0 : index
    %c0_10 = arith.constant 0 : index
    %9 = vector.load %arg5[%c0_9, %c0_10] : memref<32x64xf32, #tpu.memory_space<vmem>>, vector<32x64xf32>
    %c0_11 = arith.constant 0 : index
    %c0_12 = arith.constant 0 : index
    %c0_13 = arith.constant 0 : index
    %10 = vector.load %arg6[%c0_11, %c0_12, %c0_13] : memref<2x64x384xbf16, #tpu.memory_space<vmem>>, vector<1x64x384xbf16>
    %11 = vector.shape_cast %10 : vector<1x64x384xbf16> to vector<64x384xbf16>
    %cst_14 = arith.constant dense<0.000000e+00> : vector<32x384xf32>
    %12 = tpu.matmul %7, %11, %cst_14 {dimension_numbers = #tpu.dot_dimension_numbers<[1], [0], [0], [1], [0, 0, 1, 1], [], []>} : vector<32x64xbf16>, vector<64x384xbf16>, vector<32x384xf32> -> vector<32x384xf32>
    %c0_15 = arith.constant 0 : index
    %c0_16 = arith.constant 0 : index
    %c0_17 = arith.constant 0 : index
    %13 = vector.load %arg7[%c0_15, %c0_16, %c0_17] : memref<2x1x384xf32, #tpu.memory_space<vmem>>, vector<1x1x384xf32>
    %14 = vector.shape_cast %13 : vector<1x1x384xf32> to vector<1x384xf32>
    %15 = vector.broadcast %14 : vector<1x384xf32> to vector<32x384xf32>
    %16 = arith.addf %12, %15 : vector<32x384xf32>
    %17 = vector.extract_strided_slice %16 {offsets = [0, 0], sizes = [32, 64], strides = [1, 1]} : vector<32x384xf32> to vector<32x64xf32>
    %18 = vector.extract_strided_slice %16 {offsets = [0, 64], sizes = [32, 64], strides = [1, 1]} : vector<32x384xf32> to vector<32x64xf32>
    %19 = vector.extract_strided_slice %16 {offsets = [0, 128], sizes = [32, 64], strides = [1, 1]} : vector<32x384xf32> to vector<32x64xf32>
    %20 = vector.extract_strided_slice %16 {offsets = [0, 192], sizes = [32, 64], strides = [1, 1]} : vector<32x384xf32> to vector<32x64xf32>
    %21 = vector.extract_strided_slice %16 {offsets = [0, 256], sizes = [32, 64], strides = [1, 1]} : vector<32x384xf32> to vector<32x64xf32>
    %22 = vector.extract_strided_slice %16 {offsets = [0, 320], sizes = [32, 64], strides = [1, 1]} : vector<32x384xf32> to vector<32x64xf32>
    %c0_18 = arith.constant 0 : index
    %c0_19 = arith.constant 0 : index
    %c0_20 = arith.constant 0 : index
    %23 = vector.load %arg8[%c0_18, %c0_19, %c0_20] : memref<2x1x64xf32, #tpu.memory_space<vmem>>, vector<1x1x64xf32>
    %24 = vector.shape_cast %23 : vector<1x1x64xf32> to vector<1x64xf32>
    %cst_21 = arith.constant dense<0.000000e+00> : vector<32xf32>
    %25 = vector.multi_reduction <add>, %5, %cst_21 [1] : vector<32x64xf32> to vector<32xf32>
    %26 = vector.shape_cast %25 : vector<32xf32> to vector<32x1xf32>
    %cst_22 = arith.constant 6.400000e+01 : f32
    %27 = vector.broadcast %cst_22 : f32 to vector<32x1xf32>
    %28 = arith.divf %26, %27 : vector<32x1xf32>
    %29 = vector.broadcast %28 : vector<32x1xf32> to vector<32x64xf32>
    %30 = arith.subf %5, %29 : vector<32x64xf32>
    %31 = arith.mulf %30, %30 : vector<32x64xf32>
    %cst_23 = arith.constant dense<0.000000e+00> : vector<32xf32>
    %32 = vector.multi_reduction <add>, %31, %cst_23 [1] : vector<32x64xf32> to vector<32xf32>
    %33 = vector.shape_cast %32 : vector<32xf32> to vector<32x1xf32>
    %cst_24 = arith.constant 6.400000e+01 : f32
    %34 = vector.broadcast %cst_24 : f32 to vector<32x1xf32>
    %35 = arith.divf %33, %34 : vector<32x1xf32>
    %cst_25 = arith.constant 9.99999974E-6 : f32
    %36 = vector.broadcast %cst_25 : f32 to vector<32x1xf32>
    %37 = arith.addf %35, %36 : vector<32x1xf32>
    %38 = math.rsqrt %37 : vector<32x1xf32>
    %39 = vector.broadcast %38 : vector<32x1xf32> to vector<32x64xf32>
    %40 = arith.mulf %30, %39 : vector<32x64xf32>
    %41 = vector.broadcast %24 : vector<1x64xf32> to vector<32x64xf32>
    %42 = arith.mulf %40, %41 : vector<32x64xf32>
    %cst_26 = arith.constant 1.000000e+00 : f32
    %43 = vector.broadcast %cst_26 : f32 to vector<32x64xf32>
    %44 = arith.addf %43, %18 : vector<32x64xf32>
    %45 = arith.mulf %42, %44 : vector<32x64xf32>
    %46 = arith.addf %45, %17 : vector<32x64xf32>
    %47 = arith.truncf %46 : vector<32x64xf32> to vector<32x64xbf16>
    %c0_27 = arith.constant 0 : index
    %c0_28 = arith.constant 0 : index
    %c0_29 = arith.constant 0 : index
    %48 = vector.load %arg9[%c0_27, %c0_28, %c0_29] : memref<2x64x320xbf16, #tpu.memory_space<vmem>>, vector<1x64x320xbf16>
    %49 = vector.shape_cast %48 : vector<1x64x320xbf16> to vector<64x320xbf16>
    %cst_30 = arith.constant dense<0.000000e+00> : vector<32x320xf32>
    %50 = tpu.matmul %47, %49, %cst_30 {dimension_numbers = #tpu.dot_dimension_numbers<[1], [0], [0], [1], [0, 0, 1, 1], [], []>} : vector<32x64xbf16>, vector<64x320xbf16>, vector<32x320xf32> -> vector<32x320xf32>
    %51 = vector.extract_strided_slice %50 {offsets = [0, 0], sizes = [32, 64], strides = [1, 1]} : vector<32x320xf32> to vector<32x64xf32>
    %52 = arith.mulf %51, %8 : vector<32x64xf32>
    %53 = vector.extract_strided_slice %50 {offsets = [0, 64], sizes = [32, 64], strides = [1, 1]} : vector<32x320xf32> to vector<32x64xf32>
    %54 = arith.mulf %53, %9 : vector<32x64xf32>
    %55 = arith.addf %52, %54 : vector<32x64xf32>
    %56 = arith.truncf %55 : vector<32x64xf32> to vector<32x64xbf16>
    %57 = vector.extract_strided_slice %50 {offsets = [0, 128], sizes = [32, 64], strides = [1, 1]} : vector<32x320xf32> to vector<32x64xf32>
    %58 = arith.mulf %57, %8 : vector<32x64xf32>
    %59 = vector.extract_strided_slice %50 {offsets = [0, 192], sizes = [32, 64], strides = [1, 1]} : vector<32x320xf32> to vector<32x64xf32>
    %60 = arith.mulf %59, %9 : vector<32x64xf32>
    %61 = arith.addf %58, %60 : vector<32x64xf32>
    %62 = arith.truncf %61 : vector<32x64xf32> to vector<32x64xbf16>
    %63 = vector.extract_strided_slice %50 {offsets = [0, 256], sizes = [32, 64], strides = [1, 1]} : vector<32x320xf32> to vector<32x64xf32>
    %64 = arith.truncf %63 : vector<32x64xf32> to vector<32x64xbf16>
    %65 = vector.extract_strided_slice %56 {offsets = [0, 0], sizes = [16, 16], strides = [1, 1]} : vector<32x64xbf16> to vector<16x16xbf16>
    %66 = vector.extract_strided_slice %62 {offsets = [0, 0], sizes = [16, 16], strides = [1, 1]} : vector<32x64xbf16> to vector<16x16xbf16>
    %67 = vector.extract_strided_slice %64 {offsets = [0, 0], sizes = [16, 16], strides = [1, 1]} : vector<32x64xbf16> to vector<16x16xbf16>
    %cst_31 = arith.constant dense<0.000000e+00> : vector<16x16xf32>
    %68 = tpu.matmul %65, %66, %cst_31 {dimension_numbers = #tpu.dot_dimension_numbers<[1], [1], [0], [0], [0, 0, 1, 0], [], []>} : vector<16x16xbf16>, vector<16x16xbf16>, vector<16x16xf32> -> vector<16x16xf32>
    %cst_32 = arith.constant dense<0xFF800000> : vector<16xf32>
    %69 = vector.multi_reduction <maximumf>, %68, %cst_32 [1] : vector<16x16xf32> to vector<16xf32>
    %70 = vector.shape_cast %69 : vector<16xf32> to vector<16x1xf32>
    %71 = vector.broadcast %70 : vector<16x1xf32> to vector<16x16xf32>
    %72 = arith.subf %68, %71 : vector<16x16xf32>
    %73 = math.exp %72 : vector<16x16xf32>
    %cst_33 = arith.constant dense<0.000000e+00> : vector<16xf32>
    %74 = vector.multi_reduction <add>, %73, %cst_33 [1] : vector<16x16xf32> to vector<16xf32>
    %75 = vector.shape_cast %74 : vector<16xf32> to vector<16x1xf32>
    %76 = tpu.reciprocal %75 {approx = true} : vector<16x1xf32> -> vector<16x1xf32>
    %77 = vector.broadcast %76 : vector<16x1xf32> to vector<16x16xf32>
    %78 = arith.mulf %73, %77 : vector<16x16xf32>
    %79 = arith.truncf %78 : vector<16x16xf32> to vector<16x16xbf16>
    %cst_34 = arith.constant dense<0.000000e+00> : vector<16x16xf32>
    %80 = tpu.matmul %79, %67, %cst_34 {dimension_numbers = #tpu.dot_dimension_numbers<[1], [0], [0], [1], [0, 0, 1, 1], [], []>} : vector<16x16xbf16>, vector<16x16xbf16>, vector<16x16xf32> -> vector<16x16xf32>
    %81 = vector.extract_strided_slice %56 {offsets = [0, 16], sizes = [16, 16], strides = [1, 1]} : vector<32x64xbf16> to vector<16x16xbf16>
    %82 = vector.extract_strided_slice %62 {offsets = [0, 16], sizes = [16, 16], strides = [1, 1]} : vector<32x64xbf16> to vector<16x16xbf16>
    %83 = vector.extract_strided_slice %64 {offsets = [0, 16], sizes = [16, 16], strides = [1, 1]} : vector<32x64xbf16> to vector<16x16xbf16>
    %cst_35 = arith.constant dense<0.000000e+00> : vector<16x16xf32>
    %84 = tpu.matmul %81, %82, %cst_35 {dimension_numbers = #tpu.dot_dimension_numbers<[1], [1], [0], [0], [0, 0, 1, 0], [], []>} : vector<16x16xbf16>, vector<16x16xbf16>, vector<16x16xf32> -> vector<16x16xf32>
    %cst_36 = arith.constant dense<0xFF800000> : vector<16xf32>
    %85 = vector.multi_reduction <maximumf>, %84, %cst_36 [1] : vector<16x16xf32> to vector<16xf32>
    %86 = vector.shape_cast %85 : vector<16xf32> to vector<16x1xf32>
    %87 = vector.broadcast %86 : vector<16x1xf32> to vector<16x16xf32>
    %88 = arith.subf %84, %87 : vector<16x16xf32>
    %89 = math.exp %88 : vector<16x16xf32>
    %cst_37 = arith.constant dense<0.000000e+00> : vector<16xf32>
    %90 = vector.multi_reduction <add>, %89, %cst_37 [1] : vector<16x16xf32> to vector<16xf32>
    %91 = vector.shape_cast %90 : vector<16xf32> to vector<16x1xf32>
    %92 = tpu.reciprocal %91 {approx = true} : vector<16x1xf32> -> vector<16x1xf32>
    %93 = vector.broadcast %92 : vector<16x1xf32> to vector<16x16xf32>
    %94 = arith.mulf %89, %93 : vector<16x16xf32>
    %95 = arith.truncf %94 : vector<16x16xf32> to vector<16x16xbf16>
    %cst_38 = arith.constant dense<0.000000e+00> : vector<16x16xf32>
    %96 = tpu.matmul %95, %83, %cst_38 {dimension_numbers = #tpu.dot_dimension_numbers<[1], [0], [0], [1], [0, 0, 1, 1], [], []>} : vector<16x16xbf16>, vector<16x16xbf16>, vector<16x16xf32> -> vector<16x16xf32>
    %97 = vector.extract_strided_slice %56 {offsets = [0, 32], sizes = [16, 16], strides = [1, 1]} : vector<32x64xbf16> to vector<16x16xbf16>
    %98 = vector.extract_strided_slice %62 {offsets = [0, 32], sizes = [16, 16], strides = [1, 1]} : vector<32x64xbf16> to vector<16x16xbf16>
    %99 = vector.extract_strided_slice %64 {offsets = [0, 32], sizes = [16, 16], strides = [1, 1]} : vector<32x64xbf16> to vector<16x16xbf16>
    %cst_39 = arith.constant dense<0.000000e+00> : vector<16x16xf32>
    %100 = tpu.matmul %97, %98, %cst_39 {dimension_numbers = #tpu.dot_dimension_numbers<[1], [1], [0], [0], [0, 0, 1, 0], [], []>} : vector<16x16xbf16>, vector<16x16xbf16>, vector<16x16xf32> -> vector<16x16xf32>
    %cst_40 = arith.constant dense<0xFF800000> : vector<16xf32>
    %101 = vector.multi_reduction <maximumf>, %100, %cst_40 [1] : vector<16x16xf32> to vector<16xf32>
    %102 = vector.shape_cast %101 : vector<16xf32> to vector<16x1xf32>
    %103 = vector.broadcast %102 : vector<16x1xf32> to vector<16x16xf32>
    %104 = arith.subf %100, %103 : vector<16x16xf32>
    %105 = math.exp %104 : vector<16x16xf32>
    %cst_41 = arith.constant dense<0.000000e+00> : vector<16xf32>
    %106 = vector.multi_reduction <add>, %105, %cst_41 [1] : vector<16x16xf32> to vector<16xf32>
    %107 = vector.shape_cast %106 : vector<16xf32> to vector<16x1xf32>
    %108 = tpu.reciprocal %107 {approx = true} : vector<16x1xf32> -> vector<16x1xf32>
    %109 = vector.broadcast %108 : vector<16x1xf32> to vector<16x16xf32>
    %110 = arith.mulf %105, %109 : vector<16x16xf32>
    %111 = arith.truncf %110 : vector<16x16xf32> to vector<16x16xbf16>
    %cst_42 = arith.constant dense<0.000000e+00> : vector<16x16xf32>
    %112 = tpu.matmul %111, %99, %cst_42 {dimension_numbers = #tpu.dot_dimension_numbers<[1], [0], [0], [1], [0, 0, 1, 1], [], []>} : vector<16x16xbf16>, vector<16x16xbf16>, vector<16x16xf32> -> vector<16x16xf32>
    %113 = vector.extract_strided_slice %56 {offsets = [0, 48], sizes = [16, 16], strides = [1, 1]} : vector<32x64xbf16> to vector<16x16xbf16>
    %114 = vector.extract_strided_slice %62 {offsets = [0, 48], sizes = [16, 16], strides = [1, 1]} : vector<32x64xbf16> to vector<16x16xbf16>
    %115 = vector.extract_strided_slice %64 {offsets = [0, 48], sizes = [16, 16], strides = [1, 1]} : vector<32x64xbf16> to vector<16x16xbf16>
    %cst_43 = arith.constant dense<0.000000e+00> : vector<16x16xf32>
    %116 = tpu.matmul %113, %114, %cst_43 {dimension_numbers = #tpu.dot_dimension_numbers<[1], [1], [0], [0], [0, 0, 1, 0], [], []>} : vector<16x16xbf16>, vector<16x16xbf16>, vector<16x16xf32> -> vector<16x16xf32>
    %cst_44 = arith.constant dense<0xFF800000> : vector<16xf32>
    %117 = vector.multi_reduction <maximumf>, %116, %cst_44 [1] : vector<16x16xf32> to vector<16xf32>
    %118 = vector.shape_cast %117 : vector<16xf32> to vector<16x1xf32>
    %119 = vector.broadcast %118 : vector<16x1xf32> to vector<16x16xf32>
    %120 = arith.subf %116, %119 : vector<16x16xf32>
    %121 = math.exp %120 : vector<16x16xf32>
    %cst_45 = arith.constant dense<0.000000e+00> : vector<16xf32>
    %122 = vector.multi_reduction <add>, %121, %cst_45 [1] : vector<16x16xf32> to vector<16xf32>
    %123 = vector.shape_cast %122 : vector<16xf32> to vector<16x1xf32>
    %124 = tpu.reciprocal %123 {approx = true} : vector<16x1xf32> -> vector<16x1xf32>
    %125 = vector.broadcast %124 : vector<16x1xf32> to vector<16x16xf32>
    %126 = arith.mulf %121, %125 : vector<16x16xf32>
    %127 = arith.truncf %126 : vector<16x16xf32> to vector<16x16xbf16>
    %cst_46 = arith.constant dense<0.000000e+00> : vector<16x16xf32>
    %128 = tpu.matmul %127, %115, %cst_46 {dimension_numbers = #tpu.dot_dimension_numbers<[1], [0], [0], [1], [0, 0, 1, 1], [], []>} : vector<16x16xbf16>, vector<16x16xbf16>, vector<16x16xf32> -> vector<16x16xf32>
    %129 = tpu.concatenate %80, %96, %112, %128 in 1 : vector<16x16xf32>, vector<16x16xf32>, vector<16x16xf32>, vector<16x16xf32> -> vector<16x64xf32>
    %130 = vector.extract_strided_slice %56 {offsets = [16, 0], sizes = [16, 16], strides = [1, 1]} : vector<32x64xbf16> to vector<16x16xbf16>
    %131 = vector.extract_strided_slice %62 {offsets = [16, 0], sizes = [16, 16], strides = [1, 1]} : vector<32x64xbf16> to vector<16x16xbf16>
    %132 = vector.extract_strided_slice %64 {offsets = [16, 0], sizes = [16, 16], strides = [1, 1]} : vector<32x64xbf16> to vector<16x16xbf16>
    %cst_47 = arith.constant dense<0.000000e+00> : vector<16x16xf32>
    %133 = tpu.matmul %130, %131, %cst_47 {dimension_numbers = #tpu.dot_dimension_numbers<[1], [1], [0], [0], [0, 0, 1, 0], [], []>} : vector<16x16xbf16>, vector<16x16xbf16>, vector<16x16xf32> -> vector<16x16xf32>
    %cst_48 = arith.constant dense<0xFF800000> : vector<16xf32>
    %134 = vector.multi_reduction <maximumf>, %133, %cst_48 [1] : vector<16x16xf32> to vector<16xf32>
    %135 = vector.shape_cast %134 : vector<16xf32> to vector<16x1xf32>
    %136 = vector.broadcast %135 : vector<16x1xf32> to vector<16x16xf32>
    %137 = arith.subf %133, %136 : vector<16x16xf32>
    %138 = math.exp %137 : vector<16x16xf32>
    %cst_49 = arith.constant dense<0.000000e+00> : vector<16xf32>
    %139 = vector.multi_reduction <add>, %138, %cst_49 [1] : vector<16x16xf32> to vector<16xf32>
    %140 = vector.shape_cast %139 : vector<16xf32> to vector<16x1xf32>
    %141 = tpu.reciprocal %140 {approx = true} : vector<16x1xf32> -> vector<16x1xf32>
    %142 = vector.broadcast %141 : vector<16x1xf32> to vector<16x16xf32>
    %143 = arith.mulf %138, %142 : vector<16x16xf32>
    %144 = arith.truncf %143 : vector<16x16xf32> to vector<16x16xbf16>
    %cst_50 = arith.constant dense<0.000000e+00> : vector<16x16xf32>
    %145 = tpu.matmul %144, %132, %cst_50 {dimension_numbers = #tpu.dot_dimension_numbers<[1], [0], [0], [1], [0, 0, 1, 1], [], []>} : vector<16x16xbf16>, vector<16x16xbf16>, vector<16x16xf32> -> vector<16x16xf32>
    %146 = vector.extract_strided_slice %56 {offsets = [16, 16], sizes = [16, 16], strides = [1, 1]} : vector<32x64xbf16> to vector<16x16xbf16>
    %147 = vector.extract_strided_slice %62 {offsets = [16, 16], sizes = [16, 16], strides = [1, 1]} : vector<32x64xbf16> to vector<16x16xbf16>
    %148 = vector.extract_strided_slice %64 {offsets = [16, 16], sizes = [16, 16], strides = [1, 1]} : vector<32x64xbf16> to vector<16x16xbf16>
    %cst_51 = arith.constant dense<0.000000e+00> : vector<16x16xf32>
    %149 = tpu.matmul %146, %147, %cst_51 {dimension_numbers = #tpu.dot_dimension_numbers<[1], [1], [0], [0], [0, 0, 1, 0], [], []>} : vector<16x16xbf16>, vector<16x16xbf16>, vector<16x16xf32> -> vector<16x16xf32>
    %cst_52 = arith.constant dense<0xFF800000> : vector<16xf32>
    %150 = vector.multi_reduction <maximumf>, %149, %cst_52 [1] : vector<16x16xf32> to vector<16xf32>
    %151 = vector.shape_cast %150 : vector<16xf32> to vector<16x1xf32>
    %152 = vector.broadcast %151 : vector<16x1xf32> to vector<16x16xf32>
    %153 = arith.subf %149, %152 : vector<16x16xf32>
    %154 = math.exp %153 : vector<16x16xf32>
    %cst_53 = arith.constant dense<0.000000e+00> : vector<16xf32>
    %155 = vector.multi_reduction <add>, %154, %cst_53 [1] : vector<16x16xf32> to vector<16xf32>
    %156 = vector.shape_cast %155 : vector<16xf32> to vector<16x1xf32>
    %157 = tpu.reciprocal %156 {approx = true} : vector<16x1xf32> -> vector<16x1xf32>
    %158 = vector.broadcast %157 : vector<16x1xf32> to vector<16x16xf32>
    %159 = arith.mulf %154, %158 : vector<16x16xf32>
    %160 = arith.truncf %159 : vector<16x16xf32> to vector<16x16xbf16>
    %cst_54 = arith.constant dense<0.000000e+00> : vector<16x16xf32>
    %161 = tpu.matmul %160, %148, %cst_54 {dimension_numbers = #tpu.dot_dimension_numbers<[1], [0], [0], [1], [0, 0, 1, 1], [], []>} : vector<16x16xbf16>, vector<16x16xbf16>, vector<16x16xf32> -> vector<16x16xf32>
    %162 = vector.extract_strided_slice %56 {offsets = [16, 32], sizes = [16, 16], strides = [1, 1]} : vector<32x64xbf16> to vector<16x16xbf16>
    %163 = vector.extract_strided_slice %62 {offsets = [16, 32], sizes = [16, 16], strides = [1, 1]} : vector<32x64xbf16> to vector<16x16xbf16>
    %164 = vector.extract_strided_slice %64 {offsets = [16, 32], sizes = [16, 16], strides = [1, 1]} : vector<32x64xbf16> to vector<16x16xbf16>
    %cst_55 = arith.constant dense<0.000000e+00> : vector<16x16xf32>
    %165 = tpu.matmul %162, %163, %cst_55 {dimension_numbers = #tpu.dot_dimension_numbers<[1], [1], [0], [0], [0, 0, 1, 0], [], []>} : vector<16x16xbf16>, vector<16x16xbf16>, vector<16x16xf32> -> vector<16x16xf32>
    %cst_56 = arith.constant dense<0xFF800000> : vector<16xf32>
    %166 = vector.multi_reduction <maximumf>, %165, %cst_56 [1] : vector<16x16xf32> to vector<16xf32>
    %167 = vector.shape_cast %166 : vector<16xf32> to vector<16x1xf32>
    %168 = vector.broadcast %167 : vector<16x1xf32> to vector<16x16xf32>
    %169 = arith.subf %165, %168 : vector<16x16xf32>
    %170 = math.exp %169 : vector<16x16xf32>
    %cst_57 = arith.constant dense<0.000000e+00> : vector<16xf32>
    %171 = vector.multi_reduction <add>, %170, %cst_57 [1] : vector<16x16xf32> to vector<16xf32>
    %172 = vector.shape_cast %171 : vector<16xf32> to vector<16x1xf32>
    %173 = tpu.reciprocal %172 {approx = true} : vector<16x1xf32> -> vector<16x1xf32>
    %174 = vector.broadcast %173 : vector<16x1xf32> to vector<16x16xf32>
    %175 = arith.mulf %170, %174 : vector<16x16xf32>
    %176 = arith.truncf %175 : vector<16x16xf32> to vector<16x16xbf16>
    %cst_58 = arith.constant dense<0.000000e+00> : vector<16x16xf32>
    %177 = tpu.matmul %176, %164, %cst_58 {dimension_numbers = #tpu.dot_dimension_numbers<[1], [0], [0], [1], [0, 0, 1, 1], [], []>} : vector<16x16xbf16>, vector<16x16xbf16>, vector<16x16xf32> -> vector<16x16xf32>
    %178 = vector.extract_strided_slice %56 {offsets = [16, 48], sizes = [16, 16], strides = [1, 1]} : vector<32x64xbf16> to vector<16x16xbf16>
    %179 = vector.extract_strided_slice %62 {offsets = [16, 48], sizes = [16, 16], strides = [1, 1]} : vector<32x64xbf16> to vector<16x16xbf16>
    %180 = vector.extract_strided_slice %64 {offsets = [16, 48], sizes = [16, 16], strides = [1, 1]} : vector<32x64xbf16> to vector<16x16xbf16>
    %cst_59 = arith.constant dense<0.000000e+00> : vector<16x16xf32>
    %181 = tpu.matmul %178, %179, %cst_59 {dimension_numbers = #tpu.dot_dimension_numbers<[1], [1], [0], [0], [0, 0, 1, 0], [], []>} : vector<16x16xbf16>, vector<16x16xbf16>, vector<16x16xf32> -> vector<16x16xf32>
    %cst_60 = arith.constant dense<0xFF800000> : vector<16xf32>
    %182 = vector.multi_reduction <maximumf>, %181, %cst_60 [1] : vector<16x16xf32> to vector<16xf32>
    %183 = vector.shape_cast %182 : vector<16xf32> to vector<16x1xf32>
    %184 = vector.broadcast %183 : vector<16x1xf32> to vector<16x16xf32>
    %185 = arith.subf %181, %184 : vector<16x16xf32>
    %186 = math.exp %185 : vector<16x16xf32>
    %cst_61 = arith.constant dense<0.000000e+00> : vector<16xf32>
    %187 = vector.multi_reduction <add>, %186, %cst_61 [1] : vector<16x16xf32> to vector<16xf32>
    %188 = vector.shape_cast %187 : vector<16xf32> to vector<16x1xf32>
    %189 = tpu.reciprocal %188 {approx = true} : vector<16x1xf32> -> vector<16x1xf32>
    %190 = vector.broadcast %189 : vector<16x1xf32> to vector<16x16xf32>
    %191 = arith.mulf %186, %190 : vector<16x16xf32>
    %192 = arith.truncf %191 : vector<16x16xf32> to vector<16x16xbf16>
    %cst_62 = arith.constant dense<0.000000e+00> : vector<16x16xf32>
    %193 = tpu.matmul %192, %180, %cst_62 {dimension_numbers = #tpu.dot_dimension_numbers<[1], [0], [0], [1], [0, 0, 1, 1], [], []>} : vector<16x16xbf16>, vector<16x16xbf16>, vector<16x16xf32> -> vector<16x16xf32>
    %194 = tpu.concatenate %145, %161, %177, %193 in 1 : vector<16x16xf32>, vector<16x16xf32>, vector<16x16xf32>, vector<16x16xf32> -> vector<16x64xf32>
    %195 = tpu.concatenate %129, %194 in 0 : vector<16x64xf32>, vector<16x64xf32> -> vector<32x64xf32>
    %196 = arith.truncf %195 : vector<32x64xf32> to vector<32x64xbf16>
    %c0_63 = arith.constant 0 : index
    %c0_64 = arith.constant 0 : index
    %c0_65 = arith.constant 0 : index
    %197 = vector.load %arg10[%c0_63, %c0_64, %c0_65] : memref<2x64x64xbf16, #tpu.memory_space<vmem>>, vector<1x64x64xbf16>
    %198 = vector.shape_cast %197 : vector<1x64x64xbf16> to vector<64x64xbf16>
    %cst_66 = arith.constant dense<0.000000e+00> : vector<32x64xf32>
    %199 = tpu.matmul %196, %198, %cst_66 {dimension_numbers = #tpu.dot_dimension_numbers<[1], [0], [0], [1], [0, 0, 1, 1], [], []>} : vector<32x64xbf16>, vector<64x64xbf16>, vector<32x64xf32> -> vector<32x64xf32>
    %200 = arith.mulf %19, %199 : vector<32x64xf32>
    %201 = arith.addf %5, %200 : vector<32x64xf32>
    %c0_67 = arith.constant 0 : index
    %c0_68 = arith.constant 0 : index
    %c0_69 = arith.constant 0 : index
    %202 = vector.load %arg11[%c0_67, %c0_68, %c0_69] : memref<2x1x64xf32, #tpu.memory_space<vmem>>, vector<1x1x64xf32>
    %203 = vector.shape_cast %202 : vector<1x1x64xf32> to vector<1x64xf32>
    %cst_70 = arith.constant dense<0.000000e+00> : vector<32xf32>
    %204 = vector.multi_reduction <add>, %201, %cst_70 [1] : vector<32x64xf32> to vector<32xf32>
    %205 = vector.shape_cast %204 : vector<32xf32> to vector<32x1xf32>
    %cst_71 = arith.constant 6.400000e+01 : f32
    %206 = vector.broadcast %cst_71 : f32 to vector<32x1xf32>
    %207 = arith.divf %205, %206 : vector<32x1xf32>
    %208 = vector.broadcast %207 : vector<32x1xf32> to vector<32x64xf32>
    %209 = arith.subf %201, %208 : vector<32x64xf32>
    %210 = arith.mulf %209, %209 : vector<32x64xf32>
    %cst_72 = arith.constant dense<0.000000e+00> : vector<32xf32>
    %211 = vector.multi_reduction <add>, %210, %cst_72 [1] : vector<32x64xf32> to vector<32xf32>
    %212 = vector.shape_cast %211 : vector<32xf32> to vector<32x1xf32>
    %cst_73 = arith.constant 6.400000e+01 : f32
    %213 = vector.broadcast %cst_73 : f32 to vector<32x1xf32>
    %214 = arith.divf %212, %213 : vector<32x1xf32>
    %cst_74 = arith.constant 9.99999974E-6 : f32
    %215 = vector.broadcast %cst_74 : f32 to vector<32x1xf32>
    %216 = arith.addf %214, %215 : vector<32x1xf32>
    %217 = math.rsqrt %216 : vector<32x1xf32>
    %218 = vector.broadcast %217 : vector<32x1xf32> to vector<32x64xf32>
    %219 = arith.mulf %209, %218 : vector<32x64xf32>
    %220 = vector.broadcast %203 : vector<1x64xf32> to vector<32x64xf32>
    %221 = arith.mulf %219, %220 : vector<32x64xf32>
    %cst_75 = arith.constant 1.000000e+00 : f32
    %222 = vector.broadcast %cst_75 : f32 to vector<32x64xf32>
    %223 = arith.addf %222, %21 : vector<32x64xf32>
    %224 = arith.mulf %221, %223 : vector<32x64xf32>
    %225 = arith.addf %224, %20 : vector<32x64xf32>
    %226 = arith.truncf %225 : vector<32x64xf32> to vector<32x64xbf16>
    %c0_76 = arith.constant 0 : index
    %c0_77 = arith.constant 0 : index
    %c0_78 = arith.constant 0 : index
    %227 = vector.load %arg12[%c0_76, %c0_77, %c0_78] : memref<2x64x256xbf16, #tpu.memory_space<vmem>>, vector<1x64x256xbf16>
    %228 = vector.shape_cast %227 : vector<1x64x256xbf16> to vector<64x256xbf16>
    %cst_79 = arith.constant dense<0.000000e+00> : vector<32x256xf32>
    %229 = tpu.matmul %226, %228, %cst_79 {dimension_numbers = #tpu.dot_dimension_numbers<[1], [0], [0], [1], [0, 0, 1, 1], [], []>} : vector<32x64xbf16>, vector<64x256xbf16>, vector<32x256xf32> -> vector<32x256xf32>
    %c0_80 = arith.constant 0 : index
    %c0_81 = arith.constant 0 : index
    %c0_82 = arith.constant 0 : index
    %230 = vector.load %arg13[%c0_80, %c0_81, %c0_82] : memref<2x1x256xf32, #tpu.memory_space<vmem>>, vector<1x1x256xf32>
    %231 = vector.shape_cast %230 : vector<1x1x256xf32> to vector<1x256xf32>
    %232 = vector.broadcast %231 : vector<1x256xf32> to vector<32x256xf32>
    %233 = arith.addf %229, %232 : vector<32x256xf32>
    %cst_83 = arith.constant 5.000000e-01 : f32
    %234 = vector.broadcast %cst_83 : f32 to vector<32x256xf32>
    %235 = arith.mulf %234, %233 : vector<32x256xf32>
    %cst_84 = arith.constant 4.471500e-02 : f32
    %236 = vector.broadcast %cst_84 : f32 to vector<32x256xf32>
    %237 = arith.mulf %236, %233 : vector<32x256xf32>
    %238 = arith.mulf %237, %233 : vector<32x256xf32>
    %239 = arith.mulf %238, %233 : vector<32x256xf32>
    %240 = arith.addf %233, %239 : vector<32x256xf32>
    %cst_85 = arith.constant 0.797884583 : f32
    %241 = vector.broadcast %cst_85 : f32 to vector<32x256xf32>
    %242 = arith.mulf %241, %240 : vector<32x256xf32>
    %243 = math.tanh %242 : vector<32x256xf32>
    %cst_86 = arith.constant 1.000000e+00 : f32
    %244 = vector.broadcast %cst_86 : f32 to vector<32x256xf32>
    %245 = arith.addf %244, %243 : vector<32x256xf32>
    %246 = arith.mulf %235, %245 : vector<32x256xf32>
    %247 = arith.truncf %246 : vector<32x256xf32> to vector<32x256xbf16>
    %c0_87 = arith.constant 0 : index
    %c0_88 = arith.constant 0 : index
    %c0_89 = arith.constant 0 : index
    %248 = vector.load %arg14[%c0_87, %c0_88, %c0_89] : memref<2x256x64xbf16, #tpu.memory_space<vmem>>, vector<1x256x64xbf16>
    %249 = vector.shape_cast %248 : vector<1x256x64xbf16> to vector<256x64xbf16>
    %cst_90 = arith.constant dense<0.000000e+00> : vector<32x64xf32>
    %250 = tpu.matmul %247, %249, %cst_90 {dimension_numbers = #tpu.dot_dimension_numbers<[1], [0], [0], [1], [0, 0, 1, 1], [], []>} : vector<32x256xbf16>, vector<256x64xbf16>, vector<32x64xf32> -> vector<32x64xf32>
    %c0_91 = arith.constant 0 : index
    %c0_92 = arith.constant 0 : index
    %c0_93 = arith.constant 0 : index
    %251 = vector.load %arg15[%c0_91, %c0_92, %c0_93] : memref<2x1x64xf32, #tpu.memory_space<vmem>>, vector<1x1x64xf32>
    %252 = vector.shape_cast %251 : vector<1x1x64xf32> to vector<1x64xf32>
    %253 = vector.broadcast %252 : vector<1x64xf32> to vector<32x64xf32>
    %254 = arith.addf %250, %253 : vector<32x64xf32>
    %255 = arith.mulf %22, %254 : vector<32x64xf32>
    %256 = arith.addf %201, %255 : vector<32x64xf32>
    %c1 = arith.constant 1 : index
    %c0_94 = arith.constant 0 : index
    %c0_95 = arith.constant 0 : index
    %257 = vector.load %arg6[%c1, %c0_94, %c0_95] : memref<2x64x384xbf16, #tpu.memory_space<vmem>>, vector<1x64x384xbf16>
    %258 = vector.shape_cast %257 : vector<1x64x384xbf16> to vector<64x384xbf16>
    %cst_96 = arith.constant dense<0.000000e+00> : vector<32x384xf32>
    %259 = tpu.matmul %7, %258, %cst_96 {dimension_numbers = #tpu.dot_dimension_numbers<[1], [0], [0], [1], [0, 0, 1, 1], [], []>} : vector<32x64xbf16>, vector<64x384xbf16>, vector<32x384xf32> -> vector<32x384xf32>
    %c1_97 = arith.constant 1 : index
    %c0_98 = arith.constant 0 : index
    %c0_99 = arith.constant 0 : index
    %260 = vector.load %arg7[%c1_97, %c0_98, %c0_99] : memref<2x1x384xf32, #tpu.memory_space<vmem>>, vector<1x1x384xf32>
    %261 = vector.shape_cast %260 : vector<1x1x384xf32> to vector<1x384xf32>
    %262 = vector.broadcast %261 : vector<1x384xf32> to vector<32x384xf32>
    %263 = arith.addf %259, %262 : vector<32x384xf32>
    %264 = vector.extract_strided_slice %263 {offsets = [0, 0], sizes = [32, 64], strides = [1, 1]} : vector<32x384xf32> to vector<32x64xf32>
    %265 = vector.extract_strided_slice %263 {offsets = [0, 64], sizes = [32, 64], strides = [1, 1]} : vector<32x384xf32> to vector<32x64xf32>
    %266 = vector.extract_strided_slice %263 {offsets = [0, 128], sizes = [32, 64], strides = [1, 1]} : vector<32x384xf32> to vector<32x64xf32>
    %267 = vector.extract_strided_slice %263 {offsets = [0, 192], sizes = [32, 64], strides = [1, 1]} : vector<32x384xf32> to vector<32x64xf32>
    %268 = vector.extract_strided_slice %263 {offsets = [0, 256], sizes = [32, 64], strides = [1, 1]} : vector<32x384xf32> to vector<32x64xf32>
    %269 = vector.extract_strided_slice %263 {offsets = [0, 320], sizes = [32, 64], strides = [1, 1]} : vector<32x384xf32> to vector<32x64xf32>
    %c1_100 = arith.constant 1 : index
    %c0_101 = arith.constant 0 : index
    %c0_102 = arith.constant 0 : index
    %270 = vector.load %arg8[%c1_100, %c0_101, %c0_102] : memref<2x1x64xf32, #tpu.memory_space<vmem>>, vector<1x1x64xf32>
    %271 = vector.shape_cast %270 : vector<1x1x64xf32> to vector<1x64xf32>
    %cst_103 = arith.constant dense<0.000000e+00> : vector<32xf32>
    %272 = vector.multi_reduction <add>, %256, %cst_103 [1] : vector<32x64xf32> to vector<32xf32>
    %273 = vector.shape_cast %272 : vector<32xf32> to vector<32x1xf32>
    %cst_104 = arith.constant 6.400000e+01 : f32
    %274 = vector.broadcast %cst_104 : f32 to vector<32x1xf32>
    %275 = arith.divf %273, %274 : vector<32x1xf32>
    %276 = vector.broadcast %275 : vector<32x1xf32> to vector<32x64xf32>
    %277 = arith.subf %256, %276 : vector<32x64xf32>
    %278 = arith.mulf %277, %277 : vector<32x64xf32>
    %cst_105 = arith.constant dense<0.000000e+00> : vector<32xf32>
    %279 = vector.multi_reduction <add>, %278, %cst_105 [1] : vector<32x64xf32> to vector<32xf32>
    %280 = vector.shape_cast %279 : vector<32xf32> to vector<32x1xf32>
    %cst_106 = arith.constant 6.400000e+01 : f32
    %281 = vector.broadcast %cst_106 : f32 to vector<32x1xf32>
    %282 = arith.divf %280, %281 : vector<32x1xf32>
    %cst_107 = arith.constant 9.99999974E-6 : f32
    %283 = vector.broadcast %cst_107 : f32 to vector<32x1xf32>
    %284 = arith.addf %282, %283 : vector<32x1xf32>
    %285 = math.rsqrt %284 : vector<32x1xf32>
    %286 = vector.broadcast %285 : vector<32x1xf32> to vector<32x64xf32>
    %287 = arith.mulf %277, %286 : vector<32x64xf32>
    %288 = vector.broadcast %271 : vector<1x64xf32> to vector<32x64xf32>
    %289 = arith.mulf %287, %288 : vector<32x64xf32>
    %cst_108 = arith.constant 1.000000e+00 : f32
    %290 = vector.broadcast %cst_108 : f32 to vector<32x64xf32>
    %291 = arith.addf %290, %265 : vector<32x64xf32>
    %292 = arith.mulf %289, %291 : vector<32x64xf32>
    %293 = arith.addf %292, %264 : vector<32x64xf32>
    %294 = arith.truncf %293 : vector<32x64xf32> to vector<32x64xbf16>
    %c1_109 = arith.constant 1 : index
    %c0_110 = arith.constant 0 : index
    %c0_111 = arith.constant 0 : index
    %295 = vector.load %arg9[%c1_109, %c0_110, %c0_111] : memref<2x64x320xbf16, #tpu.memory_space<vmem>>, vector<1x64x320xbf16>
    %296 = vector.shape_cast %295 : vector<1x64x320xbf16> to vector<64x320xbf16>
    %cst_112 = arith.constant dense<0.000000e+00> : vector<32x320xf32>
    %297 = tpu.matmul %294, %296, %cst_112 {dimension_numbers = #tpu.dot_dimension_numbers<[1], [0], [0], [1], [0, 0, 1, 1], [], []>} : vector<32x64xbf16>, vector<64x320xbf16>, vector<32x320xf32> -> vector<32x320xf32>
    %298 = vector.extract_strided_slice %297 {offsets = [0, 0], sizes = [32, 64], strides = [1, 1]} : vector<32x320xf32> to vector<32x64xf32>
    %299 = arith.mulf %298, %8 : vector<32x64xf32>
    %300 = vector.extract_strided_slice %297 {offsets = [0, 64], sizes = [32, 64], strides = [1, 1]} : vector<32x320xf32> to vector<32x64xf32>
    %301 = arith.mulf %300, %9 : vector<32x64xf32>
    %302 = arith.addf %299, %301 : vector<32x64xf32>
    %303 = arith.truncf %302 : vector<32x64xf32> to vector<32x64xbf16>
    %304 = vector.extract_strided_slice %297 {offsets = [0, 128], sizes = [32, 64], strides = [1, 1]} : vector<32x320xf32> to vector<32x64xf32>
    %305 = arith.mulf %304, %8 : vector<32x64xf32>
    %306 = vector.extract_strided_slice %297 {offsets = [0, 192], sizes = [32, 64], strides = [1, 1]} : vector<32x320xf32> to vector<32x64xf32>
    %307 = arith.mulf %306, %9 : vector<32x64xf32>
    %308 = arith.addf %305, %307 : vector<32x64xf32>
    %309 = arith.truncf %308 : vector<32x64xf32> to vector<32x64xbf16>
    %310 = vector.extract_strided_slice %297 {offsets = [0, 256], sizes = [32, 64], strides = [1, 1]} : vector<32x320xf32> to vector<32x64xf32>
    %311 = arith.truncf %310 : vector<32x64xf32> to vector<32x64xbf16>
    %312 = vector.extract_strided_slice %303 {offsets = [0, 0], sizes = [16, 16], strides = [1, 1]} : vector<32x64xbf16> to vector<16x16xbf16>
    %313 = vector.extract_strided_slice %309 {offsets = [0, 0], sizes = [16, 16], strides = [1, 1]} : vector<32x64xbf16> to vector<16x16xbf16>
    %314 = vector.extract_strided_slice %311 {offsets = [0, 0], sizes = [16, 16], strides = [1, 1]} : vector<32x64xbf16> to vector<16x16xbf16>
    %cst_113 = arith.constant dense<0.000000e+00> : vector<16x16xf32>
    %315 = tpu.matmul %312, %313, %cst_113 {dimension_numbers = #tpu.dot_dimension_numbers<[1], [1], [0], [0], [0, 0, 1, 0], [], []>} : vector<16x16xbf16>, vector<16x16xbf16>, vector<16x16xf32> -> vector<16x16xf32>
    %cst_114 = arith.constant dense<0xFF800000> : vector<16xf32>
    %316 = vector.multi_reduction <maximumf>, %315, %cst_114 [1] : vector<16x16xf32> to vector<16xf32>
    %317 = vector.shape_cast %316 : vector<16xf32> to vector<16x1xf32>
    %318 = vector.broadcast %317 : vector<16x1xf32> to vector<16x16xf32>
    %319 = arith.subf %315, %318 : vector<16x16xf32>
    %320 = math.exp %319 : vector<16x16xf32>
    %cst_115 = arith.constant dense<0.000000e+00> : vector<16xf32>
    %321 = vector.multi_reduction <add>, %320, %cst_115 [1] : vector<16x16xf32> to vector<16xf32>
    %322 = vector.shape_cast %321 : vector<16xf32> to vector<16x1xf32>
    %323 = tpu.reciprocal %322 {approx = true} : vector<16x1xf32> -> vector<16x1xf32>
    %324 = vector.broadcast %323 : vector<16x1xf32> to vector<16x16xf32>
    %325 = arith.mulf %320, %324 : vector<16x16xf32>
    %326 = arith.truncf %325 : vector<16x16xf32> to vector<16x16xbf16>
    %cst_116 = arith.constant dense<0.000000e+00> : vector<16x16xf32>
    %327 = tpu.matmul %326, %314, %cst_116 {dimension_numbers = #tpu.dot_dimension_numbers<[1], [0], [0], [1], [0, 0, 1, 1], [], []>} : vector<16x16xbf16>, vector<16x16xbf16>, vector<16x16xf32> -> vector<16x16xf32>
    %328 = vector.extract_strided_slice %303 {offsets = [0, 16], sizes = [16, 16], strides = [1, 1]} : vector<32x64xbf16> to vector<16x16xbf16>
    %329 = vector.extract_strided_slice %309 {offsets = [0, 16], sizes = [16, 16], strides = [1, 1]} : vector<32x64xbf16> to vector<16x16xbf16>
    %330 = vector.extract_strided_slice %311 {offsets = [0, 16], sizes = [16, 16], strides = [1, 1]} : vector<32x64xbf16> to vector<16x16xbf16>
    %cst_117 = arith.constant dense<0.000000e+00> : vector<16x16xf32>
    %331 = tpu.matmul %328, %329, %cst_117 {dimension_numbers = #tpu.dot_dimension_numbers<[1], [1], [0], [0], [0, 0, 1, 0], [], []>} : vector<16x16xbf16>, vector<16x16xbf16>, vector<16x16xf32> -> vector<16x16xf32>
    %cst_118 = arith.constant dense<0xFF800000> : vector<16xf32>
    %332 = vector.multi_reduction <maximumf>, %331, %cst_118 [1] : vector<16x16xf32> to vector<16xf32>
    %333 = vector.shape_cast %332 : vector<16xf32> to vector<16x1xf32>
    %334 = vector.broadcast %333 : vector<16x1xf32> to vector<16x16xf32>
    %335 = arith.subf %331, %334 : vector<16x16xf32>
    %336 = math.exp %335 : vector<16x16xf32>
    %cst_119 = arith.constant dense<0.000000e+00> : vector<16xf32>
    %337 = vector.multi_reduction <add>, %336, %cst_119 [1] : vector<16x16xf32> to vector<16xf32>
    %338 = vector.shape_cast %337 : vector<16xf32> to vector<16x1xf32>
    %339 = tpu.reciprocal %338 {approx = true} : vector<16x1xf32> -> vector<16x1xf32>
    %340 = vector.broadcast %339 : vector<16x1xf32> to vector<16x16xf32>
    %341 = arith.mulf %336, %340 : vector<16x16xf32>
    %342 = arith.truncf %341 : vector<16x16xf32> to vector<16x16xbf16>
    %cst_120 = arith.constant dense<0.000000e+00> : vector<16x16xf32>
    %343 = tpu.matmul %342, %330, %cst_120 {dimension_numbers = #tpu.dot_dimension_numbers<[1], [0], [0], [1], [0, 0, 1, 1], [], []>} : vector<16x16xbf16>, vector<16x16xbf16>, vector<16x16xf32> -> vector<16x16xf32>
    %344 = vector.extract_strided_slice %303 {offsets = [0, 32], sizes = [16, 16], strides = [1, 1]} : vector<32x64xbf16> to vector<16x16xbf16>
    %345 = vector.extract_strided_slice %309 {offsets = [0, 32], sizes = [16, 16], strides = [1, 1]} : vector<32x64xbf16> to vector<16x16xbf16>
    %346 = vector.extract_strided_slice %311 {offsets = [0, 32], sizes = [16, 16], strides = [1, 1]} : vector<32x64xbf16> to vector<16x16xbf16>
    %cst_121 = arith.constant dense<0.000000e+00> : vector<16x16xf32>
    %347 = tpu.matmul %344, %345, %cst_121 {dimension_numbers = #tpu.dot_dimension_numbers<[1], [1], [0], [0], [0, 0, 1, 0], [], []>} : vector<16x16xbf16>, vector<16x16xbf16>, vector<16x16xf32> -> vector<16x16xf32>
    %cst_122 = arith.constant dense<0xFF800000> : vector<16xf32>
    %348 = vector.multi_reduction <maximumf>, %347, %cst_122 [1] : vector<16x16xf32> to vector<16xf32>
    %349 = vector.shape_cast %348 : vector<16xf32> to vector<16x1xf32>
    %350 = vector.broadcast %349 : vector<16x1xf32> to vector<16x16xf32>
    %351 = arith.subf %347, %350 : vector<16x16xf32>
    %352 = math.exp %351 : vector<16x16xf32>
    %cst_123 = arith.constant dense<0.000000e+00> : vector<16xf32>
    %353 = vector.multi_reduction <add>, %352, %cst_123 [1] : vector<16x16xf32> to vector<16xf32>
    %354 = vector.shape_cast %353 : vector<16xf32> to vector<16x1xf32>
    %355 = tpu.reciprocal %354 {approx = true} : vector<16x1xf32> -> vector<16x1xf32>
    %356 = vector.broadcast %355 : vector<16x1xf32> to vector<16x16xf32>
    %357 = arith.mulf %352, %356 : vector<16x16xf32>
    %358 = arith.truncf %357 : vector<16x16xf32> to vector<16x16xbf16>
    %cst_124 = arith.constant dense<0.000000e+00> : vector<16x16xf32>
    %359 = tpu.matmul %358, %346, %cst_124 {dimension_numbers = #tpu.dot_dimension_numbers<[1], [0], [0], [1], [0, 0, 1, 1], [], []>} : vector<16x16xbf16>, vector<16x16xbf16>, vector<16x16xf32> -> vector<16x16xf32>
    %360 = vector.extract_strided_slice %303 {offsets = [0, 48], sizes = [16, 16], strides = [1, 1]} : vector<32x64xbf16> to vector<16x16xbf16>
    %361 = vector.extract_strided_slice %309 {offsets = [0, 48], sizes = [16, 16], strides = [1, 1]} : vector<32x64xbf16> to vector<16x16xbf16>
    %362 = vector.extract_strided_slice %311 {offsets = [0, 48], sizes = [16, 16], strides = [1, 1]} : vector<32x64xbf16> to vector<16x16xbf16>
    %cst_125 = arith.constant dense<0.000000e+00> : vector<16x16xf32>
    %363 = tpu.matmul %360, %361, %cst_125 {dimension_numbers = #tpu.dot_dimension_numbers<[1], [1], [0], [0], [0, 0, 1, 0], [], []>} : vector<16x16xbf16>, vector<16x16xbf16>, vector<16x16xf32> -> vector<16x16xf32>
    %cst_126 = arith.constant dense<0xFF800000> : vector<16xf32>
    %364 = vector.multi_reduction <maximumf>, %363, %cst_126 [1] : vector<16x16xf32> to vector<16xf32>
    %365 = vector.shape_cast %364 : vector<16xf32> to vector<16x1xf32>
    %366 = vector.broadcast %365 : vector<16x1xf32> to vector<16x16xf32>
    %367 = arith.subf %363, %366 : vector<16x16xf32>
    %368 = math.exp %367 : vector<16x16xf32>
    %cst_127 = arith.constant dense<0.000000e+00> : vector<16xf32>
    %369 = vector.multi_reduction <add>, %368, %cst_127 [1] : vector<16x16xf32> to vector<16xf32>
    %370 = vector.shape_cast %369 : vector<16xf32> to vector<16x1xf32>
    %371 = tpu.reciprocal %370 {approx = true} : vector<16x1xf32> -> vector<16x1xf32>
    %372 = vector.broadcast %371 : vector<16x1xf32> to vector<16x16xf32>
    %373 = arith.mulf %368, %372 : vector<16x16xf32>
    %374 = arith.truncf %373 : vector<16x16xf32> to vector<16x16xbf16>
    %cst_128 = arith.constant dense<0.000000e+00> : vector<16x16xf32>
    %375 = tpu.matmul %374, %362, %cst_128 {dimension_numbers = #tpu.dot_dimension_numbers<[1], [0], [0], [1], [0, 0, 1, 1], [], []>} : vector<16x16xbf16>, vector<16x16xbf16>, vector<16x16xf32> -> vector<16x16xf32>
    %376 = tpu.concatenate %327, %343, %359, %375 in 1 : vector<16x16xf32>, vector<16x16xf32>, vector<16x16xf32>, vector<16x16xf32> -> vector<16x64xf32>
    %377 = vector.extract_strided_slice %303 {offsets = [16, 0], sizes = [16, 16], strides = [1, 1]} : vector<32x64xbf16> to vector<16x16xbf16>
    %378 = vector.extract_strided_slice %309 {offsets = [16, 0], sizes = [16, 16], strides = [1, 1]} : vector<32x64xbf16> to vector<16x16xbf16>
    %379 = vector.extract_strided_slice %311 {offsets = [16, 0], sizes = [16, 16], strides = [1, 1]} : vector<32x64xbf16> to vector<16x16xbf16>
    %cst_129 = arith.constant dense<0.000000e+00> : vector<16x16xf32>
    %380 = tpu.matmul %377, %378, %cst_129 {dimension_numbers = #tpu.dot_dimension_numbers<[1], [1], [0], [0], [0, 0, 1, 0], [], []>} : vector<16x16xbf16>, vector<16x16xbf16>, vector<16x16xf32> -> vector<16x16xf32>
    %cst_130 = arith.constant dense<0xFF800000> : vector<16xf32>
    %381 = vector.multi_reduction <maximumf>, %380, %cst_130 [1] : vector<16x16xf32> to vector<16xf32>
    %382 = vector.shape_cast %381 : vector<16xf32> to vector<16x1xf32>
    %383 = vector.broadcast %382 : vector<16x1xf32> to vector<16x16xf32>
    %384 = arith.subf %380, %383 : vector<16x16xf32>
    %385 = math.exp %384 : vector<16x16xf32>
    %cst_131 = arith.constant dense<0.000000e+00> : vector<16xf32>
    %386 = vector.multi_reduction <add>, %385, %cst_131 [1] : vector<16x16xf32> to vector<16xf32>
    %387 = vector.shape_cast %386 : vector<16xf32> to vector<16x1xf32>
    %388 = tpu.reciprocal %387 {approx = true} : vector<16x1xf32> -> vector<16x1xf32>
    %389 = vector.broadcast %388 : vector<16x1xf32> to vector<16x16xf32>
    %390 = arith.mulf %385, %389 : vector<16x16xf32>
    %391 = arith.truncf %390 : vector<16x16xf32> to vector<16x16xbf16>
    %cst_132 = arith.constant dense<0.000000e+00> : vector<16x16xf32>
    %392 = tpu.matmul %391, %379, %cst_132 {dimension_numbers = #tpu.dot_dimension_numbers<[1], [0], [0], [1], [0, 0, 1, 1], [], []>} : vector<16x16xbf16>, vector<16x16xbf16>, vector<16x16xf32> -> vector<16x16xf32>
    %393 = vector.extract_strided_slice %303 {offsets = [16, 16], sizes = [16, 16], strides = [1, 1]} : vector<32x64xbf16> to vector<16x16xbf16>
    %394 = vector.extract_strided_slice %309 {offsets = [16, 16], sizes = [16, 16], strides = [1, 1]} : vector<32x64xbf16> to vector<16x16xbf16>
    %395 = vector.extract_strided_slice %311 {offsets = [16, 16], sizes = [16, 16], strides = [1, 1]} : vector<32x64xbf16> to vector<16x16xbf16>
    %cst_133 = arith.constant dense<0.000000e+00> : vector<16x16xf32>
    %396 = tpu.matmul %393, %394, %cst_133 {dimension_numbers = #tpu.dot_dimension_numbers<[1], [1], [0], [0], [0, 0, 1, 0], [], []>} : vector<16x16xbf16>, vector<16x16xbf16>, vector<16x16xf32> -> vector<16x16xf32>
    %cst_134 = arith.constant dense<0xFF800000> : vector<16xf32>
    %397 = vector.multi_reduction <maximumf>, %396, %cst_134 [1] : vector<16x16xf32> to vector<16xf32>
    %398 = vector.shape_cast %397 : vector<16xf32> to vector<16x1xf32>
    %399 = vector.broadcast %398 : vector<16x1xf32> to vector<16x16xf32>
    %400 = arith.subf %396, %399 : vector<16x16xf32>
    %401 = math.exp %400 : vector<16x16xf32>
    %cst_135 = arith.constant dense<0.000000e+00> : vector<16xf32>
    %402 = vector.multi_reduction <add>, %401, %cst_135 [1] : vector<16x16xf32> to vector<16xf32>
    %403 = vector.shape_cast %402 : vector<16xf32> to vector<16x1xf32>
    %404 = tpu.reciprocal %403 {approx = true} : vector<16x1xf32> -> vector<16x1xf32>
    %405 = vector.broadcast %404 : vector<16x1xf32> to vector<16x16xf32>
    %406 = arith.mulf %401, %405 : vector<16x16xf32>
    %407 = arith.truncf %406 : vector<16x16xf32> to vector<16x16xbf16>
    %cst_136 = arith.constant dense<0.000000e+00> : vector<16x16xf32>
    %408 = tpu.matmul %407, %395, %cst_136 {dimension_numbers = #tpu.dot_dimension_numbers<[1], [0], [0], [1], [0, 0, 1, 1], [], []>} : vector<16x16xbf16>, vector<16x16xbf16>, vector<16x16xf32> -> vector<16x16xf32>
    %409 = vector.extract_strided_slice %303 {offsets = [16, 32], sizes = [16, 16], strides = [1, 1]} : vector<32x64xbf16> to vector<16x16xbf16>
    %410 = vector.extract_strided_slice %309 {offsets = [16, 32], sizes = [16, 16], strides = [1, 1]} : vector<32x64xbf16> to vector<16x16xbf16>
    %411 = vector.extract_strided_slice %311 {offsets = [16, 32], sizes = [16, 16], strides = [1, 1]} : vector<32x64xbf16> to vector<16x16xbf16>
    %cst_137 = arith.constant dense<0.000000e+00> : vector<16x16xf32>
    %412 = tpu.matmul %409, %410, %cst_137 {dimension_numbers = #tpu.dot_dimension_numbers<[1], [1], [0], [0], [0, 0, 1, 0], [], []>} : vector<16x16xbf16>, vector<16x16xbf16>, vector<16x16xf32> -> vector<16x16xf32>
    %cst_138 = arith.constant dense<0xFF800000> : vector<16xf32>
    %413 = vector.multi_reduction <maximumf>, %412, %cst_138 [1] : vector<16x16xf32> to vector<16xf32>
    %414 = vector.shape_cast %413 : vector<16xf32> to vector<16x1xf32>
    %415 = vector.broadcast %414 : vector<16x1xf32> to vector<16x16xf32>
    %416 = arith.subf %412, %415 : vector<16x16xf32>
    %417 = math.exp %416 : vector<16x16xf32>
    %cst_139 = arith.constant dense<0.000000e+00> : vector<16xf32>
    %418 = vector.multi_reduction <add>, %417, %cst_139 [1] : vector<16x16xf32> to vector<16xf32>
    %419 = vector.shape_cast %418 : vector<16xf32> to vector<16x1xf32>
    %420 = tpu.reciprocal %419 {approx = true} : vector<16x1xf32> -> vector<16x1xf32>
    %421 = vector.broadcast %420 : vector<16x1xf32> to vector<16x16xf32>
    %422 = arith.mulf %417, %421 : vector<16x16xf32>
    %423 = arith.truncf %422 : vector<16x16xf32> to vector<16x16xbf16>
    %cst_140 = arith.constant dense<0.000000e+00> : vector<16x16xf32>
    %424 = tpu.matmul %423, %411, %cst_140 {dimension_numbers = #tpu.dot_dimension_numbers<[1], [0], [0], [1], [0, 0, 1, 1], [], []>} : vector<16x16xbf16>, vector<16x16xbf16>, vector<16x16xf32> -> vector<16x16xf32>
    %425 = vector.extract_strided_slice %303 {offsets = [16, 48], sizes = [16, 16], strides = [1, 1]} : vector<32x64xbf16> to vector<16x16xbf16>
    %426 = vector.extract_strided_slice %309 {offsets = [16, 48], sizes = [16, 16], strides = [1, 1]} : vector<32x64xbf16> to vector<16x16xbf16>
    %427 = vector.extract_strided_slice %311 {offsets = [16, 48], sizes = [16, 16], strides = [1, 1]} : vector<32x64xbf16> to vector<16x16xbf16>
    %cst_141 = arith.constant dense<0.000000e+00> : vector<16x16xf32>
    %428 = tpu.matmul %425, %426, %cst_141 {dimension_numbers = #tpu.dot_dimension_numbers<[1], [1], [0], [0], [0, 0, 1, 0], [], []>} : vector<16x16xbf16>, vector<16x16xbf16>, vector<16x16xf32> -> vector<16x16xf32>
    %cst_142 = arith.constant dense<0xFF800000> : vector<16xf32>
    %429 = vector.multi_reduction <maximumf>, %428, %cst_142 [1] : vector<16x16xf32> to vector<16xf32>
    %430 = vector.shape_cast %429 : vector<16xf32> to vector<16x1xf32>
    %431 = vector.broadcast %430 : vector<16x1xf32> to vector<16x16xf32>
    %432 = arith.subf %428, %431 : vector<16x16xf32>
    %433 = math.exp %432 : vector<16x16xf32>
    %cst_143 = arith.constant dense<0.000000e+00> : vector<16xf32>
    %434 = vector.multi_reduction <add>, %433, %cst_143 [1] : vector<16x16xf32> to vector<16xf32>
    %435 = vector.shape_cast %434 : vector<16xf32> to vector<16x1xf32>
    %436 = tpu.reciprocal %435 {approx = true} : vector<16x1xf32> -> vector<16x1xf32>
    %437 = vector.broadcast %436 : vector<16x1xf32> to vector<16x16xf32>
    %438 = arith.mulf %433, %437 : vector<16x16xf32>
    %439 = arith.truncf %438 : vector<16x16xf32> to vector<16x16xbf16>
    %cst_144 = arith.constant dense<0.000000e+00> : vector<16x16xf32>
    %440 = tpu.matmul %439, %427, %cst_144 {dimension_numbers = #tpu.dot_dimension_numbers<[1], [0], [0], [1], [0, 0, 1, 1], [], []>} : vector<16x16xbf16>, vector<16x16xbf16>, vector<16x16xf32> -> vector<16x16xf32>
    %441 = tpu.concatenate %392, %408, %424, %440 in 1 : vector<16x16xf32>, vector<16x16xf32>, vector<16x16xf32>, vector<16x16xf32> -> vector<16x64xf32>
    %442 = tpu.concatenate %376, %441 in 0 : vector<16x64xf32>, vector<16x64xf32> -> vector<32x64xf32>
    %443 = arith.truncf %442 : vector<32x64xf32> to vector<32x64xbf16>
    %c1_145 = arith.constant 1 : index
    %c0_146 = arith.constant 0 : index
    %c0_147 = arith.constant 0 : index
    %444 = vector.load %arg10[%c1_145, %c0_146, %c0_147] : memref<2x64x64xbf16, #tpu.memory_space<vmem>>, vector<1x64x64xbf16>
    %445 = vector.shape_cast %444 : vector<1x64x64xbf16> to vector<64x64xbf16>
    %cst_148 = arith.constant dense<0.000000e+00> : vector<32x64xf32>
    %446 = tpu.matmul %443, %445, %cst_148 {dimension_numbers = #tpu.dot_dimension_numbers<[1], [0], [0], [1], [0, 0, 1, 1], [], []>} : vector<32x64xbf16>, vector<64x64xbf16>, vector<32x64xf32> -> vector<32x64xf32>
    %447 = arith.mulf %266, %446 : vector<32x64xf32>
    %448 = arith.addf %256, %447 : vector<32x64xf32>
    %c1_149 = arith.constant 1 : index
    %c0_150 = arith.constant 0 : index
    %c0_151 = arith.constant 0 : index
    %449 = vector.load %arg11[%c1_149, %c0_150, %c0_151] : memref<2x1x64xf32, #tpu.memory_space<vmem>>, vector<1x1x64xf32>
    %450 = vector.shape_cast %449 : vector<1x1x64xf32> to vector<1x64xf32>
    %cst_152 = arith.constant dense<0.000000e+00> : vector<32xf32>
    %451 = vector.multi_reduction <add>, %448, %cst_152 [1] : vector<32x64xf32> to vector<32xf32>
    %452 = vector.shape_cast %451 : vector<32xf32> to vector<32x1xf32>
    %cst_153 = arith.constant 6.400000e+01 : f32
    %453 = vector.broadcast %cst_153 : f32 to vector<32x1xf32>
    %454 = arith.divf %452, %453 : vector<32x1xf32>
    %455 = vector.broadcast %454 : vector<32x1xf32> to vector<32x64xf32>
    %456 = arith.subf %448, %455 : vector<32x64xf32>
    %457 = arith.mulf %456, %456 : vector<32x64xf32>
    %cst_154 = arith.constant dense<0.000000e+00> : vector<32xf32>
    %458 = vector.multi_reduction <add>, %457, %cst_154 [1] : vector<32x64xf32> to vector<32xf32>
    %459 = vector.shape_cast %458 : vector<32xf32> to vector<32x1xf32>
    %cst_155 = arith.constant 6.400000e+01 : f32
    %460 = vector.broadcast %cst_155 : f32 to vector<32x1xf32>
    %461 = arith.divf %459, %460 : vector<32x1xf32>
    %cst_156 = arith.constant 9.99999974E-6 : f32
    %462 = vector.broadcast %cst_156 : f32 to vector<32x1xf32>
    %463 = arith.addf %461, %462 : vector<32x1xf32>
    %464 = math.rsqrt %463 : vector<32x1xf32>
    %465 = vector.broadcast %464 : vector<32x1xf32> to vector<32x64xf32>
    %466 = arith.mulf %456, %465 : vector<32x64xf32>
    %467 = vector.broadcast %450 : vector<1x64xf32> to vector<32x64xf32>
    %468 = arith.mulf %466, %467 : vector<32x64xf32>
    %cst_157 = arith.constant 1.000000e+00 : f32
    %469 = vector.broadcast %cst_157 : f32 to vector<32x64xf32>
    %470 = arith.addf %469, %268 : vector<32x64xf32>
    %471 = arith.mulf %468, %470 : vector<32x64xf32>
    %472 = arith.addf %471, %267 : vector<32x64xf32>
    %473 = arith.truncf %472 : vector<32x64xf32> to vector<32x64xbf16>
    %c1_158 = arith.constant 1 : index
    %c0_159 = arith.constant 0 : index
    %c0_160 = arith.constant 0 : index
    %474 = vector.load %arg12[%c1_158, %c0_159, %c0_160] : memref<2x64x256xbf16, #tpu.memory_space<vmem>>, vector<1x64x256xbf16>
    %475 = vector.shape_cast %474 : vector<1x64x256xbf16> to vector<64x256xbf16>
    %cst_161 = arith.constant dense<0.000000e+00> : vector<32x256xf32>
    %476 = tpu.matmul %473, %475, %cst_161 {dimension_numbers = #tpu.dot_dimension_numbers<[1], [0], [0], [1], [0, 0, 1, 1], [], []>} : vector<32x64xbf16>, vector<64x256xbf16>, vector<32x256xf32> -> vector<32x256xf32>
    %c1_162 = arith.constant 1 : index
    %c0_163 = arith.constant 0 : index
    %c0_164 = arith.constant 0 : index
    %477 = vector.load %arg13[%c1_162, %c0_163, %c0_164] : memref<2x1x256xf32, #tpu.memory_space<vmem>>, vector<1x1x256xf32>
    %478 = vector.shape_cast %477 : vector<1x1x256xf32> to vector<1x256xf32>
    %479 = vector.broadcast %478 : vector<1x256xf32> to vector<32x256xf32>
    %480 = arith.addf %476, %479 : vector<32x256xf32>
    %cst_165 = arith.constant 5.000000e-01 : f32
    %481 = vector.broadcast %cst_165 : f32 to vector<32x256xf32>
    %482 = arith.mulf %481, %480 : vector<32x256xf32>
    %cst_166 = arith.constant 4.471500e-02 : f32
    %483 = vector.broadcast %cst_166 : f32 to vector<32x256xf32>
    %484 = arith.mulf %483, %480 : vector<32x256xf32>
    %485 = arith.mulf %484, %480 : vector<32x256xf32>
    %486 = arith.mulf %485, %480 : vector<32x256xf32>
    %487 = arith.addf %480, %486 : vector<32x256xf32>
    %cst_167 = arith.constant 0.797884583 : f32
    %488 = vector.broadcast %cst_167 : f32 to vector<32x256xf32>
    %489 = arith.mulf %488, %487 : vector<32x256xf32>
    %490 = math.tanh %489 : vector<32x256xf32>
    %cst_168 = arith.constant 1.000000e+00 : f32
    %491 = vector.broadcast %cst_168 : f32 to vector<32x256xf32>
    %492 = arith.addf %491, %490 : vector<32x256xf32>
    %493 = arith.mulf %482, %492 : vector<32x256xf32>
    %494 = arith.truncf %493 : vector<32x256xf32> to vector<32x256xbf16>
    %c1_169 = arith.constant 1 : index
    %c0_170 = arith.constant 0 : index
    %c0_171 = arith.constant 0 : index
    %495 = vector.load %arg14[%c1_169, %c0_170, %c0_171] : memref<2x256x64xbf16, #tpu.memory_space<vmem>>, vector<1x256x64xbf16>
    %496 = vector.shape_cast %495 : vector<1x256x64xbf16> to vector<256x64xbf16>
    %cst_172 = arith.constant dense<0.000000e+00> : vector<32x64xf32>
    %497 = tpu.matmul %494, %496, %cst_172 {dimension_numbers = #tpu.dot_dimension_numbers<[1], [0], [0], [1], [0, 0, 1, 1], [], []>} : vector<32x256xbf16>, vector<256x64xbf16>, vector<32x64xf32> -> vector<32x64xf32>
    %c1_173 = arith.constant 1 : index
    %c0_174 = arith.constant 0 : index
    %c0_175 = arith.constant 0 : index
    %498 = vector.load %arg15[%c1_173, %c0_174, %c0_175] : memref<2x1x64xf32, #tpu.memory_space<vmem>>, vector<1x1x64xf32>
    %499 = vector.shape_cast %498 : vector<1x1x64xf32> to vector<1x64xf32>
    %500 = vector.broadcast %499 : vector<1x64xf32> to vector<32x64xf32>
    %501 = arith.addf %497, %500 : vector<32x64xf32>
    %502 = arith.mulf %269, %501 : vector<32x64xf32>
    %503 = arith.addf %448, %502 : vector<32x64xf32>
    %c0_176 = arith.constant 0 : index
    %c0_177 = arith.constant 0 : index
    %504 = vector.load %arg17[%c0_176, %c0_177] : memref<64x128xbf16, #tpu.memory_space<vmem>>, vector<64x128xbf16>
    %cst_178 = arith.constant dense<0.000000e+00> : vector<32x128xf32>
    %505 = tpu.matmul %7, %504, %cst_178 {dimension_numbers = #tpu.dot_dimension_numbers<[1], [0], [0], [1], [0, 0, 1, 1], [], []>} : vector<32x64xbf16>, vector<64x128xbf16>, vector<32x128xf32> -> vector<32x128xf32>
    %c0_179 = arith.constant 0 : index
    %c0_180 = arith.constant 0 : index
    %506 = vector.load %arg18[%c0_179, %c0_180] : memref<1x128xf32, #tpu.memory_space<vmem>>, vector<1x128xf32>
    %507 = vector.broadcast %506 : vector<1x128xf32> to vector<32x128xf32>
    %508 = arith.addf %505, %507 : vector<32x128xf32>
    %509 = vector.extract_strided_slice %508 {offsets = [0, 0], sizes = [32, 64], strides = [1, 1]} : vector<32x128xf32> to vector<32x64xf32>
    %510 = vector.extract_strided_slice %508 {offsets = [0, 64], sizes = [32, 64], strides = [1, 1]} : vector<32x128xf32> to vector<32x64xf32>
    %c0_181 = arith.constant 0 : index
    %c0_182 = arith.constant 0 : index
    %511 = vector.load %arg16[%c0_181, %c0_182] : memref<1x64xf32, #tpu.memory_space<vmem>>, vector<1x64xf32>
    %cst_183 = arith.constant dense<0.000000e+00> : vector<32xf32>
    %512 = vector.multi_reduction <add>, %503, %cst_183 [1] : vector<32x64xf32> to vector<32xf32>
    %513 = vector.shape_cast %512 : vector<32xf32> to vector<32x1xf32>
    %cst_184 = arith.constant 6.400000e+01 : f32
    %514 = vector.broadcast %cst_184 : f32 to vector<32x1xf32>
    %515 = arith.divf %513, %514 : vector<32x1xf32>
    %516 = vector.broadcast %515 : vector<32x1xf32> to vector<32x64xf32>
    %517 = arith.subf %503, %516 : vector<32x64xf32>
    %518 = arith.mulf %517, %517 : vector<32x64xf32>
    %cst_185 = arith.constant dense<0.000000e+00> : vector<32xf32>
    %519 = vector.multi_reduction <add>, %518, %cst_185 [1] : vector<32x64xf32> to vector<32xf32>
    %520 = vector.shape_cast %519 : vector<32xf32> to vector<32x1xf32>
    %cst_186 = arith.constant 6.400000e+01 : f32
    %521 = vector.broadcast %cst_186 : f32 to vector<32x1xf32>
    %522 = arith.divf %520, %521 : vector<32x1xf32>
    %cst_187 = arith.constant 9.99999974E-6 : f32
    %523 = vector.broadcast %cst_187 : f32 to vector<32x1xf32>
    %524 = arith.addf %522, %523 : vector<32x1xf32>
    %525 = math.rsqrt %524 : vector<32x1xf32>
    %526 = vector.broadcast %525 : vector<32x1xf32> to vector<32x64xf32>
    %527 = arith.mulf %517, %526 : vector<32x64xf32>
    %528 = vector.broadcast %511 : vector<1x64xf32> to vector<32x64xf32>
    %529 = arith.mulf %527, %528 : vector<32x64xf32>
    %cst_188 = arith.constant 1.000000e+00 : f32
    %530 = vector.broadcast %cst_188 : f32 to vector<32x64xf32>
    %531 = arith.addf %530, %510 : vector<32x64xf32>
    %532 = arith.mulf %529, %531 : vector<32x64xf32>
    %533 = arith.addf %532, %509 : vector<32x64xf32>
    %534 = arith.truncf %533 : vector<32x64xf32> to vector<32x64xbf16>
    %c0_189 = arith.constant 0 : index
    %c0_190 = arith.constant 0 : index
    %535 = vector.load %arg19[%c0_189, %c0_190] : memref<64x128xbf16, #tpu.memory_space<vmem>>, vector<64x128xbf16>
    %cst_191 = arith.constant dense<0.000000e+00> : vector<32x128xf32>
    %536 = tpu.matmul %534, %535, %cst_191 {dimension_numbers = #tpu.dot_dimension_numbers<[1], [0], [0], [1], [0, 0, 1, 1], [], []>} : vector<32x64xbf16>, vector<64x128xbf16>, vector<32x128xf32> -> vector<32x128xf32>
    %c0_192 = arith.constant 0 : index
    %c0_193 = arith.constant 0 : index
    %537 = vector.load %arg20[%c0_192, %c0_193] : memref<1x128xf32, #tpu.memory_space<vmem>>, vector<1x128xf32>
    %538 = vector.broadcast %537 : vector<1x128xf32> to vector<32x128xf32>
    %539 = arith.addf %536, %538 : vector<32x128xf32>
    %c0_194 = arith.constant 0 : index
    %c0_195 = arith.constant 0 : index
    %540 = vector.load %arg21[%c0_194, %c0_195] : memref<32x128xf32, #tpu.memory_space<vmem>>, vector<32x128xf32>
    tpu.vector_store %arg21[%c0_194, %c0_195], %539 {strides = array<i32>} : memref<32x128xf32, #tpu.memory_space<vmem>>, vector<32x128xf32>,
    return
  }
}

</mosaic_0001>

<bundles_post_ra>
// kernel: dit_forward.1
= control target key start
LH: loop header
LB: loop body
LE: loop exit
PB: predicated region body
PF: predicated region fallthrough
CT: control target
= control target key end

     0   :  { %s8251_s0 = inlined_call_operand.vmem [shape: f32[32,8], index: 0, kind: input, shape index: {}]   ;;  %s8252_s1 = inlined_call_operand.hbm [shape: f32[8,64], index: 1, kind: input, shape index: {}]   ;;  %s8253_s2 = inlined_call_operand.hbm [shape: f32[1,64], index: 2, kind: input, shape index: {}]   ;;  %s8254_s3 = inlined_call_operand.vmem [shape: f32[32,64], index: 3, kind: input, shape index: {}]   ;;  %s8255_s4 = inlined_call_operand.hbm [shape: f32[32,64], index: 4, kind: input, shape index: {}]   ;;  %s8256_s5 = inlined_call_operand.hbm [shape: f32[32,64], index: 5, kind: input, shape index: {}]   ;;  %s8257_s6 = inlined_call_operand.vmem [shape: bf16[2,64,384], index: 6, kind: input, shape index: {}]   ;;  %s8258_s7 = inlined_call_operand.hbm [shape: f32[2,1,384], index: 7, kind: input, shape index: {}]   ;;  %s8259_s8 = inlined_call_operand.vmem [shape: f32[2,1,64], index: 8, kind: input, shape index: {}]   ;;  %s8260_s9 = inlined_call_operand.vmem [shape: bf16[2,64,320], index: 9, kind: input, shape index: {}]   ;;  %s8261_s10 = inlined_call_operand.vmem [shape: bf16[2,64,64], index: 10, kind: input, shape index: {}]   ;;  %s8262_s11 = inlined_call_operand.hbm [shape: f32[2,1,64], index: 11, kind: input, shape index: {}]   ;;  %s8263_s12 = inlined_call_operand.vmem [shape: bf16[2,64,256], index: 12, kind: input, shape index: {}]   ;;  %s8264_s13 = inlined_call_operand.hbm [shape: f32[2,1,256], index: 13, kind: input, shape index: {}]   ;;  %s8265_s14 = inlined_call_operand.vmem [shape: bf16[2,256,64], index: 14, kind: input, shape index: {}]   ;;  %s8266_s15 = inlined_call_operand.hbm [shape: f32[2,1,64], index: 15, kind: input, shape index: {}]   ;;  %s8267_s16 = inlined_call_operand.hbm [shape: f32[1,64], index: 16, kind: input, shape index: {}]   ;;  %s8268_s17 = inlined_call_operand.hbm [shape: bf16[64,128], index: 17, kind: input, shape index: {}]   ;;  %s8269_s18 = inlined_call_operand.hbm [shape: f32[1,128], index: 18, kind: input, shape index: {}]   ;;  %s8270_s19 = inlined_call_operand.hbm [shape: bf16[64,128], index: 19, kind: input, shape index: {}]   ;;  %s8271_s20 = inlined_call_operand.hbm [shape: f32[1,128], index: 20, kind: input, shape index: {}]   ;;  %s8272_s21 = inlined_call_operand.vmem [shape: f32[32,128], index: 21, kind: output, shape index: {}]  }
   0x1   :  { %8282 = sst [smem:[#allocation29_spill]] %s8251_s0 }
   0x2   :  { %8283 = sst [smem:[#allocation30_spill]] %s8252_s1 }
   0x3   :  { %8284 = sst [smem:[#allocation31_spill]] %s8253_s2 }
   0x4   :  { %8285 = sst [smem:[#allocation32_spill]] %s8254_s3 }
   0x5   :  { %8286 = sst [smem:[#allocation33_spill]] %s8255_s4 }
   0x6   :  { %8287 = sst [smem:[#allocation34_spill]] %s8256_s5 }
   0x7   :  { %8288 = sst [smem:[#allocation35_spill]] %s8272_s21 }
   0x8   :  { %26 = vsyncpa [#allocation3], 0 }
   0x9   :  { %27 = vsyncpa [#allocation5], 0 }
   0xa   :  { %28 = vsyncpa [#allocation8], 0 }
   0xb   :  { %29 = vsyncpa [#allocation11], 0 }
   0xc   :  { %30 = vsyncpa [#allocation14], 0 }
   0xd   :  { %31 = vsyncpa [#allocation17], 0 }
   0xe   :  { %32 = vsyncpa [#allocation20], 0  ;;  %s6495_s2 = smov [#allocation4]   ;;  %s8289_s3 = sld [smem:[#allocation31_spill]] }
   0xf   :  { %s51_s25 = sshll.u32 %s6495_s2, 4  ;;  %s52_s25 = int_to_ptr.vmem [resolvable:$true] %s51_s25 }
  0x14   :  { %s6195_s28 = scalar_lea.hbm %s8289_s3, 16 }
  0x15   :  { %p6196_p0 = scmp.ne.s32.totalorder %s8289_s3, %s6195_s28  ;;  %p6199_p1 = scmp.lt.u32.totalorder %s6195_s28, %s8289_s3 }
  0x17   :  { %p6201_p2 = pnand %p6199_p1, %p6196_p0 }
  0x19   :  { %6204 = shalt.err (!%p6201_p2)
}
  0x1a   :  { %s6205_s5 = scalar_lea.vmem %s52_s25, 16  ;;  %s6209_s22 = scalar_lea.vmem %s52_s25, 32 }
  0x1b   :  { %p6206_p3 = scmp.ne.s32.totalorder %s52_s25, %s6205_s5  ;;  %p6210_p4 = scmp.lt.s32.totalorder %s52_s25, %s52_s25 }
  0x1c   :  { %p6211_p5 = scmp.lt.s32.totalorder %s6209_s22, %s6205_s5 }
  0x1e   :  { %p6212_p6 = por %p6211_p5, %p6210_p4 }
  0x20   :  { %p6213_p7 = pnand %p6212_p6, %p6206_p3 }
  0x22   :  { %6216 = shalt.err (!%p6213_p7)
}
  0x23   :  { %54 = dma.hbm_to_vmem [thread:$0]  %s8289_s3, 16, %s52_s25, [#allocation5]  }
  0x24   :  { %s6496_s24 = smov [#allocation7]   ;;  %s6497_s26 = smov [#allocation10]  }
  0x25   :  { %s74_s2 = sshll.u32 %s6496_s24, 4  ;;  %s106_s27 = sshll.u32 %s6497_s26, 4  ;;  %s75_s2 = int_to_ptr.vmem [resolvable:$true] %s74_s2  ;;  %s107_s27 = int_to_ptr.vmem [resolvable:$true] %s106_s27 }
  0x26   :  { %s8290_s0 = sld [smem:[#allocation34_spill]] }
  0x2c   :  { %s6217_s4 = scalar_lea.hbm %s8290_s0, 512 }
  0x2d   :  { %p6218_p8 = scmp.ne.s32.totalorder %s8290_s0, %s6217_s4  ;;  %p6221_p9 = scmp.lt.u32.totalorder %s6217_s4, %s8290_s0 }
  0x2f   :  { %p6223_p10 = pnand %p6221_p9, %p6218_p8 }
  0x31   :  { %6226 = shalt.err (!%p6223_p10)
}
  0x32   :  { %s6227_s25 = scalar_lea.vmem %s75_s2, 512  ;;  %p6232_p12 = scmp.lt.s32.totalorder %s75_s2, %s75_s2 }
  0x33   :  { %p6228_p11 = scmp.ne.s32.totalorder %s75_s2, %s6227_s25  ;;  %p6233_p13 = scmp.lt.s32.totalorder %s6227_s25, %s6227_s25 }
  0x35   :  { %p6234_p0 = por %p6233_p13, %p6232_p12 }
  0x37   :  { %p6235_p1 = pnand %p6234_p0, %p6228_p11 }
  0x39   :  { %6238 = shalt.err (!%p6235_p1)
}
  0x3a   :  { %s8280_s3 = smov 128   ;;  %s8281_s23 = smov 8  }
  0x3b   :  { %80 = dma.hbm_to_vmem [thread:$0]  %s8290_s0, 512, %s75_s2, [#allocation8], %s8280_s3, %s8280_s3, %s8281_s23  }
  0x3c   :  { %s6239_s28 = scalar_lea.hbm %s8262_s11, 32 }
  0x3d   :  { %p6240_p2 = scmp.ne.s32.totalorder %s8262_s11, %s6239_s28  ;;  %p6243_p3 = scmp.lt.u32.totalorder %s6239_s28, %s8262_s11 }
  0x3f   :  { %p6245_p4 = pnand %p6243_p3, %p6240_p2 }
  0x41   :  { %6248 = shalt.err (!%p6245_p4)
}
  0x42   :  { %s6249_s22 = scalar_lea.vmem %s107_s27, 32  ;;  %p6254_p6 = scmp.lt.s32.totalorder %s107_s27, %s107_s27 }
  0x43   :  { %p6250_p5 = scmp.ne.s32.totalorder %s107_s27, %s6249_s22  ;;  %p6255_p7 = scmp.lt.s32.totalorder %s6249_s22, %s6249_s22 }
  0x45   :  { %p6256_p8 = por %p6255_p7, %p6254_p6 }
  0x47   :  { %p6257_p9 = pnand %p6256_p8, %p6250_p5 }
  0x49   :  { %6260 = shalt.err (!%p6257_p9)
}
  0x4a   :  { %s6500_s2 = smov 16   ;;  %s6501_s0 = smov 1  }
  0x4b   :  { %112 = dma.hbm_to_vmem [thread:$0]  %s8262_s11, 32, %s107_s27, [#allocation11], %s6500_s2, %s6500_s2, %s6501_s0  }
  0x4c   :  { %s6502_s1 = smov [#allocation13]   ;;  %s6503_s26 = smov [#allocation16]  }
  0x4d   :  { %s134_s24 = sshll.u32 %s6502_s1, 4  ;;  %s156_s28 = sshll.u32 %s6503_s26, 4  ;;  %s135_s24 = int_to_ptr.vmem [resolvable:$true] %s134_s24  ;;  %s157_s28 = int_to_ptr.vmem [resolvable:$true] %s156_s28 }
  0x4e   :  { %s6261_s30 = scalar_lea.hbm %s8266_s15, 32 }
  0x4f   :  { %p6262_p10 = scmp.ne.s32.totalorder %s8266_s15, %s6261_s30  ;;  %p6265_p11 = scmp.lt.u32.totalorder %s6261_s30, %s8266_s15 }
  0x51   :  { %p6267_p12 = pnand %p6265_p11, %p6262_p10 }
  0x53   :  { %6270 = shalt.err (!%p6267_p12)
}
  0x54   :  { %s6271_s11 = scalar_lea.vmem %s135_s24, 32  ;;  %p6276_p0 = scmp.lt.s32.totalorder %s135_s24, %s135_s24 }
  0x55   :  { %p6272_p13 = scmp.ne.s32.totalorder %s135_s24, %s6271_s11  ;;  %p6277_p1 = scmp.lt.s32.totalorder %s6271_s11, %s6271_s11 }
  0x57   :  { %p6278_p2 = por %p6277_p1, %p6276_p0 }
  0x59   :  { %p6279_p3 = pnand %p6278_p2, %p6272_p13 }
  0x5b   :  { %6282 = shalt.err (!%p6279_p3)
}
  0x5c   :  { %140 = dma.hbm_to_vmem [thread:$0]  %s8266_s15, 32, %s135_s24, [#allocation14], %s6500_s2, %s6500_s2, %s6501_s0  }
  0x5d   :  { %s6283_s3 = scalar_lea.hbm %s8268_s17, 512 }
  0x5e   :  { %p6284_p4 = scmp.ne.s32.totalorder %s8268_s17, %s6283_s3  ;;  %p6287_p5 = scmp.lt.u32.totalorder %s6283_s3, %s8268_s17 }
  0x60   :  { %p6289_p6 = pnand %p6287_p5, %p6284_p4 }
  0x62   :  { %6292 = shalt.err (!%p6289_p6)
}
  0x63   :  { %s6293_s30 = scalar_lea.vmem %s157_s28, 512  ;;  %p6298_p8 = scmp.lt.s32.totalorder %s157_s28, %s157_s28 }
  0x64   :  { %p6294_p7 = scmp.ne.s32.totalorder %s157_s28, %s6293_s30  ;;  %p6299_p9 = scmp.lt.s32.totalorder %s6293_s30, %s6293_s30 }
  0x66   :  { %p6300_p10 = por %p6299_p9, %p6298_p8 }
  0x68   :  { %p6301_p11 = pnand %p6300_p10, %p6294_p7 }
  0x6a   :  { %6304 = shalt.err (!%p6301_p11)
}
  0x6b   :  { %s6504_s15 = smov 64   ;;  %s6505_s0 = smov 4  }
  0x6c   :  { %162 = dma.hbm_to_vmem [thread:$0]  %s8268_s17, 512, %s157_s28, [#allocation17], %s6504_s15, %s6504_s15, %s6505_s0  }
  0x6d   :  { %s6506_s22 = smov [#allocation19]   ;;  %s6507_s27 = smov [#allocation2]  }
  0x6e   :  { %s178_s11 = sshll.u32 %s6506_s22, 4  ;;  %s41_s25 = sshll.u32 %s6507_s27, 4  ;;  %s179_s11 = int_to_ptr.vmem [resolvable:$true] %s178_s11  ;;  %s42_s25 = int_to_ptr.vmem [resolvable:$true] %s41_s25 }
  0x6f   :  { %s6305_s3 = scalar_lea.hbm %s8270_s19, 512 }
  0x70   :  { %p6306_p12 = scmp.ne.s32.totalorder %s8270_s19, %s6305_s3  ;;  %p6309_p13 = scmp.lt.u32.totalorder %s6305_s3, %s8270_s19 }
  0x72   :  { %p6311_p0 = pnand %p6309_p13, %p6306_p12 }
  0x74   :  { %6314 = shalt.err (!%p6311_p0)
}
  0x75   :  { %s6315_s17 = scalar_lea.vmem %s179_s11, 512  ;;  %p6320_p2 = scmp.lt.s32.totalorder %s179_s11, %s179_s11 }
  0x76   :  { %p6316_p1 = scmp.ne.s32.totalorder %s179_s11, %s6315_s17  ;;  %p6321_p3 = scmp.lt.s32.totalorder %s6315_s17, %s6315_s17 }
  0x78   :  { %p6322_p4 = por %p6321_p3, %p6320_p2 }
  0x7a   :  { %p6323_p5 = pnand %p6322_p4, %p6316_p1 }
  0x7c   :  { %6326 = shalt.err (!%p6323_p5)
}
  0x7d   :  { %184 = dma.hbm_to_vmem [thread:$0]  %s8270_s19, 512, %s179_s11, [#allocation20], %s6504_s15, %s6504_s15, %s6505_s0  }
  0x7e   :  { %s8291_s22 = sld [smem:[#allocation30_spill]] }
  0x84   :  { %s6327_s27 = scalar_lea.hbm %s8291_s22, 128 }
  0x85   :  { %p6328_p6 = scmp.ne.s32.totalorder %s8291_s22, %s6327_s27  ;;  %p6331_p7 = scmp.lt.u32.totalorder %s6327_s27, %s8291_s22 }
  0x87   :  { %p6333_p8 = pnand %p6331_p7, %p6328_p6 }
  0x89   :  { %6336 = shalt.err (!%p6333_p8)
}
  0x8a   :  { %s6337_s26 = scalar_lea.vmem %s42_s25, 128  ;;  %p6342_p10 = scmp.lt.s32.totalorder %s42_s25, %s42_s25 }
  0x8b   :  { %p6338_p9 = scmp.ne.s32.totalorder %s42_s25, %s6337_s26  ;;  %p6343_p11 = scmp.lt.s32.totalorder %s6337_s26, %s6337_s26 }
  0x8d   :  { %p6344_p12 = por %p6343_p11, %p6342_p10 }
  0x8f   :  { %p6345_p13 = pnand %p6344_p12, %p6338_p9 }
  0x91   :  { %6348 = shalt.err (!%p6345_p13)
}
  0x92   :  { %44 = dma.hbm_to_vmem [thread:$0]  %s8291_s22, 128, %s42_s25, [#allocation3]  }
  0x93   :  { %s6508_s11 = smov [#allocation6]   ;;  %s6509_s4 = smov [#allocation9]  }
  0x94   :  { %s62_s29 = sshll.u32 %s6508_s11, 4  ;;  %s88_s17 = sshll.u32 %s6509_s4, 4  ;;  %s63_s29 = int_to_ptr.vmem [resolvable:$true] %s62_s29  ;;  %s89_s17 = int_to_ptr.vmem [resolvable:$true] %s88_s17 }
  0x95   :  { %s8292_s24 = sld [smem:[#allocation33_spill]] }
  0x9b   :  { %s6349_s5 = scalar_lea.hbm %s8292_s24, 512 }
  0x9c   :  { %p6350_p0 = scmp.ne.s32.totalorder %s8292_s24, %s6349_s5  ;;  %p6353_p1 = scmp.lt.u32.totalorder %s6349_s5, %s8292_s24 }
  0x9e   :  { %p6355_p2 = pnand %p6353_p1, %p6350_p0 }
  0xa0   :  { %6358 = shalt.err (!%p6355_p2)
}
  0xa1   :  { %s6359_s25 = scalar_lea.vmem %s63_s29, 512  ;;  %p6364_p4 = scmp.lt.s32.totalorder %s63_s29, %s63_s29 }
  0xa2   :  { %p6360_p3 = scmp.ne.s32.totalorder %s63_s29, %s6359_s25  ;;  %p6365_p5 = scmp.lt.s32.totalorder %s6359_s25, %s6359_s25 }
  0xa4   :  { %p6366_p6 = por %p6365_p5, %p6364_p4 }
  0xa6   :  { %p6367_p7 = pnand %p6366_p6, %p6360_p3 }
  0xa8   :  { %6370 = shalt.err (!%p6367_p7)
}
  0xa9   :  { %s8293_s22 = smov 8   ;;  %s8294_s23 = smov 128  }
  0xaa   :  { %68 = dma.hbm_to_vmem [thread:$0]  %s8292_s24, 512, %s63_s29, [#allocation5], %s8294_s23, %s8294_s23, %s8293_s22  }
  0xab   :  { %s6371_s4 = scalar_lea.hbm %s8258_s7, 96 }
  0xac   :  { %p6372_p8 = scmp.ne.s32.totalorder %s8258_s7, %s6371_s4  ;;  %p6375_p9 = scmp.lt.u32.totalorder %s6371_s4, %s8258_s7 }
  0xae   :  { %p6377_p10 = pnand %p6375_p9, %p6372_p8 }
  0xb0   :  { %6380 = shalt.err (!%p6377_p10)
}
  0xb1   :  { %s6381_s21 = scalar_lea.vmem %s89_s17, 96  ;;  %p6386_p12 = scmp.lt.s32.totalorder %s89_s17, %s89_s17 }
  0xb2   :  { %p6382_p11 = scmp.ne.s32.totalorder %s89_s17, %s6381_s21  ;;  %p6387_p13 = scmp.lt.s32.totalorder %s6381_s21, %s6381_s21 }
  0xb4   :  { %p6388_p0 = por %p6387_p13, %p6386_p12 }
  0xb6   :  { %p6389_p1 = pnand %p6388_p0, %p6382_p11 }
  0xb8   :  { %6392 = shalt.err (!%p6389_p1)
}
  0xb9   :  { %s6510_s29 = smov 48   ;;  %s6511_s24 = smov 3  }
  0xba   :  { %94 = dma.hbm_to_vmem [thread:$0]  %s8258_s7, 96, %s89_s17, [#allocation8], %s6510_s29, %s6510_s29, %s6511_s24  }
  0xbb   :  { %s6512_s25 = smov [#allocation12]   ;;  %s6393_s19 = scalar_lea.hbm %s8264_s13, 64 }
  0xbc   :  { %s120_s22 = sshll.u32 %s6512_s25, 4  ;;  %p6394_p2 = scmp.ne.s32.totalorder %s8264_s13, %s6393_s19  ;;  %s121_s22 = int_to_ptr.vmem [resolvable:$true] %s120_s22 }
  0xbd   :  { %p6397_p3 = scmp.lt.u32.totalorder %s6393_s19, %s8264_s13 }
  0xbf   :  { %p6399_p4 = pnand %p6397_p3, %p6394_p2 }
  0xc1   :  { %6402 = shalt.err (!%p6399_p4)
}
  0xc2   :  { %s6403_s30 = scalar_lea.vmem %s121_s22, 64  ;;  %p6408_p6 = scmp.lt.s32.totalorder %s121_s22, %s121_s22 }
  0xc3   :  { %p6404_p5 = scmp.ne.s32.totalorder %s121_s22, %s6403_s30  ;;  %p6409_p7 = scmp.lt.s32.totalorder %s6403_s30, %s6403_s30 }
  0xc5   :  { %p6410_p8 = por %p6409_p7, %p6408_p6 }
  0xc7   :  { %p6411_p9 = pnand %p6410_p8, %p6404_p5 }
  0xc9   :  { %6414 = shalt.err (!%p6411_p9)
}
  0xca   :  { %s6513_s7 = smov 32   ;;  %s6514_s17 = smov 2  }
  0xcb   :  { %126 = dma.hbm_to_vmem [thread:$0]  %s8264_s13, 64, %s121_s22, [#allocation11], %s6513_s7, %s6513_s7, %s6514_s17  }
  0xcc   :  { %s6515_s21 = smov [#allocation15]   ;;  %s6516_s1 = smov [#allocation18]  }
  0xcd   :  { %s147_s24 = sshll.u32 %s6515_s21, 4  ;;  %s169_s3 = sshll.u32 %s6516_s1, 4  ;;  %s148_s24 = int_to_ptr.vmem [resolvable:$true] %s147_s24  ;;  %s170_s3 = int_to_ptr.vmem [resolvable:$true] %s169_s3 }
  0xce   :  { %s6415_s26 = scalar_lea.hbm %s8267_s16, 16 }
  0xcf   :  { %p6416_p10 = scmp.ne.s32.totalorder %s8267_s16, %s6415_s26  ;;  %p6419_p11 = scmp.lt.u32.totalorder %s6415_s26, %s8267_s16 }
  0xd1   :  { %p6421_p12 = pnand %p6419_p11, %p6416_p10 }
  0xd3   :  { %6424 = shalt.err (!%p6421_p12)
}
  0xd4   :  { %s6425_s13 = scalar_lea.vmem %s148_s24, 16  ;;  %s6429_s22 = scalar_lea.vmem %s148_s24, 32 }
  0xd5   :  { %p6426_p13 = scmp.ne.s32.totalorder %s148_s24, %s6425_s13  ;;  %p6430_p0 = scmp.lt.s32.totalorder %s148_s24, %s148_s24 }
  0xd6   :  { %p6431_p1 = scmp.lt.s32.totalorder %s6429_s22, %s6425_s13 }
  0xd8   :  { %p6432_p2 = por %p6431_p1, %p6430_p0 }
  0xda   :  { %p6433_p3 = pnand %p6432_p2, %p6426_p13 }
  0xdc   :  { %6436 = shalt.err (!%p6433_p3)
}
  0xdd   :  { %150 = dma.hbm_to_vmem [thread:$0]  %s8267_s16, 16, %s148_s24, [#allocation14]  }
  0xde   :  { %s6437_s27 = scalar_lea.hbm %s8269_s18, 16 }
  0xdf   :  { %p6438_p4 = scmp.ne.s32.totalorder %s8269_s18, %s6437_s27  ;;  %p6441_p5 = scmp.lt.u32.totalorder %s6437_s27, %s8269_s18 }
  0xe1   :  { %p6443_p6 = pnand %p6441_p5, %p6438_p4 }
  0xe3   :  { %6446 = shalt.err (!%p6443_p6)
}
  0xe4   :  { %s6447_s26 = scalar_lea.vmem %s170_s3, 16  ;;  %s6451_s19 = scalar_lea.vmem %s170_s3, 32 }
  0xe5   :  { %p6448_p7 = scmp.ne.s32.totalorder %s170_s3, %s6447_s26  ;;  %p6452_p8 = scmp.lt.s32.totalorder %s170_s3, %s170_s3 }
  0xe6   :  { %p6453_p9 = scmp.lt.s32.totalorder %s6451_s19, %s6447_s26 }
  0xe8   :  { %p6454_p10 = por %p6453_p9, %p6452_p8 }
  0xea   :  { %p6455_p11 = pnand %p6454_p10, %p6448_p7 }
  0xec   :  { %6458 = shalt.err (!%p6455_p11)
}
  0xed   :  { %172 = dma.hbm_to_vmem [thread:$0]  %s8269_s18, 16, %s170_s3, [#allocation17]  }
  0xee   :  { %s6517_s0 = smov [#allocation21]   ;;  %s6459_s22 = scalar_lea.hbm %s8271_s20, 16 }
  0xef   :  { %s191_s11 = sshll.u32 %s6517_s0, 4  ;;  %p6460_p12 = scmp.ne.s32.totalorder %s8271_s20, %s6459_s22  ;;  %s192_s11 = int_to_ptr.vmem [resolvable:$true] %s191_s11 }
  0xf0   :  { %p6463_p13 = scmp.lt.u32.totalorder %s6459_s22, %s8271_s20 }
  0xf2   :  { %p6465_p0 = pnand %p6463_p13, %p6460_p12 }
  0xf4   :  { %6468 = shalt.err (!%p6465_p0)
}
  0xf5   :  { %s6469_s27 = scalar_lea.vmem %s192_s11, 16  ;;  %s6473_s18 = scalar_lea.vmem %s192_s11, 32 }
  0xf6   :  { %p6470_p1 = scmp.ne.s32.totalorder %s192_s11, %s6469_s27  ;;  %p6474_p2 = scmp.lt.s32.totalorder %s192_s11, %s192_s11 }
  0xf7   :  { %p6475_p3 = scmp.lt.s32.totalorder %s6473_s18, %s6469_s27 }
  0xf9   :  { %p6476_p4 = por %p6475_p3, %p6474_p2 }
  0xfb   :  { %p6477_p5 = pnand %p6476_p4, %p6470_p1 }
  0xfd   :  { %6480 = shalt.err (!%p6477_p5)
}
  0xfe   :  { %194 = dma.hbm_to_vmem [thread:$0]  %s8271_s20, 16, %s192_s11, [#allocation20]  }
  0xff   :  { %6481 = dma.done.wait [#allocation3], 128  }
 0x100   :  { %6482 = vsyncadd [#allocation3], 4294967168 }
 0x101   :  { %6483 = dma.done.wait [#allocation5], 528  }
 0x102   :  { %6484 = vsyncadd [#allocation5], 4294966768 }
 0x103   :  { %6485 = dma.done.wait [#allocation8], 608  }
 0x104   :  { %6486 = vsyncadd [#allocation8], 4294966688 }
 0x105   :  { %6487 = dma.done.wait [#allocation11], 96  }
 0x106   :  { %6488 = vsyncadd [#allocation11], 4294967200 }
 0x107   :  { %6489 = dma.done.wait [#allocation14], 48  }
 0x108   :  { %6490 = vsyncadd [#allocation14], 4294967248 }
 0x109   :  { %6491 = dma.done.wait [#allocation17], 528  }
 0x10a   :  { %6492 = vsyncadd [#allocation17], 4294966768 }
 0x10b   :  { %6493 = dma.done.wait [#allocation20], 528  }
 0x10c   :  { %6494 = vsyncadd [#allocation20], 4294966768  ;;  %v6518_v0 = vmov 0   ;;  %vm247_vm0 = vcmask 64512   ;;  %v239_v1 = vld [vmem:[#allocation2] sm:$0xff]  ;;  %s8295_s25 = sld [smem:[#allocation29_spill]]  ;;  %v377_v56 = vlaneseq }
 0x10d   :  { %495 = vmatprep.mubr.bf16.mxu1 %v6518_v0  ;;  %5468 = vmatprep.subr.mxu0 %v239_v1  ;;  %v5853_v5 = vld [vmem:[%s8257_s6 + $0x4] ss:$12 sps:$4 sm:$0xff]   ;;  %v5855_v6 = vld [vmem:[%s8257_s6] ss:$12 sps:$4 sm:$0xff]   ;;  %v5856_v7 = vld [vmem:[%s8257_s6 + $0x1c] ss:$12 sps:$4 sm:$0xff]  }
 0x10e   :  { %5469 = vmatpush3.msra.mxu0 %v239_v1  ;;  %463 = vmatprep.subr.bf16.mxu1 %v5853_v5  ;;  %v5858_v9 = vld [vmem:[%s8257_s6 + $0x18] ss:$12 sps:$4 sm:$0xff]   ;;  %v5859_v10 = vld [vmem:[%s8257_s6 + $0x34] ss:$12 sps:$4 sm:$0xff]   ;;  %v5861_v11 = vld [vmem:[%s8257_s6 + $0x30] ss:$12 sps:$4 sm:$0xff]  }
 0x10f   :  { %464 = vmatpush1.bf16.msra.mxu1 %v5855_v6  ;;  %vm456_vm1 = vcmask 523264   ;;  %v5862_v14 = vld [vmem:[%s8257_s6 + $0x4c] ss:$12 sps:$4 sm:$0xff]   ;;  %v5864_v16 = vld [vmem:[%s8257_s6 + $0x48] ss:$12 sps:$4 sm:$0xff]   ;;  %v6920_v61 = vshrl.u32 %v377_v56, 7 }
 0x110   :  { %465 = vmatprep.subr.bf16.mxu1 %v5856_v7  ;;  %v5028_v20 = vld [vmem:[#allocation4] ss:$0 sm:$0xff]  ;;  %v375_v1 = vld [vmem:[#allocation9] sm:$0x7]  ;;  %vm6520_vm2 = vmmov 0   ;;  %vm925_vm3 = vcmask 130048  }
 0x111   :  { %v6924_v63 = vsub.s32 0, %v6920_v61  ;;  %v5866_v6 = vld [vmem:[%s8257_s6 + $0x20] ss:$12 sps:$4 sm:$0xff]   ;;  %s6521_s19 = smov 112   ;;  %s6522_s16 = smov 96   ;;  %vm1432_vm4 = vcmask 261120  }
 0x112   :  { %v235_v2 = vld [vmem:[%s8295_s25] sm:$0xff]  ;;  %v236_v3 = vld [vmem:[%s8295_s25 + $0x8] sm:$0xff]  ;;  %v237_v4 = vld [vmem:[%s8295_s25 + $0x10] sm:$0xff]  ;;  %s6523_s24 = smov 80   ;;  %vm1435_vm5 = vcmask 392192   ;;  %s8297_s20 = sld [smem:[#allocation35_spill]] }
 0x113   :  { %5470 = vmatprep.mubr.msk.f32.mxu0 %vm247_vm0, %v235_v2  ;;  %v238_v8 = vld [vmem:[%s8295_s25 + $0x18] sm:$0xff]  ;;  %s8296_s25 = sld [smem:[#allocation32_spill]]  ;;  %466 = vmatpush1.bf16.msra.mxu1 %v5858_v9  ;;  %v380_v2 = vrot.slane %v375_v1, %v6924_v63 }
 0x114   :  { %5471 = vmatmul.mubr.msk.f32.vlgmr.msra.gmra.mrb[0].mxu0 %vm247_vm0, %v236_v3  ;;  %467 = vmatprep.subr.bf16.mxu1 %v5859_v10  ;;  %v5865_v3 = vld [vmem:[%s8257_s6 + $0x8] ss:$12 sps:$4 sm:$0xff]   ;;  %v5867_v10 = vld [vmem:[%s8257_s6 + $0x38] ss:$12 sps:$4 sm:$0xff]  }
 0x115   :  { %5473 = vmatprep.mubr.msk.f32.mxu0 %vm247_vm0, %v237_v4  ;;  %5476 = vmatprep.subr.bf16.mxu0 %v5865_v3 }
 0x116   :  { %5477 = vmatpush3.bf16.msra.mxu0 %v5865_v3 }
 0x117   :  { %468 = vmatpush1.bf16.msra.mxu1 %v5861_v11  ;;  %5478 = vmatprep.subr.bf16.mxu0 %v5866_v6 }
 0x118   :  { %5474 = vmatmul.mubr.msk.f32.gmra.mrb[2].mxu0 %vm247_vm0, %v238_v8  ;;  %469 = vmatprep.subr.bf16.mxu1 %v5862_v14  ;;  %v5869_v14 = vld [vmem:[%s8260_s9] ss:$12 sps:$4 sm:$0xff]  }
 0x119   :  { %v345_v12 = vld [vmem:[%s8296_s25] sm:$0xff]  ;;  %v346_v13 = vld [vmem:[%s8296_s25 + $0x8] sm:$0xff]  ;;  %v347_v17 = vld [vmem:[%s8296_s25 + $0x10] sm:$0xff] }
 0x11a   :  { %v6852_v15 = vpack.c.bf16 %v346_v13, %v345_v12  ;;  %v348_v18 = vld [vmem:[%s8296_s25 + $0x18] sm:$0xff]  ;;  %5479 = vmatpush3.bf16.msra.mxu0 %v5866_v6 }
 0x11b   :  { %470 = vmatpush1.bf16.msra.mxu1 %v5864_v16  ;;  %v6868_v19 = vpack.c.bf16 %v348_v18, %v347_v17  ;;  %5480 = vmatprep.subr.bf16.mxu0 %v5867_v10  ;;  %v5868_v13 = vld [vmem:[%s8257_s6 + $0x50] ss:$12 sps:$4 sm:$0xff]   ;;  %v5875_v18 = vld [vmem:[%s8260_s9 + $0x8] ss:$12 sps:$4 sm:$0xff]  }
 0x11c   :  { %5484 = vmatprep.mubr.msk.bf16.mxu0 %vm456_vm1, %v6852_v15  ;;  %v5871_v16 = vld [vmem:[%s8260_s9 + $0x4] ss:$12 sps:$4 sm:$0xff]   ;;  %v5874_v17 = vld [vmem:[%s8260_s9 + $0x1c] ss:$12 sps:$4 sm:$0xff]  }
 0x11d   :  { %745 = vmatprep.subr.bf16.mxu1 %v5871_v16 }
 0x11e   :  { %5045 = vmatmul.mubr.msk.bf16.vlgmr.msra.gmra.mrb[0].mxu1 %vm456_vm1, %v6852_v15  ;;  %5481 = vmatpush3.bf16.msra.mxu0 %v5867_v10 }
 0x11f   :  { %505 = vmatprep.mubr.bf16.mxu1 %v6518_v0  ;;  %5482 = vmatprep.subr.bf16.mxu0 %v5868_v13 }
 0x120   :  { %746 = vmatpush1.bf16.msra.mxu1 %v5869_v14 }
 0x121   :  { %747 = vmatprep.subr.bf16.mxu1 %v5874_v17 }
 0x122   :  { %5483 = vmatpush3.bf16.msra.mxu0 %v5868_v13 }
 0x123   :  { %5488 = vmatprep.subr.bf16.mxu0 %v5875_v18 }
 0x125   :  { %5485 = vmatmul.mubr.msk.bf16.vlgmr.msra.gmra.mrb[4].mxu0 %vm456_vm1, %v6868_v19 }
 0x126   :  { %5046 = vmatmul.mubr.msk.bf16.gmra.mrb[4].mxu1 %vm456_vm1, %v6868_v19  ;;  %5489 = vmatpush3.bf16.msra.mxu0 %v5875_v18 }
 0x127   :  { %777 = vmatprep.mubr.bf16.mxu1 %v6518_v0 }
 0x1e7   :  { %v5472_v21 = vpop.f32.mrb[0].mxu0 }
 0x1e8   :  { %v326_v22 = vpop.f32.mrb[1].mxu0  ;;  %v6875_v24 = vadd.f32 %v5472_v21, %v5028_v20  ;;  %v5872_v21 = vld [vmem:[%s8260_s9 + $0x18] ss:$12 sps:$4 sm:$0xff]  }
 0x1e9   :  { %v6873_v23 = vadd.f32 %v5028_v20, %v326_v22  ;;  %748 = vmatpush1.bf16.msra.mxu1 %v5872_v21  ;;  %v5878_v22 = vld [vmem:[%s8260_s9 + $0x34] ss:$12 sps:$4 sm:$0xff]  }
 0x1ea   :  { %v569_v31 = vsel %vm456_vm1, %v6875_v24, 0.0  ;;  %749 = vmatprep.subr.bf16.mxu1 %v5878_v22 }
 0x1eb   :  { %v5475_v25 = vpop.f32.mrb[2].mxu0  ;;  %v566_v26 = vsel %vm456_vm1, %v6873_v23, 0.0 }
 0x1ec   :  { %v336_v27 = vpop.f32.mrb[3].mxu0  ;;  %567 = vadd.xlane.f32.xlu0 %v566_v26  ;;  %v6879_v28 = vadd.f32 %v5475_v25, %v5028_v20  ;;  %v5879_v25 = vld [vmem:[%s8260_s9 + $0x20] ss:$12 sps:$4 sm:$0xff]   ;;  %v5876_v26 = vld [vmem:[%s8260_s9 + $0x30] ss:$12 sps:$4 sm:$0xff]  }
 0x1ed   :  { %v6881_v29 = vadd.f32 %v5028_v20, %v336_v27  ;;  %5490 = vmatprep.subr.bf16.mxu0 %v5879_v25  ;;  %750 = vmatpush1.bf16.msra.mxu1 %v5876_v26  ;;  %v5882_v27 = vld [vmem:[%s8260_s9 + $0x4c] ss:$12 sps:$4 sm:$0xff]  }
 0x1ee   :  { %v575_v32 = vsel %vm456_vm1, %v6879_v28, 0.0  ;;  %5491 = vmatpush3.bf16.msra.mxu0 %v5879_v25  ;;  %751 = vmatprep.subr.bf16.mxu1 %v5882_v27 }
 0x1ef   :  { %v572_v30 = vsel %vm456_vm1, %v6881_v29, 0.0 }
 0x1f0   :  { %573 = vadd.xlane.f32.xlu1 %v572_v30  ;;  %570 = vadd.xlane.f32.xlu0 %v569_v31  ;;  %v5883_v30 = vld [vmem:[%s8260_s9 + $0x38] ss:$12 sps:$4 sm:$0xff]   ;;  %v5880_v31 = vld [vmem:[%s8260_s9 + $0x48] ss:$12 sps:$4 sm:$0xff]  }
 0x1f1   :  { %v497_v33 = vpop.f32.mrb[0].mxu1  ;;  %5492 = vmatprep.subr.bf16.mxu0 %v5883_v30  ;;  %752 = vmatpush1.bf16.msra.mxu1 %v5880_v31 }
 0x1f2   :  { %v6889_v34 = vpop.f32.mrb[1].mxu1  ;;  %v6932_v5 = vadd.f32 %v497_v33, %v380_v2  ;;  %5493 = vmatpush3.bf16.msra.mxu0 %v5883_v30  ;;  %v355_v33 = vld [vmem:[#allocation7] sm:$0xff] }
 0x1f3   :  { %v501_v35 = vpop.f32.mrb[2].mxu1 }
 0x1f4   :  { %576 = vadd.xlane.f32.xlu1 %v575_v32  ;;  %v6891_v36 = vpop.f32.mrb[3].mxu1  ;;  %v6930_v4 = vadd.f32 %v501_v35, %v380_v2  ;;  %v629_v9 = vadd.f32 1.0, %v6932_v5  ;;  %v5884_v32 = vld [vmem:[%s8260_s9 + $0x50] ss:$12 sps:$4 sm:$0xff]  }
 0x1f5   :  { %5494 = vmatprep.subr.bf16.mxu0 %v5884_v32  ;;  %v356_v35 = vld [vmem:[#allocation7 + $0x8] sm:$0xff] }
 0x1f6   :  { %v630_v8 = vadd.f32 1.0, %v6930_v4  ;;  %5495 = vmatpush3.bf16.msra.mxu0 %v5884_v32 }
 0x1f9   :  { %v507_v37 = vpop.f32.mrb[4].mxu1 }
 0x1fa   :  { %v6893_v38 = vpop.f32.mrb[5].mxu1  ;;  %v6937_v7 = vadd.f32 %v507_v37, %v380_v2  ;;  %v357_v37 = vld [vmem:[#allocation7 + $0x10] sm:$0xff] }
 0x1fb   :  { %v511_v39 = vpop.f32.mrb[6].mxu1 }
 0x1fc   :  { %v6895_v40 = vpop.f32.mrb[7].mxu1  ;;  %v6945_v11 = vadd.f32 %v511_v39, %v380_v2  ;;  %v631_v12 = vadd.f32 1.0, %v6937_v7  ;;  %v358_v39 = vld [vmem:[#allocation7 + $0x18] sm:$0xff] }
 0x1fe   :  { %v632_v20 = vadd.f32 1.0, %v6945_v11 }
 0x279   :  { %v568_v41 = vpop.xlane.xlu0 %567 }
 0x27a   :  { %v579_v42 = vmul.f32 0.015625, %v568_v41 }
 0x27c   :  { %v6898_v43 = vsub.f32 %v6873_v23, %v579_v42 }
 0x27d   :  { %v574_v44 = vpop.xlane.xlu1 %573  ;;  %v571_v45 = vpop.xlane.xlu0 %570 }
 0x27e   :  { %v581_v46 = vmul.f32 0.015625, %v574_v44  ;;  %v580_v47 = vmul.f32 0.015625, %v571_v45  ;;  %v587_v48 = vmul.f32 %v6898_v43, %v6898_v43 }
 0x280   :  { %v6903_v49 = vsub.f32 %v6881_v29, %v581_v46  ;;  %v6906_v50 = vsub.f32 %v6875_v24, %v580_v47  ;;  %v591_v51 = vsel %vm456_vm1, %v587_v48, 0.0 }
 0x281   :  { %v577_v52 = vpop.xlane.xlu1 %576  ;;  %592 = vadd.xlane.f32.xlu0 %v591_v51 }
 0x282   :  { %v582_v53 = vmul.f32 0.015625, %v577_v52  ;;  %v589_v54 = vmul.f32 %v6903_v49, %v6903_v49  ;;  %v588_v55 = vmul.f32 %v6906_v50, %v6906_v50 }
 0x284   :  { %v6914_v57 = vsub.f32 %v6879_v28, %v582_v53  ;;  %v597_v58 = vsel %vm456_vm1, %v589_v54, 0.0  ;;  %v594_v59 = vsel %vm456_vm1, %v588_v55, 0.0 }
 0x285   :  { %598 = vadd.xlane.f32.xlu0 %v597_v58  ;;  %595 = vadd.xlane.f32.xlu1 %v594_v59  ;;  %v5049_v59 = vld [vmem:[%s8259_s8] ss:$0 sm:$0xff] }
 0x286   :  { %v590_v60 = vmul.f32 %v6914_v57, %v6914_v57 }
 0x288   :  { %v600_v62 = vsel %vm456_vm1, %v590_v60, 0.0 }
 0x289   :  { %601 = vadd.xlane.f32.xlu1 %v600_v62 }
 0x29a   :  { %639 = vrot.lane.b32.xlu1 %v630_v8, %s6504_s15 }
 0x29b   :  { %637 = vrot.lane.b32.xlu0 %v629_v9, %s6504_s15 }
 0x29e   :  { %641 = vrot.lane.b32.xlu1 %v631_v12, %s6504_s15 }
 0x29f   :  { %855 = vrot.lane.b32.xlu0 %v355_v33, %s6504_s15 }
 0x2a2   :  { %643 = vrot.lane.b32.xlu1 %v632_v20, %s6504_s15 }
 0x2a3   :  { %859 = vrot.lane.b32.xlu0 %v357_v37, %s6504_s15 }
 0x2a6   :  { %857 = vrot.lane.b32.xlu1 %v356_v35, %s6504_s15 }
 0x2aa   :  { %861 = vrot.lane.b32.xlu1 %v358_v39, %s6504_s15 }
 0x30e   :  { %v593_v41 = vpop.xlane.xlu0 %592 }
 0x30f   :  { %v603_v42 = vmul.f32 0.015625, %v593_v41 }
 0x311   :  { %v607_v44 = vadd.f32 1e-05, %v603_v42 }
 0x312   :  { %v596_v45 = vpop.xlane.xlu1 %595  ;;  %v599_v46 = vpop.xlane.xlu0 %598 }
 0x313   :  { %5989 = vrsqrt.f32 %v607_v44  ;;  %v604_v47 = vmul.f32 0.015625, %v596_v45  ;;  %v605_v48 = vmul.f32 0.015625, %v599_v46 }
 0x315   :  { %v608_v51 = vadd.f32 1e-05, %v604_v47  ;;  %v609_v52 = vadd.f32 1e-05, %v605_v48 }
 0x316   :  { %v602_v53 = vpop.xlane.xlu1 %601  ;;  %v638_v2 = vpop.permute.xlu0 %637 }
 0x317   :  { %5991 = vrsqrt.f32 %v608_v51  ;;  %v606_v54 = vmul.f32 0.015625, %v602_v53 }
 0x318   :  { %5993 = vrsqrt.f32 %v609_v52 }
 0x319   :  { %v610_v55 = vadd.f32 1e-05, %v606_v54 }
 0x31a   :  { %v640_v56 = vpop.permute.xlu1 %639  ;;  %v7023_v30 = vpop.permute.xlu0 %855 }
 0x31b   :  { %5995 = vrsqrt.f32 %v610_v55 }
 0x31d   :  { %v5990_v58 = vpop.eup %5989 }
 0x31e   :  { %v615_v60 = vmul.f32 %v5990_v58, %v6898_v43  ;;  %v642_v3 = vpop.permute.xlu1 %641  ;;  %v7038_v51 = vpop.permute.xlu0 %859 }
 0x320   :  { %v625_v62 = vmul.f32 %v5049_v59, %v615_v60 }
 0x321   :  { %v5992_v1 = vpop.eup %5991 }
 0x322   :  { %v5994_v6 = vpop.eup %5993  ;;  %v616_v8 = vmul.f32 %v5992_v1, %v6906_v50  ;;  %v649_v12 = vmul.f32 %v638_v2, %v625_v62  ;;  %v644_v18 = vpop.permute.xlu1 %643 }
 0x323   :  { %v617_v9 = vmul.f32 %v5994_v6, %v6903_v49  ;;  %v352_v6 = vld [vmem:[#allocation6 + $0x8] sm:$0xff] }
 0x324   :  { %v626_v10 = vmul.f32 %v5049_v59, %v616_v8  ;;  %v653_v43 = vadd.f32 %v649_v12, %v6932_v5 }
 0x325   :  { %v5996_v13 = vpop.eup %5995  ;;  %v627_v14 = vmul.f32 %v5049_v59, %v617_v9 }
 0x326   :  { %v650_v16 = vmul.f32 %v640_v56, %v626_v10  ;;  %v618_v17 = vmul.f32 %v5996_v13, %v6914_v57  ;;  %v7025_v33 = vpop.permute.xlu1 %857 }
 0x327   :  { %v651_v21 = vmul.f32 %v642_v3, %v627_v14  ;;  %v351_v3 = vld [vmem:[#allocation6] sm:$0xff] }
 0x328   :  { %v654_v20 = vadd.f32 %v650_v16, %v6930_v4  ;;  %v628_v22 = vmul.f32 %v5049_v59, %v618_v17  ;;  %v7013_v4 = vpop.f32.mrb[4].mxu0 }
 0x329   :  { %v655_v50 = vadd.f32 %v651_v21, %v6937_v7  ;;  %v7015_v5 = vpop.f32.mrb[5].mxu0  ;;  %v354_v21 = vld [vmem:[#allocation6 + $0x18] sm:$0xff] }
 0x32a   :  { %v657_v25 = vpack.c.bf16 %v654_v20, %v653_v43  ;;  %v652_v26 = vmul.f32 %v644_v18, %v628_v22  ;;  %v7017_v27 = vpop.f32.mrb[6].mxu0  ;;  %v7044_v56 = vpop.permute.xlu1 %861  ;;  %v353_v43 = vld [vmem:[#allocation6 + $0x10] sm:$0xff] }
 0x32b   :  { %v7019_v7 = vpop.f32.mrb[7].mxu0 }
 0x32c   :  { %v656_v49 = vadd.f32 %v652_v26, %v6945_v11  ;;  %5062 = vmatmul.mubr.msk.bf16.vlgmr.msra.gmra.mrb[8].mxu1 %vm456_vm1, %v657_v25  ;;  %5496 = vmatprep.mubr.msk.bf16.mxu0 %vm456_vm1, %v657_v25  ;;  %v6519_v11 = vmov 0.0  }
 0x32d   :  { %787 = vmatprep.mubr.bf16.mxu1 %v6518_v0  ;;  %5506 = vmatprep.subr.bf16.mxu1 %v6519_v11 }
 0x32e   :  { %v658_v57 = vpack.c.bf16 %v656_v49, %v655_v50  ;;  %5500 = vmatprep.subr.bf16.mxu0 %v6519_v11 }
 0x330   :  { %5497 = vmatmul.mubr.msk.bf16.vlgmr.msra.gmra.mrb[8].mxu0 %vm456_vm1, %v658_v57 }
 0x331   :  { %5502 = vmatprep.mubr.msk.bf16.mxu0 %vm6520_vm2, %v6519_v11 }
 0x334   :  { %5063 = vmatmul.mubr.msk.bf16.gmra.mrb[12].mxu1 %vm456_vm1, %v658_v57 }
 0x335   :  { %5508 = vmatprep.mubr.msk.bf16.mxu1 %vm6520_vm2, %v6519_v11 }
 0x3ff   :  { %v779_v31 = vpop.f32.mrb[8].mxu1 }
 0x400   :  { %v781_v32 = vpop.f32.mrb[9].mxu1  ;;  %v867_v46 = vmul.f32 %v7023_v30, %v779_v31  ;;  %v847_v17 = vmul.f32 %v779_v31, %v351_v3 }
 0x401   :  { %v783_v35 = vpop.f32.mrb[10].mxu1  ;;  %v897_v37 = vmul.f32 %v7023_v30, %v781_v32  ;;  %v893_v9 = vmul.f32 %v781_v32, %v351_v3 }
 0x402   :  { %v785_v39 = vpop.f32.mrb[11].mxu1  ;;  %v868_v54 = vmul.f32 %v7025_v33, %v783_v35  ;;  %v848_v18 = vmul.f32 %v783_v35, %v352_v6 }
 0x403   :  { %v5498_v41 = vpop.f32.mrb[8].mxu0  ;;  %905 = vrot.lane.b32.xlu0 %v897_v37, %s6504_s15  ;;  %v898_v42 = vmul.f32 %v7025_v33, %v785_v39  ;;  %v894_v10 = vmul.f32 %v785_v39, %v352_v6 }
 0x404   :  { %v832_v44 = vpop.f32.mrb[9].mxu0 }
 0x405   :  { %v5499_v45 = vpop.f32.mrb[10].mxu0  ;;  %907 = vrot.lane.b32.xlu1 %v898_v42, %s6504_s15 }
 0x406   :  { %v7036_v47 = vpack.c.bf16 %v5499_v45, %v5498_v41  ;;  %v835_v48 = vpop.f32.mrb[11].mxu0 }
 0x407   :  { %v7040_v52 = vpack.c.bf16 %v835_v48, %v832_v44  ;;  %v789_v53 = vpop.f32.mrb[12].mxu1  ;;  %875 = vrot.lane.b32.xlu0 %v867_v46, %s6504_s15 }
 0x408   :  { %v791_v55 = vpop.f32.mrb[13].mxu1  ;;  %v869_v1 = vmul.f32 %v7038_v51, %v789_v53  ;;  %v849_v42 = vmul.f32 %v789_v53, %v353_v43 }
 0x409   :  { %5507 = vmatpush3.bf16.msra.mxu1 %v7040_v52  ;;  %877 = vrot.lane.b32.xlu1 %v868_v54, %s6504_s15  ;;  %v793_v58 = vpop.f32.mrb[14].mxu1  ;;  %v899_v59 = vmul.f32 %v7038_v51, %v791_v55  ;;  %v895_v57 = vmul.f32 %v791_v55, %v353_v43 }
 0x40a   :  { %v795_v60 = vpop.f32.mrb[15].mxu1  ;;  %5518 = vmatprep.subr.bf16.mxu1 %v6519_v11  ;;  %v870_v2 = vmul.f32 %v7044_v56, %v793_v58  ;;  %v850_v44 = vmul.f32 %v793_v58, %v354_v21 }
 0x40b   :  { %909 = vrot.lane.b32.xlu0 %v899_v59, %s6504_s15  ;;  %v900_v62 = vmul.f32 %v7044_v56, %v795_v60  ;;  %v896_v32 = vmul.f32 %v795_v60, %v354_v21 }
 0x40d   :  { %911 = vrot.lane.b32.xlu1 %v900_v62, %s6504_s15 }
 0x40f   :  { %879 = vrot.lane.b32.xlu0 %v869_v1, %s6504_s15 }
 0x411   :  { %881 = vrot.lane.b32.xlu1 %v870_v2, %s6504_s15 }
 0x475   :  { %v906_v8 = vpop.permute.xlu0 %905 }
 0x476   :  { %v917_v13 = vadd.f32 %v906_v8, %v893_v9 }
 0x477   :  { %v908_v12 = vpop.permute.xlu1 %907 }
 0x478   :  { %v918_v14 = vadd.f32 %v908_v12, %v894_v10 }
 0x479   :  { %v876_v16 = vpop.permute.xlu0 %875 }
 0x47a   :  { %v921_v20 = vpack.c.bf16 %v918_v14, %v917_v13  ;;  %v887_v25 = vadd.f32 %v876_v16, %v847_v17 }
 0x47b   :  { %v878_v22 = vpop.permute.xlu1 %877 }
 0x47c   :  { %v888_v26 = vadd.f32 %v878_v22, %v848_v18  ;;  %1044 = vrot.lane.b32.xlu0 %v921_v20, %s6521_s19  ;;  %v930_v50 = vsel %vm925_vm3, %v921_v20, 0 }
 0x47d   :  { %5501 = vmatpush3.bf16.xpose.msra.mxu0 %v930_v50  ;;  %v910_v49 = vpop.permute.xlu0 %909 }
 0x47e   :  { %v891_v37 = vpack.c.bf16 %v888_v26, %v887_v25  ;;  %5512 = vmatprep.subr.bf16.mxu0 %v6519_v11  ;;  %v919_v35 = vadd.f32 %v910_v49, %v895_v57 }
 0x47f   :  { %v912_v31 = vpop.permute.xlu1 %911 }
 0x480   :  { %v920_v39 = vadd.f32 %v912_v31, %v896_v32  ;;  %1166 = vrot.lane.b32.xlu0 %v921_v20, %s6522_s16  ;;  %1041 = vrot.lane.b32.xlu1 %v891_v37, %s6521_s19 }
 0x481   :  { %v880_v41 = vpop.permute.xlu0 %879 }
 0x482   :  { %v922_v45 = vpack.c.bf16 %v920_v39, %v919_v35  ;;  %v889_v48 = vadd.f32 %v880_v41, %v849_v42 }
 0x483   :  { %v882_v46 = vpop.permute.xlu1 %881 }
 0x484   :  { %v890_v54 = vadd.f32 %v882_v46, %v850_v44  ;;  %1287 = vrot.lane.b32.xlu0 %v921_v20, %s6523_s24  ;;  %1164 = vrot.lane.b32.xlu1 %v891_v37, %s6522_s16  ;;  %v1442_v8 = vsel %vm925_vm3, %v922_v45, 0 }
 0x485   :  { %5503 = vmatmul.mubr.msk.bf16.vlgmr.msra.gmra.mrb[12].mxu0 %vm925_vm3, %v891_v37 }
 0x486   :  { %v892_v55 = vpack.c.bf16 %v890_v54, %v889_v48  ;;  %5514 = vmatprep.mubr.msk.bf16.mxu0 %vm6520_vm2, %v6519_v11 }
 0x488   :  { %1285 = vrot.lane.b32.xlu1 %v891_v37, %s6523_s24  ;;  %1556 = vrot.lane.b32.xlu0 %v922_v45, %s6521_s19 }
 0x48c   :  { %1678 = vrot.lane.b32.xlu0 %v922_v45, %s6522_s16  ;;  %1553 = vrot.lane.b32.xlu1 %v892_v55, %s6521_s19 }
 0x490   :  { %1799 = vrot.lane.b32.xlu0 %v922_v45, %s6523_s24  ;;  %1676 = vrot.lane.b32.xlu1 %v892_v55, %s6522_s16 }
 0x494   :  { %1797 = vrot.lane.b32.xlu1 %v892_v55, %s6523_s24 }
 0x4ee   :  { %v1045_v53 = vpop.permute.xlu0 %1044 }
 0x4ef   :  { %v1050_v58 = vsel %vm925_vm3, %v1045_v53, 0 }
 0x4f0   :  { %5513 = vmatpush3.bf16.xpose.msra.mxu0 %v1050_v58 }
 0x4f1   :  { %5524 = vmatprep.subr.bf16.mxu0 %v6519_v11 }
 0x4f2   :  { %v1167_v59 = vpop.permute.xlu0 %1166  ;;  %v1042_v60 = vpop.permute.xlu1 %1041 }
 0x4f3   :  { %v1172_v62 = vsel %vm925_vm3, %v1167_v59, 0 }
 0x4f6   :  { %v1288_v1 = vpop.permute.xlu0 %1287  ;;  %v1165_v2 = vpop.permute.xlu1 %1164 }
 0x4f7   :  { %5515 = vmatmul.mubr.msk.bf16.vlgmr.msra.gmra.mrb[16].mxu0 %vm925_vm3, %v1042_v60  ;;  %v1293_v3 = vsel %vm925_vm3, %v1288_v1, 0 }
 0x4f8   :  { %5525 = vmatpush3.bf16.xpose.msra.mxu0 %v1172_v62  ;;  %5526 = vmatprep.mubr.msk.bf16.mxu0 %vm6520_vm2, %v6519_v11 }
 0x4f9   :  { %5536 = vmatprep.subr.bf16.mxu0 %v6519_v11 }
 0x4fa   :  { %v1286_v6 = vpop.permute.xlu1 %1285  ;;  %v1557_v9 = vpop.permute.xlu0 %1556 }
 0x4fb   :  { %v1562_v10 = vsel %vm925_vm3, %v1557_v9, 0 }
 0x4fe   :  { %v1679_v12 = vpop.permute.xlu0 %1678  ;;  %v1554_v13 = vpop.permute.xlu1 %1553 }
 0x4ff   :  { %5527 = vmatmul.mubr.msk.bf16.vlgmr.msra.gmra.mrb[20].mxu0 %vm925_vm3, %v1165_v2  ;;  %v1684_v14 = vsel %vm925_vm3, %v1679_v12, 0 }
 0x500   :  { %5537 = vmatpush3.bf16.xpose.msra.mxu0 %v1293_v3  ;;  %5538 = vmatprep.mubr.msk.bf16.mxu0 %vm6520_vm2, %v6519_v11 }
 0x501   :  { %5548 = vmatprep.subr.bf16.mxu0 %v6519_v11 }
 0x502   :  { %v1800_v16 = vpop.permute.xlu0 %1799  ;;  %v1677_v17 = vpop.permute.xlu1 %1676 }
 0x503   :  { %v1805_v18 = vsel %vm925_vm3, %v1800_v16, 0 }
 0x506   :  { %v1798_v20 = vpop.permute.xlu1 %1797 }
 0x507   :  { %5539 = vmatmul.mubr.msk.bf16.vlgmr.msra.gmra.mrb[24].mxu0 %vm925_vm3, %v1286_v6 }
 0x508   :  { %5549 = vmatpush3.bf16.xpose.msra.mxu0 %v1442_v8  ;;  %5550 = vmatprep.mubr.msk.bf16.mxu0 %vm6520_vm2, %v6519_v11 }
 0x509   :  { %5560 = vmatprep.subr.bf16.mxu0 %v6519_v11 }
 0x50f   :  { %5551 = vmatmul.mubr.msk.bf16.vlgmr.msra.gmra.mrb[28].mxu0 %vm925_vm3, %v892_v55 }
 0x510   :  { %5561 = vmatpush3.bf16.xpose.msra.mxu0 %v1562_v10  ;;  %5562 = vmatprep.mubr.msk.bf16.mxu0 %vm6520_vm2, %v6519_v11 }
 0x511   :  { %5572 = vmatprep.subr.bf16.mxu0 %v6519_v11 }
 0x517   :  { %5563 = vmatmul.mubr.msk.bf16.vlgmr.msra.gmra.mrb[32].mxu0 %vm925_vm3, %v1554_v13 }
 0x518   :  { %5573 = vmatpush3.bf16.xpose.msra.mxu0 %v1684_v14  ;;  %5574 = vmatprep.mubr.msk.bf16.mxu0 %vm6520_vm2, %v6519_v11 }
 0x519   :  { %5584 = vmatprep.subr.bf16.mxu0 %v6519_v11 }
 0x51f   :  { %5575 = vmatmul.mubr.msk.bf16.vlgmr.msra.gmra.mrb[36].mxu0 %vm925_vm3, %v1677_v17 }
 0x520   :  { %5585 = vmatpush3.bf16.xpose.msra.mxu0 %v1805_v18  ;;  %5586 = vmatprep.mubr.msk.bf16.mxu0 %vm6520_vm2, %v6519_v11 }
 0x527   :  { %5587 = vmatmul.mubr.msk.bf16.vlgmr.msra.gmra.mrb[40].mxu0 %vm925_vm3, %v1798_v20 }
 0x558   :  { %v966_v43 = vpop.f32.mrb[12].mxu0 }
 0x559   :  { %v5504_v21 = vpop.f32.mrb[13].mxu0  ;;  %v973_v22 = vsel %vm925_vm3, %v966_v43, -inf }
 0x55a   :  { %v969_v25 = vpop.f32.mrb[14].mxu0  ;;  %974 = vmax.xlane.f32.xlu0 %v973_v22 }
 0x55b   :  { %v5505_v26 = vpop.f32.mrb[15].mxu0  ;;  %v976_v50 = vsel %vm925_vm3, %v969_v25, -inf }
 0x55c   :  { %977 = vmax.xlane.f32.xlu1 %v976_v50 }
 0x5ca   :  { %v7108_v49 = vpop.f32.mrb[16].mxu0 }
 0x5cb   :  { %v5516_v57 = vpop.f32.mrb[17].mxu0  ;;  %v1093_v32 = vsel %vm925_vm3, %v7108_v49, -inf }
 0x5cc   :  { %1094 = vmax.xlane.f32.xlu0 %v1093_v32  ;;  %v7112_v37 = vpop.f32.mrb[18].mxu0 }
 0x5cd   :  { %v5517_v31 = vpop.f32.mrb[19].mxu0  ;;  %v1096_v35 = vsel %vm925_vm3, %v7112_v37, -inf }
 0x5d0   :  { %1097 = vmax.xlane.f32.xlu0 %v1096_v35 }
 0x5d2   :  { %v7116_v39 = vpop.f32.mrb[20].mxu0 }
 0x5d3   :  { %v5528_v41 = vpop.f32.mrb[21].mxu0  ;;  %v1215_v42 = vsel %vm925_vm3, %v7116_v39, -inf }
 0x5d4   :  { %1216 = vmax.xlane.f32.xlu0 %v1215_v42  ;;  %v7120_v44 = vpop.f32.mrb[22].mxu0 }
 0x5d5   :  { %v5529_v45 = vpop.f32.mrb[23].mxu0  ;;  %v1218_v46 = vsel %vm925_vm3, %v7120_v44, -inf }
 0x5d6   :  { %1219 = vmax.xlane.f32.xlu1 %v1218_v46 }
 0x5da   :  { %v7124_v48 = vpop.f32.mrb[24].mxu0 }
 0x5db   :  { %v5540_v54 = vpop.f32.mrb[25].mxu0  ;;  %v1336_v55 = vsel %vm925_vm3, %v7124_v48, -inf }
 0x5dc   :  { %1337 = vmax.xlane.f32.xlu0 %v1336_v55  ;;  %v7128_v53 = vpop.f32.mrb[26].mxu0 }
 0x5dd   :  { %v5541_v58 = vpop.f32.mrb[27].mxu0  ;;  %v1339_v59 = vsel %vm925_vm3, %v7128_v53, -inf }
 0x5de   :  { %1340 = vmax.xlane.f32.xlu1 %v1339_v59 }
 0x5e2   :  { %v7132_v60 = vpop.f32.mrb[28].mxu0 }
 0x5e3   :  { %v5552_v62 = vpop.f32.mrb[29].mxu0  ;;  %v1485_v1 = vsel %vm925_vm3, %v7132_v60, -inf }
 0x5e4   :  { %1486 = vmax.xlane.f32.xlu0 %v1485_v1  ;;  %v7136_v2 = vpop.f32.mrb[30].mxu0 }
 0x5e5   :  { %v5553_v3 = vpop.f32.mrb[31].mxu0  ;;  %v1488_v6 = vsel %vm925_vm3, %v7136_v2, -inf }
 0x5e6   :  { %1489 = vmax.xlane.f32.xlu1 %v1488_v6 }
 0x5e7   :  { %v975_v8 = vpop.xlane.xlu0 %974 }
 0x5e8   :  { %v979_v9 = vsub.f32 %v966_v43, %v975_v8 }
 0x5e9   :  { %v978_v10 = vpop.xlane.xlu1 %977 }
 0x5ea   :  { %v981_v12 = vmul.f32 1.442695, %v979_v9  ;;  %v980_v13 = vsub.f32 %v969_v25, %v978_v10  ;;  %v7140_v14 = vpop.f32.mrb[32].mxu0 }
 0x5eb   :  { %v5564_v16 = vpop.f32.mrb[33].mxu0  ;;  %v1605_v17 = vsel %vm925_vm3, %v7140_v14, -inf }
 0x5ec   :  { %5997 = vpow2.f32 %v981_v12  ;;  %v983_v18 = vmul.f32 1.442695, %v980_v13  ;;  %1606 = vmax.xlane.f32.xlu0 %v1605_v17  ;;  %v7144_v20 = vpop.f32.mrb[34].mxu0 }
 0x5ed   :  { %v5565_v21 = vpop.f32.mrb[35].mxu0  ;;  %v1608_v22 = vsel %vm925_vm3, %v7144_v20, -inf }
 0x5ee   :  { %5999 = vpow2.f32 %v983_v18  ;;  %1609 = vmax.xlane.f32.xlu1 %v1608_v22 }
 0x5f2   :  { %v7148_v43 = vpop.f32.mrb[36].mxu0 }
 0x5f3   :  { %v5576_v25 = vpop.f32.mrb[37].mxu0  ;;  %v1727_v26 = vsel %vm925_vm3, %v7148_v43, -inf }
 0x5f4   :  { %1728 = vmax.xlane.f32.xlu0 %v1727_v26  ;;  %v7152_v50 = vpop.f32.mrb[38].mxu0 }
 0x5f5   :  { %v5577_v57 = vpop.f32.mrb[39].mxu0  ;;  %v1730_v32 = vsel %vm925_vm3, %v7152_v50, -inf }
 0x5f6   :  { %v7156_v31 = vpop.eup %5997  ;;  %1731 = vmax.xlane.f32.xlu1 %v1730_v32 }
 0x5f7   :  { %v985_v35 = vsel %vm925_vm3, %v7156_v31, 0.0 }
 0x5f8   :  { %v7160_v41 = vpop.eup %5999  ;;  %986 = vadd.xlane.f32.xlu0 %v985_v35 }
 0x5f9   :  { %v988_v42 = vsel %vm925_vm3, %v7160_v41, 0.0 }
 0x5fa   :  { %989 = vadd.xlane.f32.xlu1 %v988_v42  ;;  %v7164_v45 = vpop.f32.mrb[40].mxu0 }
 0x5fb   :  { %v5588_v46 = vpop.f32.mrb[41].mxu0  ;;  %v1848_v54 = vsel %vm925_vm3, %v7164_v45, -inf }
 0x5fc   :  { %v7168_v55 = vpop.f32.mrb[42].mxu0  ;;  %1849 = vmax.xlane.f32.xlu0 %v1848_v54 }
 0x5fd   :  { %v5589_v58 = vpop.f32.mrb[43].mxu0  ;;  %v1851_v59 = vsel %vm925_vm3, %v7168_v55, -inf }
 0x5fe   :  { %1852 = vmax.xlane.f32.xlu1 %v1851_v59 }
 0x60f   :  { %1238 = vrot.lane.b32.xlu1 %v7040_v52, %s6522_s16 }
 0x612   :  { %1117 = vrot.lane.b32.xlu0 %v7040_v52, %s6521_s19 }
 0x659   :  { %v1095_v62 = vpop.xlane.xlu0 %1094 }
 0x65a   :  { %v1099_v1 = vsub.f32 %v7108_v49, %v1095_v62 }
 0x65c   :  { %v1101_v3 = vmul.f32 1.442695, %v1099_v1 }
 0x65d   :  { %v1098_v6 = vpop.xlane.xlu0 %1097 }
 0x65e   :  { %6001 = vpow2.f32 %v1101_v3  ;;  %v1100_v8 = vsub.f32 %v7112_v37, %v1098_v6 }
 0x660   :  { %v1103_v9 = vmul.f32 1.442695, %v1100_v8 }
 0x661   :  { %v1217_v10 = vpop.xlane.xlu0 %1216 }
 0x662   :  { %6003 = vpow2.f32 %v1103_v9  ;;  %v1221_v12 = vsub.f32 %v7116_v39, %v1217_v10 }
 0x663   :  { %v1220_v13 = vpop.xlane.xlu1 %1219 }
 0x664   :  { %v1223_v16 = vmul.f32 1.442695, %v1221_v12  ;;  %v1222_v17 = vsub.f32 %v7120_v44, %v1220_v13 }
 0x666   :  { %6005 = vpow2.f32 %v1223_v16  ;;  %v1225_v18 = vmul.f32 1.442695, %v1222_v17 }
 0x668   :  { %v7180_v21 = vpop.eup %6001  ;;  %6007 = vpow2.f32 %v1225_v18 }
 0x669   :  { %v1338_v49 = vpop.xlane.xlu0 %1337  ;;  %v1105_v22 = vsel %vm925_vm3, %v7180_v21, 0.0 }
 0x66a   :  { %v1342_v37 = vsub.f32 %v7124_v48, %v1338_v49  ;;  %1106 = vadd.xlane.f32.xlu0 %v1105_v22 }
 0x66b   :  { %v1341_v25 = vpop.xlane.xlu1 %1340 }
 0x66c   :  { %v7185_v26 = vpop.eup %6003  ;;  %v1344_v39 = vmul.f32 1.442695, %v1342_v37  ;;  %v1343_v57 = vsub.f32 %v7128_v53, %v1341_v25 }
 0x66d   :  { %v1108_v44 = vsel %vm925_vm3, %v7185_v26, 0.0 }
 0x66e   :  { %6009 = vpow2.f32 %v1344_v39  ;;  %v1346_v32 = vmul.f32 1.442695, %v1343_v57  ;;  %1109 = vadd.xlane.f32.xlu1 %v1108_v44 }
 0x670   :  { %v7190_v35 = vpop.eup %6005  ;;  %6011 = vpow2.f32 %v1346_v32 }
 0x671   :  { %v1487_v42 = vpop.xlane.xlu0 %1486  ;;  %v1227_v48 = vsel %vm925_vm3, %v7190_v35, 0.0 }
 0x672   :  { %v7194_v46 = vpop.eup %6007  ;;  %v1491_v54 = vsub.f32 %v7132_v60, %v1487_v42  ;;  %1228 = vadd.xlane.f32.xlu0 %v1227_v48 }
 0x673   :  { %v1490_v58 = vpop.xlane.xlu1 %1489  ;;  %v1230_v53 = vsel %vm925_vm3, %v7194_v46, 0.0 }
 0x674   :  { %v1493_v59 = vmul.f32 1.442695, %v1491_v54  ;;  %v1492_v62 = vsub.f32 %v7136_v2, %v1490_v58  ;;  %1231 = vadd.xlane.f32.xlu1 %v1230_v53 }
 0x676   :  { %6013 = vpow2.f32 %v1493_v59  ;;  %v1495_v1 = vmul.f32 1.442695, %v1492_v62 }
 0x678   :  { %v7200_v3 = vpop.eup %6009  ;;  %6015 = vpow2.f32 %v1495_v1 }
 0x679   :  { %v1607_v6 = vpop.xlane.xlu0 %1606  ;;  %v1348_v8 = vsel %vm925_vm3, %v7200_v3, 0.0 }
 0x67a   :  { %v7204_v9 = vpop.eup %6011  ;;  %v1611_v60 = vsub.f32 %v7140_v14, %v1607_v6  ;;  %1349 = vadd.xlane.f32.xlu0 %v1348_v8 }
 0x67b   :  { %v1610_v10 = vpop.xlane.xlu1 %1609  ;;  %v1351_v12 = vsel %vm925_vm3, %v7204_v9, 0.0 }
 0x67c   :  { %v1613_v2 = vmul.f32 1.442695, %v1611_v60  ;;  %v1612_v13 = vsub.f32 %v7144_v20, %v1610_v10  ;;  %1352 = vadd.xlane.f32.xlu1 %v1351_v12 }
 0x67e   :  { %6017 = vpow2.f32 %v1613_v2  ;;  %v1615_v16 = vmul.f32 1.442695, %v1612_v13 }
 0x680   :  { %v7210_v17 = vpop.eup %6013  ;;  %6019 = vpow2.f32 %v1615_v16 }
 0x681   :  { %v1729_v18 = vpop.xlane.xlu0 %1728  ;;  %v1497_v49 = vsel %vm925_vm3, %v7210_v17, 0.0 }
 0x682   :  { %v7214_v22 = vpop.eup %6015  ;;  %1498 = vadd.xlane.f32.xlu0 %v1497_v49  ;;  %v1733_v16 = vsub.f32 %v7148_v43, %v1729_v18 }
 0x683   :  { %v1732_v14 = vpop.xlane.xlu1 %1731  ;;  %v1500_v37 = vsel %vm925_vm3, %v7214_v22, 0.0 }
 0x684   :  { %v1734_v25 = vsub.f32 %v7152_v50, %v1732_v14  ;;  %1501 = vadd.xlane.f32.xlu1 %v1500_v37  ;;  %v1735_v49 = vmul.f32 1.442695, %v1733_v16 }
 0x685   :  { %v987_v20 = vpop.xlane.xlu0 %986 }
 0x686   :  { %v1737_v39 = vmul.f32 1.442695, %v1734_v25  ;;  %6021 = vrcp.f32 %v987_v20 }
 0x687   :  { %v990_v57 = vpop.xlane.xlu1 %989 }
 0x688   :  { %v7219_v44 = vpop.eup %6017  ;;  %6023 = vpow2.f32 %v1737_v39 }
 0x689   :  { %6025 = vrcp.f32 %v990_v57  ;;  %v1850_v32 = vpop.xlane.xlu0 %1849  ;;  %v1617_v42 = vsel %vm925_vm3, %v7219_v44, 0.0 }
 0x68a   :  { %v7223_v48 = vpop.eup %6019  ;;  %v1854_v54 = vsub.f32 %v7164_v45, %v1850_v32  ;;  %1618 = vadd.xlane.f32.xlu1 %v1617_v42 }
 0x68b   :  { %v1853_v58 = vpop.xlane.xlu1 %1852  ;;  %v1620_v59 = vsel %vm925_vm3, %v7223_v48, 0.0 }
 0x68c   :  { %v1856_v50 = vmul.f32 1.442695, %v1854_v54  ;;  %v1855_v53 = vsub.f32 %v7168_v55, %v1853_v58 }
 0x68d   :  { %v1118_v2 = vpop.permute.xlu0 %1117 }
 0x68e   :  { %6027 = vpow2.f32 %v1856_v50  ;;  %v1858_v62 = vmul.f32 1.442695, %v1855_v53  ;;  %1621 = vadd.xlane.f32.xlu1 %v1620_v59 }
 0x68f   :  { %v1239_v37 = vpop.permute.xlu1 %1238 }
 0x690   :  { %6029 = vpow2.f32 %v1858_v62  ;;  %v6022_v1 = vpop.eup %6021 }
 0x691   :  { %v993_v45 = vmul.f32 %v6022_v1, %v7156_v31  ;;  %6031 = vpow2.f32 %v1735_v49 }
 0x692   :  { %v7229_v6 = vpop.eup %6023 }
 0x693   :  { %v6026_v8 = vpop.eup %6025  ;;  %v1742_v60 = vsel %vm925_vm3, %v7229_v6, 0.0 }
 0x694   :  { %v994_v10 = vmul.f32 %v6026_v8, %v7160_v41  ;;  %1743 = vadd.xlane.f32.xlu1 %v1742_v60 }
 0x696   :  { %v995_v55 = vpack.c.bf16 %v994_v10, %v993_v45 }
 0x698   :  { %v7235_v12 = vpop.eup %6027  ;;  %5509 = vmatmul.mubr.msk.bf16.vlgmr.msra.gmra.mrb[16].mxu1 %vm925_vm3, %v995_v55  ;;  %1359 = vrot.lane.b32.xlu0 %v7040_v52, %s6523_s24 }
 0x699   :  { %5519 = vmatpush3.bf16.msra.mxu1 %v1118_v2  ;;  %v1860_v13 = vsel %vm925_vm3, %v7235_v12, 0.0  ;;  %5520 = vmatprep.mubr.msk.bf16.mxu1 %vm6520_vm2, %v6519_v11 }
 0x69a   :  { %v7244_v31 = vpop.eup %6029  ;;  %1861 = vadd.xlane.f32.xlu1 %v1860_v13  ;;  %5530 = vmatprep.subr.bf16.mxu1 %v6519_v11 }
 0x69b   :  { %v1863_v41 = vsel %vm925_vm3, %v7244_v31, 0.0  ;;  %v7252_v52 = vpop.eup %6031 }
 0x69c   :  { %v1739_v14 = vsel %vm925_vm3, %v7252_v52, 0.0 }
 0x69e   :  { %1864 = vadd.xlane.f32.xlu1 %v1863_v41 }
 0x6af   :  { %1629 = vrot.lane.b32.xlu1 %v7036_v47, %s6521_s19 }
 0x6b7   :  { %1740 = vadd.xlane.f32.xlu0 %v1739_v14 }
 0x6cd   :  { %1750 = vrot.lane.b32.xlu0 %v7036_v47, %s6522_s16 }
 0x6d1   :  { %1871 = vrot.lane.b32.xlu0 %v7036_v47, %s6523_s24 }
 0x6f7   :  { %v1107_v25 = vpop.xlane.xlu0 %1106 }
 0x6f8   :  { %6033 = vrcp.f32 %v1107_v25 }
 0x6fb   :  { %v1110_v43 = vpop.xlane.xlu1 %1109 }
 0x6fc   :  { %6035 = vrcp.f32 %v1110_v43 }
 0x6ff   :  { %v1229_v18 = vpop.xlane.xlu0 %1228 }
 0x700   :  { %6037 = vrcp.f32 %v1229_v18 }
 0x701   :  { %v1232_v20 = vpop.xlane.xlu1 %1231 }
 0x702   :  { %6039 = vrcp.f32 %v1232_v20  ;;  %v6034_v39 = vpop.eup %6033 }
 0x703   :  { %v1113_v32 = vmul.f32 %v6034_v39, %v7180_v21 }
 0x706   :  { %v6036_v57 = vpop.eup %6035 }
 0x707   :  { %v1114_v42 = vmul.f32 %v6036_v57, %v7185_v26  ;;  %v1350_v54 = vpop.xlane.xlu0 %1349 }
 0x708   :  { %6041 = vrcp.f32 %v1350_v54 }
 0x709   :  { %v1353_v58 = vpop.xlane.xlu1 %1352  ;;  %v1115_v50 = vpack.c.bf16 %v1114_v42, %v1113_v32 }
 0x70a   :  { %6043 = vrcp.f32 %v1353_v58  ;;  %v6038_v53 = vpop.eup %6037 }
 0x70b   :  { %5521 = vmatmul.mubr.msk.bf16.vlgmr.msra.gmra.mrb[20].mxu1 %vm925_vm3, %v1115_v50  ;;  %v1235_v21 = vmul.f32 %v6038_v53, %v7190_v35 }
 0x70c   :  { %v6040_v59 = vpop.eup %6039  ;;  %5531 = vmatpush3.bf16.msra.mxu1 %v1239_v37  ;;  %5532 = vmatprep.mubr.msk.bf16.mxu1 %vm6520_vm2, %v6519_v11 }
 0x70d   :  { %v1236_v62 = vmul.f32 %v6040_v59, %v7194_v46  ;;  %5542 = vmatprep.subr.bf16.mxu1 %v6519_v11 }
 0x70f   :  { %v1499_v26 = vpop.xlane.xlu0 %1498  ;;  %v1237_v8 = vpack.c.bf16 %v1236_v62, %v1235_v21 }
 0x710   :  { %6045 = vrcp.f32 %v1499_v26 }
 0x711   :  { %v1502_v1 = vpop.xlane.xlu1 %1501 }
 0x712   :  { %6047 = vrcp.f32 %v1502_v1  ;;  %v6042_v60 = vpop.eup %6041 }
 0x713   :  { %5533 = vmatmul.mubr.msk.bf16.vlgmr.msra.gmra.mrb[24].mxu1 %vm925_vm3, %v1237_v8  ;;  %v1360_v45 = vpop.permute.xlu0 %1359  ;;  %v1356_v35 = vmul.f32 %v6042_v60, %v7200_v3 }
 0x714   :  { %v6044_v10 = vpop.eup %6043  ;;  %5543 = vmatpush3.bf16.msra.mxu1 %v1360_v45  ;;  %5544 = vmatprep.mubr.msk.bf16.mxu1 %vm6520_vm2, %v6519_v11 }
 0x715   :  { %v1357_v46 = vmul.f32 %v6044_v10, %v7204_v9  ;;  %5554 = vmatprep.subr.bf16.mxu1 %v6519_v11 }
 0x717   :  { %v1619_v55 = vpop.xlane.xlu1 %1618  ;;  %v1358_v2 = vpack.c.bf16 %v1357_v46, %v1356_v35 }
 0x71a   :  { %v6046_v13 = vpop.eup %6045 }
 0x71b   :  { %5545 = vmatmul.mubr.msk.bf16.vlgmr.msra.gmra.mrb[28].mxu1 %vm925_vm3, %v1358_v2  ;;  %v1622_v49 = vpop.xlane.xlu1 %1621  ;;  %v1505_v9 = vmul.f32 %v6046_v13, %v7210_v17 }
 0x71c   :  { %v6048_v41 = vpop.eup %6047  ;;  %5555 = vmatpush3.bf16.msra.mxu1 %v7036_v47  ;;  %5556 = vmatprep.mubr.msk.bf16.mxu1 %vm6520_vm2, %v6519_v11  ;;  %6049 = vrcp.f32 %v1622_v49 }
 0x71d   :  { %v1506_v16 = vmul.f32 %v6048_v41, %v7214_v22  ;;  %5566 = vmatprep.subr.bf16.mxu1 %v6519_v11  ;;  %6051 = vrcp.f32 %v1619_v55 }
 0x71f   :  { %v1507_v3 = vpack.c.bf16 %v1506_v16, %v1505_v9 }
 0x721   :  { %v1744_v14 = vpop.xlane.xlu1 %1743 }
 0x722   :  { %6053 = vrcp.f32 %v1744_v14 }
 0x723   :  { %5557 = vmatmul.mubr.msk.bf16.vlgmr.msra.gmra.mrb[32].mxu1 %vm925_vm3, %v1507_v3 }
 0x724   :  { %5568 = vmatprep.mubr.msk.bf16.mxu1 %vm6520_vm2, %v6519_v11 }
 0x726   :  { %v6050_v37 = vpop.eup %6049 }
 0x727   :  { %v1862_v47 = vpop.xlane.xlu1 %1861  ;;  %v6052_v43 = vpop.eup %6051  ;;  %v1626_v22 = vmul.f32 %v6050_v37, %v7223_v48 }
 0x728   :  { %v1625_v18 = vmul.f32 %v6052_v43, %v7219_v44 }
 0x72a   :  { %v1627_v17 = vpack.c.bf16 %v1626_v22, %v1625_v18 }
 0x72b   :  { %v1865_v25 = vpop.xlane.xlu1 %1864 }
 0x72c   :  { %v6054_v44 = vpop.eup %6053 }
 0x72d   :  { %v1748_v32 = vmul.f32 %v6054_v44, %v7229_v6 }
 0x72f   :  { %v1630_v20 = vpop.permute.xlu1 %1629 }
 0x730   :  { %5567 = vmatpush3.bf16.msra.mxu1 %v1630_v20 }
 0x731   :  { %5578 = vmatprep.subr.bf16.mxu1 %v6519_v11 }
 0x733   :  { %5569 = vmatmul.mubr.msk.bf16.vlgmr.msra.gmra.mrb[36].mxu1 %vm925_vm3, %v1627_v17 }
 0x734   :  { %5580 = vmatprep.mubr.msk.bf16.mxu1 %vm6520_vm2, %v6519_v11 }
 0x744   :  { %v1741_v39 = vpop.xlane.xlu0 %1740 }
 0x745   :  { %6055 = vrcp.f32 %v1741_v39  ;;  %v5886_v39 = vld [vmem:[%s8261_s10 + $0x8] sm:$0xff]  }
 0x746   :  { %6057 = vrcp.f32 %v1865_v25  ;;  %v5885_v25 = vld [vmem:[%s8261_s10] sm:$0xff]  }
 0x747   :  { %6059 = vrcp.f32 %v1862_v47  ;;  %5596 = vmatprep.subr.bf16.mxu0 %v5885_v25 }
 0x748   :  { %v1751_v57 = vpop.permute.xlu0 %1750  ;;  %5597 = vmatpush3.bf16.msra.mxu0 %v5885_v25 }
 0x749   :  { %5579 = vmatpush3.bf16.msra.mxu1 %v1751_v57  ;;  %v5887_v57 = vld [vmem:[%s8261_s10 + $0x10] sm:$0xff]   ;;  %5598 = vmatprep.subr.bf16.mxu0 %v5886_v39 }
 0x74a   :  { %5590 = vmatprep.subr.bf16.mxu1 %v6519_v11 }
 0x74c   :  { %v1872_v50 = vpop.permute.xlu0 %1871  ;;  %5599 = vmatpush3.bf16.msra.mxu0 %v5886_v39 }
 0x74d   :  { %5600 = vmatprep.subr.bf16.mxu0 %v5887_v57 }
 0x74f   :  { %v6056_v48 = vpop.eup %6055 }
 0x750   :  { %v1747_v42 = vmul.f32 %v6056_v48, %v7252_v52  ;;  %v6058_v58 = vpop.eup %6057  ;;  %5601 = vmatpush3.bf16.msra.mxu0 %v5887_v57 }
 0x751   :  { %v6060_v53 = vpop.eup %6059  ;;  %v1869_v59 = vmul.f32 %v6058_v58, %v7244_v31 }
 0x752   :  { %v1749_v54 = vpack.c.bf16 %v1748_v32, %v1747_v42  ;;  %v1868_v62 = vmul.f32 %v6060_v53, %v7235_v12  ;;  %v5888_v32 = vld [vmem:[%s8261_s10 + $0x18] sm:$0xff]  }
 0x753   :  { %5602 = vmatprep.subr.bf16.mxu0 %v5888_v32 }
 0x754   :  { %5581 = vmatmul.mubr.msk.bf16.vlgmr.msra.gmra.mrb[40].mxu1 %vm925_vm3, %v1749_v54  ;;  %v1870_v21 = vpack.c.bf16 %v1869_v59, %v1868_v62  ;;  %5603 = vmatpush3.bf16.msra.mxu0 %v5888_v32 }
 0x755   :  { %5591 = vmatpush3.bf16.msra.mxu1 %v1872_v50  ;;  %5592 = vmatprep.mubr.msk.bf16.mxu1 %vm6520_vm2, %v6519_v11 }
 0x75c   :  { %5593 = vmatmul.mubr.msk.bf16.vlgmr.msra.gmra.mrb[44].mxu1 %vm925_vm3, %v1870_v21 }
 0x75d   :  { %2236 = vmatprep.mubr.bf16.mxu1 %v6518_v0 }
 0x76b   :  { %v7300_v6 = vpop.f32.mrb[16].mxu1 }
 0x76c   :  { %v5510_v52 = vpop.f32.mrb[17].mxu1 }
 0x76d   :  { %v7302_v26 = vpop.f32.mrb[18].mxu1 }
 0x76e   :  { %v5511_v1 = vpop.f32.mrb[19].mxu1 }
 0x7de   :  { %v1157_v8 = vpop.f32.mrb[20].mxu1 }
 0x7df   :  { %v5522_v60 = vpop.f32.mrb[21].mxu1 }
 0x7e0   :  { %v1160_v45 = vpop.f32.mrb[22].mxu1 }
 0x7e1   :  { %v5793_v10 = vpack.i.bf16 %v1160_v45, %v1157_v8  ;;  %v5523_v46 = vpop.f32.mrb[23].mxu1 }
 0x7e3   :  { %5794 = vrot.lane.b32.xlu0 %v5793_v10, %s6500_s2 }
 0x7e6   :  { %v1278_v31 = vpop.f32.mrb[24].mxu1 }
 0x7e7   :  { %v5534_v12 = vpop.f32.mrb[25].mxu1 }
 0x7e8   :  { %v1281_v35 = vpop.f32.mrb[26].mxu1 }
 0x7e9   :  { %v5798_v55 = vpack.i.bf16 %v1281_v35, %v1278_v31  ;;  %v5535_v2 = vpop.f32.mrb[27].mxu1 }
 0x7eb   :  { %5799 = vrot.lane.b32.xlu1 %v5798_v55, %s6513_s7 }
 0x7ee   :  { %v1399_v13 = vpop.f32.mrb[28].mxu1 }
 0x7ef   :  { %v5546_v41 = vpop.f32.mrb[29].mxu1 }
 0x7f0   :  { %v1402_v16 = vpop.f32.mrb[30].mxu1 }
 0x7f1   :  { %v5803_v49 = vpack.i.bf16 %v1402_v16, %v1399_v13  ;;  %v5547_v9 = vpop.f32.mrb[31].mxu1 }
 0x7f3   :  { %5804 = vrot.lane.b32.xlu1 %v5803_v49, %s6510_s29 }
 0x7f6   :  { %v1545_v3 = vpop.f32.mrb[32].mxu1 }
 0x7f7   :  { %v5558_v14 = vpop.f32.mrb[33].mxu1 }
 0x7f8   :  { %v1548_v47 = vpop.f32.mrb[34].mxu1 }
 0x7f9   :  { %v5559_v37 = vpop.f32.mrb[35].mxu1 }
 0x806   :  { %v1669_v43 = vpop.f32.mrb[36].mxu1 }
 0x807   :  { %v5570_v22 = vpop.f32.mrb[37].mxu1 }
 0x808   :  { %v1672_v18 = vpop.f32.mrb[38].mxu1 }
 0x809   :  { %v5808_v20 = vpack.i.bf16 %v1672_v18, %v1669_v43  ;;  %v5571_v17 = vpop.f32.mrb[39].mxu1 }
 0x80b   :  { %5809 = vrot.lane.b32.xlu0 %v5808_v20, %s6500_s2 }
 0x827   :  { %v1790_v44 = vpop.f32.mrb[40].mxu1 }
 0x828   :  { %v5582_v48 = vpop.f32.mrb[41].mxu1 }
 0x829   :  { %v1793_v42 = vpop.f32.mrb[42].mxu1 }
 0x82a   :  { %v5813_v54 = vpack.i.bf16 %v1793_v42, %v1790_v44  ;;  %v5583_v58 = vpop.f32.mrb[43].mxu1  ;;  %v7339_v42 = vsub.s32 1, %v6920_v61 }
 0x82c   :  { %5814 = vrot.lane.b32.xlu0 %v5813_v54, %s6513_s7  ;;  %v7341_v54 = vld [vmem:[#allocation9] sm:$0x7] }
 0x82f   :  { %v1911_v50 = vpop.f32.mrb[44].mxu1 }
 0x830   :  { %v5594_v53 = vpop.f32.mrb[45].mxu1 }
 0x831   :  { %v1914_v59 = vpop.f32.mrb[46].mxu1 }
 0x832   :  { %v5818_v62 = vpack.i.bf16 %v1914_v59, %v1911_v50  ;;  %v5595_v21 = vpop.f32.mrb[47].mxu1 }
 0x834   :  { %5819 = vrot.lane.b32.xlu1 %v5818_v62, %s6510_s29 }
 0x855   :  { %v5795_v52 = vpop.permute.xlu0 %5794 }
 0x856   :  { %v5797_v8 = vunpack.i.h.bf16 %v5795_v52  ;;  %v5796_v60 = vunpack.i.l.bf16 %v5795_v52 }
 0x858   :  { %v1431_v31 = vsel %vm925_vm3, %v7302_v26, %v5797_v8  ;;  %v1430_v12 = vsel %vm925_vm3, %v7300_v6, %v5796_v60 }
 0x85d   :  { %v5800_v1 = vpop.permute.xlu1 %5799 }
 0x85e   :  { %v5802_v45 = vunpack.i.h.bf16 %v5800_v1  ;;  %v5801_v10 = vunpack.i.l.bf16 %v5800_v1 }
 0x860   :  { %v1433_v2 = vsel %vm1432_vm4, %v1430_v12, %v5801_v10  ;;  %v1434_v13 = vsel %vm1432_vm4, %v1431_v31, %v5802_v45 }
 0x865   :  { %v5805_v46 = vpop.permute.xlu1 %5804 }
 0x866   :  { %v5807_v35 = vunpack.i.h.bf16 %v5805_v46  ;;  %v5806_v55 = vunpack.i.l.bf16 %v5805_v46 }
 0x868   :  { %v1436_v41 = vsel %vm1435_vm5, %v1433_v2, %v5806_v55  ;;  %v1437_v16 = vsel %vm1435_vm5, %v1434_v13, %v5807_v35 }
 0x869   :  { %v1948_v49 = vpack.c.bf16 %v1437_v16, %v1436_v41 }
 0x86b   :  { %5604 = vmatprep.mubr.msk.bf16.mxu0 %vm456_vm1, %v1948_v49 }
 0x87d   :  { %v5810_v9 = vpop.permute.xlu0 %5809 }
 0x87e   :  { %v5812_v37 = vunpack.i.h.bf16 %v5810_v9  ;;  %v5811_v26 = vunpack.i.l.bf16 %v5810_v9 }
 0x880   :  { %v1943_v22 = vsel %vm925_vm3, %v1548_v47, %v5812_v37  ;;  %v1942_v18 = vsel %vm925_vm3, %v1545_v3, %v5811_v26  ;;  %v384_v3 = vrot.slane %v7341_v54, %v7339_v42 }
 0x882   :  { %v500_v47 = vadd.f32 %v6889_v34, %v384_v3  ;;  %v510_v58 = vadd.f32 %v6893_v38, %v384_v3  ;;  %v504_v59 = vadd.f32 %v6891_v36, %v384_v3  ;;  %v514_v8 = vadd.f32 %v6895_v40, %v384_v3  ;;  %v5898_v3 = vld [vmem:[%s8263_s12 + $0x30] ss:$8 sps:$4 sm:$0xff]  }
 0x89e   :  { %v5815_v14 = vpop.permute.xlu0 %5814 }
 0x89f   :  { %v5817_v25 = vunpack.i.h.bf16 %v5815_v14  ;;  %v5816_v43 = vunpack.i.l.bf16 %v5815_v14 }
 0x8a1   :  { %v1944_v39 = vsel %vm1432_vm4, %v1942_v18, %v5816_v43  ;;  %v1945_v57 = vsel %vm1432_vm4, %v1943_v22, %v5817_v25 }
 0x8a6   :  { %v5820_v6 = vpop.permute.xlu1 %5819 }
 0x8a7   :  { %v5822_v20 = vunpack.i.h.bf16 %v5820_v6  ;;  %v5821_v17 = vunpack.i.l.bf16 %v5820_v6 }
 0x8a9   :  { %v1946_v44 = vsel %vm1435_vm5, %v1944_v39, %v5821_v17  ;;  %v1947_v48 = vsel %vm1435_vm5, %v1945_v57, %v5822_v20  ;;  %v5891_v20 = vld [vmem:[%s8263_s12 + $0x4] ss:$8 sps:$4 sm:$0xff]   ;;  %v5889_v17 = vld [vmem:[%s8263_s12] ss:$8 sps:$4 sm:$0xff]   ;;  %v5894_v39 = vld [vmem:[%s8263_s12 + $0x14] ss:$8 sps:$4 sm:$0xff]  }
 0x8aa   :  { %v1949_v32 = vpack.c.bf16 %v1947_v48, %v1946_v44  ;;  %2204 = vmatprep.subr.bf16.mxu1 %v5891_v20  ;;  %v5892_v57 = vld [vmem:[%s8263_s12 + $0x10] ss:$8 sps:$4 sm:$0xff]   ;;  %v5897_v44 = vld [vmem:[%s8263_s12 + $0x24] ss:$8 sps:$4 sm:$0xff]   ;;  %v5895_v48 = vld [vmem:[%s8263_s12 + $0x20] ss:$8 sps:$4 sm:$0xff]  }
 0x8ab   :  { %2205 = vmatpush1.bf16.msra.mxu1 %v5889_v17 }
 0x8ac   :  { %5605 = vmatmul.mubr.msk.bf16.vlgmr.msra.gmra.mrb[44].mxu0 %vm456_vm1, %v1949_v32  ;;  %2206 = vmatprep.subr.bf16.mxu1 %v5894_v39  ;;  %v5900_v32 = vld [vmem:[%s8263_s12 + $0x34] ss:$8 sps:$4 sm:$0xff]  }
 0x8af   :  { %2207 = vmatpush1.bf16.msra.mxu1 %v5892_v57 }
 0x8b0   :  { %2208 = vmatprep.subr.bf16.mxu1 %v5897_v44 }
 0x8b3   :  { %2209 = vmatpush1.bf16.msra.mxu1 %v5895_v48 }
 0x8b4   :  { %2210 = vmatprep.subr.bf16.mxu1 %v5900_v32 }
 0x8b7   :  { %2211 = vmatpush1.bf16.msra.mxu1 %v5898_v3 }
 0x97f   :  { %v5606_v50 = vpop.f32.mrb[44].mxu0 }
 0x980   :  { %v2022_v53 = vpop.f32.mrb[45].mxu0  ;;  %v2039_v62 = vmul.f32 %v5606_v50, %v510_v58 }
 0x981   :  { %v2037_v21 = vmul.f32 %v2022_v53, %v500_v47  ;;  %v5607_v52 = vpop.f32.mrb[46].mxu0 }
 0x982   :  { %v2025_v1 = vpop.f32.mrb[47].mxu0  ;;  %v7353_v10 = vadd.f32 %v2039_v62, %v6881_v29  ;;  %v2040_v34 = vmul.f32 %v5607_v52, %v514_v8 }
 0x983   :  { %v7350_v60 = vadd.f32 %v2037_v21, %v6873_v23  ;;  %v2038_v45 = vmul.f32 %v2025_v1, %v504_v59 }
 0x984   :  { %v7363_v40 = vadd.f32 %v2040_v34, %v6879_v28  ;;  %v2052_v23 = vsel %vm456_vm1, %v7353_v10, 0.0 }
 0x985   :  { %v7356_v38 = vadd.f32 %v2038_v45, %v6875_v24  ;;  %v2046_v36 = vsel %vm456_vm1, %v7350_v60, 0.0 }
 0x986   :  { %2047 = vadd.xlane.f32.xlu0 %v2046_v36  ;;  %v2055_v29 = vsel %vm456_vm1, %v7363_v40, 0.0  ;;  %v387_v36 = vsub.s32 2, %v6920_v61 }
 0x987   :  { %v2049_v46 = vsel %vm456_vm1, %v7356_v38, 0.0 }
 0x988   :  { %2050 = vadd.xlane.f32.xlu1 %v2049_v46 }
 0x98a   :  { %2053 = vadd.xlane.f32.xlu0 %v2052_v23  ;;  %v388_v23 = vrot.slane %v7341_v54, %v387_v36 }
 0x98e   :  { %2056 = vadd.xlane.f32.xlu0 %v2055_v29 }
 0xa13   :  { %v2048_v24 = vpop.xlane.xlu0 %2047 }
 0xa14   :  { %v2058_v31 = vmul.f32 0.015625, %v2048_v24  ;;  %v5088_v24 = vld [vmem:[#allocation10] ss:$0 sm:$0xff] }
 0xa15   :  { %v2051_v35 = vpop.xlane.xlu1 %2050 }
 0xa16   :  { %v2062_v12 = vsub.f32 %v7350_v60, %v2058_v31  ;;  %v2059_v41 = vmul.f32 0.015625, %v2051_v35  ;;  %v7414_v31 = vadd.f32 %v7015_v5, %v388_v23 }
 0xa17   :  { %v2054_v55 = vpop.xlane.xlu0 %2053 }
 0xa18   :  { %v2060_v2 = vmul.f32 0.015625, %v2054_v55  ;;  %v2066_v13 = vmul.f32 %v2062_v12, %v2062_v12  ;;  %v2063_v37 = vsub.f32 %v7356_v38, %v2059_v41 }
 0xa1a   :  { %v7371_v28 = vsub.f32 %v7353_v10, %v2060_v2  ;;  %v2070_v16 = vsel %vm456_vm1, %v2066_v13, 0.0  ;;  %v2067_v22 = vmul.f32 %v2063_v37, %v2063_v37  ;;  %v7417_v2 = vadd.f32 %v7019_v7, %v388_v23 }
 0xa1b   :  { %2071 = vadd.xlane.f32.xlu0 %v2070_v16  ;;  %v2057_v49 = vpop.xlane.xlu0 %2056 }
 0xa1c   :  { %v2061_v9 = vmul.f32 0.015625, %v2057_v49  ;;  %v2068_v14 = vmul.f32 %v7371_v28, %v7371_v28  ;;  %v2073_v18 = vsel %vm456_vm1, %v2067_v22, 0.0  ;;  %v2108_v49 = vadd.f32 1.0, %v7414_v31 }
 0xa1d   :  { %v2109_v54 = vadd.f32 1.0, %v7417_v2 }
 0xa1e   :  { %v2065_v26 = vsub.f32 %v7363_v40, %v2061_v9  ;;  %v2076_v25 = vsel %vm456_vm1, %v2068_v14, 0.0 }
 0xa1f   :  { %2077 = vadd.xlane.f32.xlu0 %v2076_v25  ;;  %v7421_v25 = vadd.f32 %v7017_v27, %v388_v23 }
 0xa20   :  { %v2069_v43 = vmul.f32 %v2065_v26, %v2065_v26 }
 0xa21   :  { %v2111_v17 = vadd.f32 1.0, %v7421_v25 }
 0xa22   :  { %v2079_v6 = vsel %vm456_vm1, %v2069_v43, 0.0 }
 0xa23   :  { %2080 = vadd.xlane.f32.xlu1 %v2079_v6  ;;  %v7426_v6 = vadd.f32 %v7013_v4, %v388_v23  ;;  %v5914_v23 = vld [vmem:[%s8265_s14 + $0x30] sm:$0xff]  }
 0xa25   :  { %v2110_v27 = vadd.f32 1.0, %v7426_v6 }
 0xa27   :  { %2074 = vadd.xlane.f32.xlu1 %v2073_v18 }
 0xa35   :  { %2120 = vrot.lane.b32.xlu0 %v500_v47, %s6504_s15 }
 0xa38   :  { %2122 = vrot.lane.b32.xlu1 %v504_v59, %s6504_s15 }
 0xa3c   :  { %2124 = vrot.lane.b32.xlu1 %v510_v58, %s6504_s15 }
 0xa40   :  { %2126 = vrot.lane.b32.xlu1 %v514_v8, %s6504_s15 }
 0xaa8   :  { %v2072_v47 = vpop.xlane.xlu0 %2071 }
 0xaa9   :  { %v2082_v58 = vmul.f32 0.015625, %v2072_v47  ;;  %v5901_v47 = vld [vmem:[%s8265_s14 + $0x40] sm:$0xff]  }
 0xaaa   :  { %5350 = vmatprep.subr.bf16.mxu0 %v5901_v47 }
 0xaab   :  { %v2086_v50 = vadd.f32 1e-05, %v2082_v58  ;;  %v5902_v58 = vld [vmem:[%s8265_s14] sm:$0xff]  }
 0xaac   :  { %v2078_v53 = vpop.xlane.xlu0 %2077  ;;  %5351 = vmatpush3.bf16.msra.mxu0 %v5902_v58 }
 0xaad   :  { %v2084_v59 = vmul.f32 0.015625, %v2078_v53  ;;  %6061 = vrsqrt.f32 %v2086_v50  ;;  %v5903_v50 = vld [vmem:[%s8265_s14 + $0x48] sm:$0xff]  }
 0xaae   :  { %v5904_v53 = vld [vmem:[%s8265_s14 + $0x8] sm:$0xff]   ;;  %5352 = vmatprep.subr.bf16.mxu0 %v5903_v50 }
 0xaaf   :  { %v2088_v1 = vadd.f32 1e-05, %v2084_v59  ;;  %v5905_v59 = vld [vmem:[%s8265_s14 + $0x50] sm:$0xff]  }
 0xab0   :  { %v2081_v62 = vpop.xlane.xlu1 %2080  ;;  %v2121_v18 = vpop.permute.xlu0 %2120  ;;  %5353 = vmatpush3.bf16.msra.mxu0 %v5904_v53 }
 0xab1   :  { %v2085_v21 = vmul.f32 0.015625, %v2081_v62  ;;  %v5906_v62 = vld [vmem:[%s8265_s14 + $0x10] sm:$0xff]   ;;  %5354 = vmatprep.subr.bf16.mxu0 %v5905_v59 }
 0xab3   :  { %v2089_v52 = vadd.f32 1e-05, %v2085_v21  ;;  %v5907_v21 = vld [vmem:[%s8265_s14 + $0x58] sm:$0xff]  }
 0xab4   :  { %v2075_v8 = vpop.xlane.xlu1 %2074  ;;  %5355 = vmatpush3.bf16.msra.mxu0 %v5906_v62 }
 0xab5   :  { %v2083_v45 = vmul.f32 0.015625, %v2075_v8  ;;  %6063 = vrsqrt.f32 %v2089_v52  ;;  %v5908_v52 = vld [vmem:[%s8265_s14 + $0x18] sm:$0xff]   ;;  %5356 = vmatprep.subr.bf16.mxu0 %v5907_v21  ;;  %v5910_v8 = vld [vmem:[%s8265_s14 + $0x20] sm:$0xff]  }
 0xab6   :  { %6065 = vrsqrt.f32 %v2088_v1  ;;  %v5909_v1 = vld [vmem:[%s8265_s14 + $0x60] sm:$0xff]  }
 0xab7   :  { %v2087_v34 = vadd.f32 1e-05, %v2083_v45  ;;  %v6062_v46 = vpop.eup %6061  ;;  %v5911_v45 = vld [vmem:[%s8265_s14 + $0x68] sm:$0xff]  }
 0xab8   :  { %v2094_v29 = vmul.f32 %v6062_v46, %v2062_v12  ;;  %v2123_v16 = vpop.permute.xlu1 %2122  ;;  %5357 = vmatpush3.bf16.msra.mxu0 %v5908_v52  ;;  %v5913_v46 = vld [vmem:[%s8265_s14 + $0x70] sm:$0xff]  }
 0xab9   :  { %6067 = vrsqrt.f32 %v2087_v34  ;;  %5358 = vmatprep.subr.bf16.mxu0 %v5909_v1  ;;  %v5912_v34 = vld [vmem:[%s8265_s14 + $0x28] sm:$0xff]  }
 0xaba   :  { %v2104_v13 = vmul.f32 %v5088_v24, %v2094_v29  ;;  %v5915_v29 = vld [vmem:[%s8265_s14 + $0x78] sm:$0xff]  }
 0xabc   :  { %v2112_v12 = vmul.f32 %v2108_v49, %v2104_v13  ;;  %v2125_v20 = vpop.permute.xlu1 %2124  ;;  %5359 = vmatpush3.bf16.msra.mxu0 %v5910_v8 }
 0xabd   :  { %5360 = vmatprep.subr.bf16.mxu0 %v5911_v45 }
 0xabf   :  { %v6064_v35 = vpop.eup %6063 }
 0xac0   :  { %v6066_v55 = vpop.eup %6065  ;;  %v2097_v14 = vmul.f32 %v6064_v35, %v2065_v26  ;;  %5361 = vmatpush3.bf16.msra.mxu0 %v5912_v34  ;;  %v2146_v35 = vld [vmem:[#allocation12] sm:$0x3] }
 0xac1   :  { %v2096_v43 = vmul.f32 %v6066_v55, %v7371_v28  ;;  %v2127_v28 = vpop.permute.xlu1 %2126  ;;  %5362 = vmatprep.subr.bf16.mxu0 %v5913_v46  ;;  %v2151_v55 = vrot.slane %v2146_v35, %v6924_v63  ;;  %v2155_v13 = vrot.slane %v2146_v35, %v7339_v42 }
 0xac2   :  { %v2107_v22 = vmul.f32 %v5088_v24, %v2097_v14 }
 0xac3   :  { %v6068_v41 = vpop.eup %6067  ;;  %v2106_v39 = vmul.f32 %v5088_v24, %v2096_v43 }
 0xac4   :  { %v2095_v9 = vmul.f32 %v6068_v41, %v2063_v37  ;;  %v2132_v37 = vadd.f32 %v2121_v18, %v2112_v12  ;;  %v2115_v44 = vmul.f32 %v2111_v17, %v2107_v22  ;;  %5363 = vmatpush3.bf16.msra.mxu0 %v5914_v23 }
 0xac5   :  { %v2114_v48 = vmul.f32 %v2110_v27, %v2106_v39  ;;  %5364 = vmatprep.subr.bf16.mxu0 %v5915_v29 }
 0xac6   :  { %v2105_v5 = vmul.f32 %v5088_v24, %v2095_v9  ;;  %v2135_v4 = vadd.f32 %v2127_v28, %v2115_v44  ;;  %v5916_v24 = vld [vmem:[%s8265_s14 + $0x38] sm:$0xff]  }
 0xac7   :  { %v2134_v32 = vadd.f32 %v2125_v20, %v2114_v48 }
 0xac8   :  { %v2113_v7 = vmul.f32 %v2109_v54, %v2105_v5  ;;  %5365 = vmatpush3.bf16.msra.mxu0 %v5916_v24 }
 0xac9   :  { %v2137_v3 = vpack.c.bf16 %v2135_v4, %v2134_v32 }
 0xaca   :  { %v2133_v26 = vadd.f32 %v2123_v16, %v2113_v7 }
 0xacc   :  { %v2136_v57 = vpack.c.bf16 %v2133_v26, %v2132_v37 }
 0xace   :  { %5097 = vmatmul.mubr.msk.bf16.vlgmr.msra.gmra.mrb[48].mxu1 %vm456_vm1, %v2136_v57 }
 0xacf   :  { %2246 = vmatprep.mubr.bf16.mxu1 %v6518_v0 }
 0xad6   :  { %5098 = vmatmul.mubr.msk.bf16.gmra.mrb[52].mxu1 %vm456_vm1, %v2137_v3 }
 0xad7   :  { %2688 = vmatprep.mubr.bf16.mxu1 %v6518_v0 }
 0xba1   :  { %v2238_v41 = vpop.f32.mrb[48].mxu1 }
 0xba2   :  { %v7484_v16 = vadd.f32 %v2238_v41, %v2151_v55  ;;  %v2240_v49 = vpop.f32.mrb[49].mxu1 }
 0xba3   :  { %v7486_v9 = vadd.f32 %v2240_v49, %v2155_v13  ;;  %v2242_v14 = vpop.f32.mrb[50].mxu1 }
 0xba4   :  { %v2265_v54 = vmul.f32 0.044715, %v7484_v16  ;;  %v7489_v12 = vadd.f32 %v2242_v14, %v2151_v55  ;;  %v2244_v5 = vpop.f32.mrb[51].mxu1 }
 0xba5   :  { %v2266_v43 = vmul.f32 0.044715, %v7486_v9  ;;  %v7492_v7 = vadd.f32 %v2244_v5, %v2155_v13 }
 0xba6   :  { %v2273_v22 = vmul.f32 %v2265_v54, %v7484_v16  ;;  %v2267_v18 = vmul.f32 0.044715, %v7489_v12 }
 0xba7   :  { %v2274_v20 = vmul.f32 %v2266_v43, %v7486_v9  ;;  %v2268_v17 = vmul.f32 0.044715, %v7492_v7 }
 0xba8   :  { %v2281_v37 = vmul.f32 %v2273_v22, %v7484_v16  ;;  %v2275_v26 = vmul.f32 %v2267_v18, %v7489_v12 }
 0xba9   :  { %v2282_v39 = vmul.f32 %v2274_v20, %v7486_v9  ;;  %v2276_v27 = vmul.f32 %v2268_v17, %v7492_v7  ;;  %v2248_v57 = vpop.f32.mrb[52].mxu1 }
 0xbaa   :  { %v2289_v44 = vadd.f32 %v2281_v37, %v7484_v16  ;;  %v2283_v48 = vmul.f32 %v2275_v26, %v7489_v12  ;;  %v7504_v28 = vadd.f32 %v2248_v57, %v2151_v55  ;;  %v2250_v4 = vpop.f32.mrb[53].mxu1 }
 0xbab   :  { %v2284_v32 = vmul.f32 %v2276_v27, %v7492_v7  ;;  %v7507_v3 = vadd.f32 %v2250_v4, %v2155_v13  ;;  %v2252_v47 = vpop.f32.mrb[54].mxu1  ;;  %v2290_v58 = vadd.f32 %v2282_v39, %v7486_v9 }
 0xbac   :  { %v2297_v50 = vmul.f32 0.7978846, %v2289_v44  ;;  %v2291_v53 = vadd.f32 %v2283_v48, %v7489_v12  ;;  %v2269_v59 = vmul.f32 0.044715, %v7504_v28  ;;  %v2253_v62 = vadd.f32 %v2252_v47, %v2151_v55  ;;  %v2254_v21 = vpop.f32.mrb[55].mxu1 }
 0xbad   :  { %v2270_v52 = vmul.f32 0.044715, %v7507_v3  ;;  %v2255_v1 = vadd.f32 %v2254_v21, %v2155_v13  ;;  %v2292_v8 = vadd.f32 %v2284_v32, %v7492_v7  ;;  %v2298_v45 = vmul.f32 0.7978846, %v2290_v58 }
 0xbae   :  { %6069 = vtanh.f32 %v2297_v50  ;;  %v2299_v34 = vmul.f32 0.7978846, %v2291_v53  ;;  %v2277_v46 = vmul.f32 %v2269_v59, %v7504_v28  ;;  %v2271_v23 = vmul.f32 0.044715, %v2253_v62 }
 0xbaf   :  { %v2278_v29 = vmul.f32 %v2270_v52, %v7507_v3  ;;  %v2272_v24 = vmul.f32 0.044715, %v2255_v1  ;;  %v2300_v35 = vmul.f32 0.7978846, %v2292_v8  ;;  %6071 = vtanh.f32 %v2298_v45 }
 0xbb0   :  { %6073 = vtanh.f32 %v2299_v34  ;;  %v2285_v55 = vmul.f32 %v2277_v46, %v7504_v28  ;;  %v2279_v41 = vmul.f32 %v2271_v23, %v2253_v62  ;;  %v2257_v32 = vmul.f32 0.5, %v7484_v16 }
 0xbb1   :  { %v2286_v49 = vmul.f32 %v2278_v29, %v7507_v3  ;;  %v2280_v13 = vmul.f32 %v2272_v24, %v2255_v1  ;;  %6075 = vtanh.f32 %v2300_v35  ;;  %v2259_v47 = vmul.f32 0.5, %v7489_v12 }
 0xbb2   :  { %v2287_v14 = vmul.f32 %v2279_v41, %v2253_v62  ;;  %v2293_v54 = vadd.f32 %v2285_v55, %v7504_v28  ;;  %v2258_v50 = vmul.f32 0.5, %v7486_v9  ;;  %v2260_v53 = vmul.f32 0.5, %v7492_v7 }
 0xbb3   :  { %v2288_v5 = vmul.f32 %v2280_v13, %v2255_v1  ;;  %v2294_v43 = vadd.f32 %v2286_v49, %v7507_v3  ;;  %v2261_v12 = vmul.f32 0.5, %v7504_v28  ;;  %v2263_v9 = vmul.f32 0.5, %v2253_v62 }
 0xbb4   :  { %v2295_v22 = vadd.f32 %v2287_v14, %v2253_v62  ;;  %v2301_v18 = vmul.f32 0.7978846, %v2293_v54  ;;  %v2262_v7 = vmul.f32 0.5, %v7507_v3  ;;  %v2264_v49 = vmul.f32 0.5, %v2255_v1 }
 0xbb5   :  { %v2296_v20 = vadd.f32 %v2288_v5, %v2255_v1  ;;  %v2302_v17 = vmul.f32 0.7978846, %v2294_v43  ;;  %v5917_v1 = vld [vmem:[%s8257_s6 + $0x60] ss:$12 sps:$4 sm:$0xff]  }
 0xbb6   :  { %v2303_v37 = vmul.f32 0.7978846, %v2295_v22  ;;  %6077 = vtanh.f32 %v2301_v18 }
 0xbb7   :  { %v2304_v26 = vmul.f32 0.7978846, %v2296_v20  ;;  %6079 = vtanh.f32 %v2302_v17 }
 0xbb8   :  { %v6070_v39 = vpop.eup %6069  ;;  %6081 = vtanh.f32 %v2303_v37  ;;  %v5099_v37 = vld [vmem:[#allocation13] ss:$0 sm:$0xff] }
 0xbb9   :  { %v6072_v27 = vpop.eup %6071  ;;  %v2313_v57 = vadd.f32 1.0, %v6070_v39  ;;  %6083 = vtanh.f32 %v2304_v26 }
 0xbba   :  { %v6074_v44 = vpop.eup %6073  ;;  %v2314_v48 = vadd.f32 1.0, %v6072_v27  ;;  %v5919_v27 = vld [vmem:[%s8257_s6 + $0x64] ss:$12 sps:$4 sm:$0xff]  }
 0xbbb   :  { %v6076_v4 = vpop.eup %6075  ;;  %v2315_v58 = vadd.f32 1.0, %v6074_v44  ;;  %v2321_v21 = vmul.f32 %v2313_v57, %v2257_v32  ;;  %v5922_v44 = vld [vmem:[%s8257_s6 + $0x7c] ss:$12 sps:$4 sm:$0xff]   ;;  %2656 = vmatprep.subr.bf16.mxu1 %v5919_v27 }
 0xbbc   :  { %v2316_v59 = vadd.f32 1.0, %v6076_v4  ;;  %v2322_v8 = vmul.f32 %v2314_v48, %v2258_v50  ;;  %2657 = vmatpush1.bf16.msra.mxu1 %v5917_v1  ;;  %v5920_v4 = vld [vmem:[%s8257_s6 + $0x78] ss:$12 sps:$4 sm:$0xff]  }
 0xbbd   :  { %v2323_v52 = vmul.f32 %v2315_v58, %v2259_v47  ;;  %2658 = vmatprep.subr.bf16.mxu1 %v5922_v44  ;;  %v5925_v47 = vld [vmem:[%s8257_s6 + $0x94] ss:$12 sps:$4 sm:$0xff]  }
 0xbbe   :  { %v2324_v45 = vmul.f32 %v2316_v59, %v2260_v53 }
 0xbbf   :  { %v2329_v34 = vpack.c.bf16 %v2323_v52, %v2321_v21  ;;  %v5923_v52 = vld [vmem:[%s8257_s6 + $0x90] ss:$12 sps:$4 sm:$0xff]  }
 0xbc0   :  { %v6078_v46 = vpop.eup %6077  ;;  %v2330_v23 = vpack.c.bf16 %v2324_v45, %v2322_v8  ;;  %2659 = vmatpush1.bf16.msra.mxu1 %v5920_v4  ;;  %v5928_v8 = vld [vmem:[%s8257_s6 + $0xac] ss:$12 sps:$4 sm:$0xff]  }
 0xbc1   :  { %v6080_v29 = vpop.eup %6079  ;;  %v2317_v24 = vadd.f32 1.0, %v6078_v46  ;;  %2660 = vmatprep.subr.bf16.mxu1 %v5925_v47  ;;  %v2575_v47 = vld [vmem:[#allocation9 + $0x3] sm:$0x7] }
 0xbc2   :  { %v6082_v35 = vpop.eup %6081  ;;  %2500 = vmatprep.mubr.bf16.mxu0 %v2330_v23  ;;  %v2318_v16 = vadd.f32 1.0, %v6080_v29 }
 0xbc3   :  { %v6084_v55 = vpop.eup %6083  ;;  %2501 = vmatmul.mubr.bf16.vlgmr.msra.gmra.mrb[48].mxu0 %v2329_v34  ;;  %v2319_v41 = vadd.f32 1.0, %v6082_v35  ;;  %v2325_v14 = vmul.f32 %v2317_v24, %v2261_v12  ;;  %v5926_v34 = vld [vmem:[%s8257_s6 + $0xa8] ss:$12 sps:$4 sm:$0xff]  }
 0xbc4   :  { %v2320_v13 = vadd.f32 1.0, %v6084_v55  ;;  %v2326_v5 = vmul.f32 %v2318_v16, %v2262_v7  ;;  %2661 = vmatpush1.bf16.msra.mxu1 %v5923_v52 }
 0xbc5   :  { %v2327_v54 = vmul.f32 %v2319_v41, %v2263_v9  ;;  %2662 = vmatprep.subr.bf16.mxu1 %v5928_v8 }
 0xbc6   :  { %v2328_v43 = vmul.f32 %v2320_v13, %v2264_v49 }
 0xbc7   :  { %v2331_v22 = vpack.c.bf16 %v2327_v54, %v2325_v14 }
 0xbc8   :  { %v2332_v18 = vpack.c.bf16 %v2328_v43, %v2326_v5  ;;  %2663 = vmatpush1.bf16.msra.mxu1 %v5926_v34  ;;  %v5929_v34 = vld [vmem:[%s8257_s6 + $0x68] ss:$12 sps:$4 sm:$0xff]  }
 0xbc9   :  { %5608 = vmatprep.subr.bf16.mxu1 %v5929_v34 }
 0xbca   :  { %2508 = vmatprep.mubr.bf16.mxu0 %v2332_v18 }
 0xbcb   :  { %2509 = vmatmul.mubr.bf16.gmra.mrb[52].mxu0 %v2331_v22  ;;  %5144 = vmatmul.mubr.msk.bf16.vlgmr.msra.gmra.mrb[56].mxu1 %vm456_vm1, %v6852_v15 }
 0xbcc   :  { %2971 = vmatprep.mubr.bf16.mxu0 %v6518_v0  ;;  %2698 = vmatprep.mubr.bf16.mxu1 %v6518_v0 }
 0xbcd   :  { %5609 = vmatpush3.bf16.msra.mxu1 %v5929_v34 }
 0xbd3   :  { %5145 = vmatmul.mubr.msk.bf16.gmra.mrb[60].mxu1 %vm456_vm1, %v6868_v19 }
 0xbd4   :  { %5616 = vmatprep.mubr.msk.bf16.mxu1 %vm456_vm1, %v6852_v15 }
 0xc96   :  { %v5366_v20 = vpop.f32.mrb[48].mxu0 }
 0xc97   :  { %v5367_v17 = vpop.f32.mrb[49].mxu0 }
 0xc98   :  { %v5368_v28 = vadd.f32 %v5367_v17, %v5366_v20  ;;  %v5369_v62 = vpop.f32.mrb[50].mxu0 }
 0xc99   :  { %v5370_v26 = vpop.f32.mrb[51].mxu0 }
 0xc9a   :  { %v5371_v39 = vadd.f32 %v5370_v26, %v5369_v62  ;;  %v2503_v3 = vadd.f32 %v5368_v28, %v5099_v37 }
 0xc9c   :  { %2521 = vrot.lane.b32.xlu0 %v2503_v3, %s6504_s15  ;;  %v2506_v57 = vadd.f32 %v5371_v39, %v5099_v37 }
 0xc9e   :  { %2523 = vrot.lane.b32.xlu1 %v2506_v57, %s6504_s15  ;;  %v5372_v48 = vpop.f32.mrb[52].mxu0  ;;  %v2690_v54 = vpop.f32.mrb[56].mxu1 }
 0xc9f   :  { %v5373_v32 = vpop.f32.mrb[53].mxu0  ;;  %v7590_v5 = vpop.f32.mrb[57].mxu1 }
 0xca0   :  { %v5374_v58 = vadd.f32 %v5373_v32, %v5372_v48  ;;  %v5375_v50 = vpop.f32.mrb[54].mxu0  ;;  %v2694_v43 = vpop.f32.mrb[58].mxu1 }
 0xca1   :  { %v5376_v53 = vpop.f32.mrb[55].mxu0  ;;  %v7592_v22 = vpop.f32.mrb[59].mxu1 }
 0xca2   :  { %v5377_v59 = vadd.f32 %v5376_v53, %v5375_v50  ;;  %v2511_v21 = vadd.f32 %v5374_v58, %v5099_v37  ;;  %v2580_v50 = vrot.slane %v2575_v47, %v6924_v63 }
 0xca4   :  { %2525 = vrot.lane.b32.xlu0 %v2511_v21, %s6504_s15  ;;  %v2514_v45 = vadd.f32 %v5377_v59, %v5099_v37  ;;  %v7619_v53 = vadd.f32 %v2694_v43, %v2580_v50  ;;  %v7627_v8 = vadd.f32 %v2690_v54, %v2580_v50 }
 0xca6   :  { %2527 = vrot.lane.b32.xlu1 %v2514_v45, %s6504_s15  ;;  %v2823_v21 = vadd.f32 1.0, %v7619_v53  ;;  %v2822_v45 = vadd.f32 1.0, %v7627_v8 }
 0xd0e   :  { %v2522_v46 = vpop.permute.xlu0 %2521 }
 0xd0f   :  { %v2533_v23 = vmul.f32 %v2522_v46, %v7414_v31  ;;  %v5932_v46 = vld [vmem:[%s8260_s9 + $0x64] ss:$12 sps:$4 sm:$0xff]  }
 0xd10   :  { %v2524_v29 = vpop.permute.xlu1 %2523  ;;  %2939 = vmatprep.subr.bf16.mxu0 %v5932_v46 }
 0xd11   :  { %v2534_v24 = vmul.f32 %v2524_v29, %v7417_v2  ;;  %2541 = vrot.lane.b32.xlu0 %v2533_v23, %s6504_s15  ;;  %v5930_v23 = vld [vmem:[%s8260_s9 + $0x60] ss:$12 sps:$4 sm:$0xff]  }
 0xd12   :  { %2940 = vmatpush1.bf16.msra.mxu0 %v5930_v23  ;;  %v5933_v29 = vld [vmem:[%s8257_s6 + $0x80] ss:$12 sps:$4 sm:$0xff]  }
 0xd13   :  { %2543 = vrot.lane.b32.xlu1 %v2534_v24, %s6504_s15  ;;  %v5936_v24 = vld [vmem:[%s8260_s9 + $0x7c] ss:$12 sps:$4 sm:$0xff]   ;;  %5610 = vmatprep.subr.bf16.mxu1 %v5933_v29 }
 0xd14   :  { %5611 = vmatpush3.bf16.msra.mxu1 %v5933_v29  ;;  %2941 = vmatprep.subr.bf16.mxu0 %v5936_v24 }
 0xd16   :  { %v2526_v35 = vpop.permute.xlu0 %2525 }
 0xd17   :  { %v2535_v16 = vmul.f32 %v2526_v35, %v7426_v6  ;;  %v5934_v35 = vld [vmem:[%s8260_s9 + $0x78] ss:$12 sps:$4 sm:$0xff]  }
 0xd18   :  { %v2528_v55 = vpop.permute.xlu1 %2527  ;;  %2942 = vmatpush1.bf16.msra.mxu0 %v5934_v35 }
 0xd19   :  { %v2536_v12 = vmul.f32 %v2528_v55, %v7421_v25  ;;  %2545 = vrot.lane.b32.xlu0 %v2535_v16, %s6504_s15  ;;  %v5937_v16 = vld [vmem:[%s8257_s6 + $0x98] ss:$12 sps:$4 sm:$0xff]   ;;  %v5940_v55 = vld [vmem:[%s8260_s9 + $0x94] ss:$12 sps:$4 sm:$0xff]  }
 0xd1a   :  { %5612 = vmatprep.subr.bf16.mxu1 %v5937_v16  ;;  %2943 = vmatprep.subr.bf16.mxu0 %v5940_v55 }
 0xd1b   :  { %2547 = vrot.lane.b32.xlu1 %v2536_v12, %s6504_s15  ;;  %v5938_v12 = vld [vmem:[%s8260_s9 + $0x90] ss:$12 sps:$4 sm:$0xff]   ;;  %5613 = vmatpush3.bf16.msra.mxu1 %v5937_v16 }
 0xd1c   :  { %2944 = vmatpush1.bf16.msra.mxu0 %v5938_v12 }
 0xd83   :  { %v2542_v9 = vpop.permute.xlu0 %2541 }
 0xd84   :  { %v7571_v31 = vadd.f32 %v2542_v9, %v7350_v60  ;;  %v5941_v9 = vld [vmem:[%s8257_s6 + $0xb0] ss:$12 sps:$4 sm:$0xff]  }
 0xd85   :  { %v2544_v41 = vpop.permute.xlu1 %2543  ;;  %5614 = vmatprep.subr.bf16.mxu1 %v5941_v9 }
 0xd86   :  { %v7574_v2 = vadd.f32 %v2544_v41, %v7356_v38  ;;  %v2760_v7 = vsel %vm456_vm1, %v7571_v31, 0.0  ;;  %v5944_v41 = vld [vmem:[%s8260_s9 + $0xac] ss:$12 sps:$4 sm:$0xff]   ;;  %5615 = vmatpush3.bf16.msra.mxu1 %v5941_v9 }
 0xd87   :  { %2761 = vadd.xlane.f32.xlu0 %v2760_v7  ;;  %v5942_v7 = vld [vmem:[%s8260_s9 + $0xa8] ss:$12 sps:$4 sm:$0xff]   ;;  %2945 = vmatprep.subr.bf16.mxu0 %v5944_v41 }
 0xd88   :  { %v2763_v6 = vsel %vm456_vm1, %v7574_v2, 0.0  ;;  %2946 = vmatpush1.bf16.msra.mxu0 %v5942_v7 }
 0xd89   :  { %2764 = vadd.xlane.f32.xlu1 %v2763_v6  ;;  %5638 = vmatprep.subr.bf16.mxu0 %v6519_v11 }
 0xd8a   :  { %5617 = vmatmul.mubr.msk.bf16.vlgmr.msra.gmra.mrb[64].mxu1 %vm456_vm1, %v6868_v19 }
 0xd8b   :  { %v2546_v25 = vpop.permute.xlu0 %2545 }
 0xd8c   :  { %v7581_v49 = vadd.f32 %v2546_v25, %v7353_v10  ;;  %v2700_v10 = vpop.f32.mrb[60].mxu1 }
 0xd8d   :  { %v2548_v13 = vpop.permute.xlu1 %2547  ;;  %v7594_v18 = vpop.f32.mrb[61].mxu1  ;;  %v7621_v59 = vadd.f32 %v2700_v10, %v2580_v50  ;;  %v5945_v10 = vld [vmem:[%s8260_s9 + $0x68] ss:$12 sps:$4 sm:$0xff]  }
 0xd8e   :  { %v7584_v60 = vadd.f32 %v2548_v13, %v7363_v40  ;;  %v2766_v38 = vsel %vm456_vm1, %v7581_v49, 0.0  ;;  %v7596_v20 = vpop.f32.mrb[62].mxu1  ;;  %5620 = vmatprep.subr.bf16.mxu1 %v5945_v10 }
 0xd8f   :  { %2767 = vadd.xlane.f32.xlu0 %v2766_v38  ;;  %v7598_v40 = vpop.f32.mrb[63].mxu1  ;;  %v2824_v52 = vadd.f32 1.0, %v7621_v59  ;;  %v2705_v54 = vadd.f32 %v7596_v20, %v2580_v50  ;;  %5621 = vmatpush3.bf16.msra.mxu1 %v5945_v10  ;;  %v5948_v20 = vld [vmem:[%s8260_s9 + $0xb0] ss:$12 sps:$4 sm:$0xff]  }
 0xd90   :  { %v2769_v14 = vsel %vm456_vm1, %v7584_v60, 0.0 }
 0xd91   :  { %v2825_v43 = vadd.f32 1.0, %v2705_v54 }
 0xd93   :  { %2770 = vadd.xlane.f32.xlu0 %v2769_v14 }
 0xe14   :  { %v2762_v17 = vpop.xlane.xlu0 %2761 }
 0xe15   :  { %v2772_v37 = vmul.f32 0.015625, %v2762_v17  ;;  %v5946_v17 = vld [vmem:[%s8260_s9 + $0x80] ss:$12 sps:$4 sm:$0xff]  }
 0xe16   :  { %v2765_v28 = vpop.xlane.xlu1 %2764  ;;  %5622 = vmatprep.subr.bf16.mxu1 %v5946_v17 }
 0xe17   :  { %v7601_v62 = vsub.f32 %v7571_v31, %v2772_v37  ;;  %v2773_v26 = vmul.f32 0.015625, %v2765_v28  ;;  %5623 = vmatpush3.bf16.msra.mxu1 %v5946_v17  ;;  %v5947_v37 = vld [vmem:[%s8260_s9 + $0x98] ss:$12 sps:$4 sm:$0xff]  }
 0xe18   :  { %5624 = vmatprep.subr.bf16.mxu1 %v5947_v37 }
 0xe19   :  { %v7604_v39 = vsub.f32 %v7574_v2, %v2773_v26  ;;  %v2780_v3 = vmul.f32 %v7601_v62, %v7601_v62 }
 0xe1b   :  { %v2784_v1 = vsel %vm456_vm1, %v2780_v3, 0.0  ;;  %v2781_v27 = vmul.f32 %v7604_v39, %v7604_v39  ;;  %5625 = vmatpush3.bf16.msra.mxu1 %v5947_v37 }
 0xe1c   :  { %v2768_v57 = vpop.xlane.xlu0 %2767  ;;  %2785 = vadd.xlane.f32.xlu0 %v2784_v1  ;;  %5626 = vmatprep.subr.bf16.mxu1 %v5948_v20 }
 0xe1d   :  { %v2774_v44 = vmul.f32 0.015625, %v2768_v57  ;;  %v2787_v48 = vsel %vm456_vm1, %v2781_v27, 0.0 }
 0xe1e   :  { %2788 = vadd.xlane.f32.xlu1 %v2787_v48 }
 0xe1f   :  { %v7613_v4 = vsub.f32 %v7581_v49, %v2774_v44  ;;  %5627 = vmatpush3.bf16.msra.mxu1 %v5948_v20 }
 0xe20   :  { %v2771_v6 = vpop.xlane.xlu0 %2770  ;;  %5632 = vmatprep.subr.bf16.mxu1 %v6519_v11 }
 0xe21   :  { %v2782_v32 = vmul.f32 %v7613_v4, %v7613_v4  ;;  %v2775_v25 = vmul.f32 0.015625, %v2771_v6 }
 0xe23   :  { %v2790_v58 = vsel %vm456_vm1, %v2782_v32, 0.0  ;;  %v2779_v13 = vsub.f32 %v7584_v60, %v2775_v25  ;;  %v5149_v32 = vld [vmem:[%s8259_s8 + $0x1] ss:$0 sm:$0xff] }
 0xe24   :  { %2791 = vadd.xlane.f32.xlu0 %v2790_v58 }
 0xe25   :  { %v2783_v38 = vmul.f32 %v2779_v13, %v2779_v13 }
 0xe27   :  { %v2793_v14 = vsel %vm456_vm1, %v2783_v38, 0.0 }
 0xe2f   :  { %2832 = vrot.lane.b32.xlu1 %v2823_v21, %s6504_s15 }
 0xe33   :  { %2834 = vrot.lane.b32.xlu1 %v2824_v52, %s6504_s15 }
 0xe3a   :  { %2830 = vrot.lane.b32.xlu0 %v2822_v45, %s6504_s15 }
 0xe57   :  { %2794 = vadd.xlane.f32.xlu1 %v2793_v14 }
 0xe68   :  { %2836 = vrot.lane.b32.xlu1 %v2825_v43, %s6504_s15 }
 0xea9   :  { %v2786_v28 = vpop.xlane.xlu0 %2785 }
 0xeaa   :  { %v2796_v26 = vmul.f32 0.015625, %v2786_v28 }
 0xeab   :  { %v2789_v3 = vpop.xlane.xlu1 %2788 }
 0xeac   :  { %v2800_v1 = vadd.f32 1e-05, %v2796_v26  ;;  %v2797_v27 = vmul.f32 0.015625, %v2789_v3 }
 0xeae   :  { %6085 = vrsqrt.f32 %v2800_v1  ;;  %v2801_v57 = vadd.f32 1e-05, %v2797_v27 }
 0xeaf   :  { %v2833_v46 = vpop.permute.xlu1 %2832 }
 0xeb0   :  { %6087 = vrsqrt.f32 %v2801_v57 }
 0xeb1   :  { %v2792_v44 = vpop.xlane.xlu0 %2791 }
 0xeb5   :  { %v2831_v52 = vpop.permute.xlu0 %2830 }
 0xeb8   :  { %v6086_v48 = vpop.eup %6085 }
 0xeb9   :  { %v2808_v47 = vmul.f32 %v6086_v48, %v7601_v62  ;;  %v2798_v62 = vmul.f32 0.015625, %v2792_v44 }
 0xeba   :  { %v6088_v58 = vpop.eup %6087 }
 0xebb   :  { %v2809_v50 = vmul.f32 %v6088_v58, %v7604_v39  ;;  %v2818_v21 = vmul.f32 %v5149_v32, %v2808_v47  ;;  %v2802_v16 = vadd.f32 1e-05, %v2798_v62  ;;  %v2835_v39 = vpop.permute.xlu1 %2834 }
 0xebd   :  { %v2819_v45 = vmul.f32 %v5149_v32, %v2809_v50  ;;  %v2842_v34 = vmul.f32 %v2831_v52, %v2818_v21  ;;  %6089 = vrsqrt.f32 %v2802_v16  ;;  %v6191_v16 = vld [vmem:[#allocation6 + $0x8] sm:$0xff] }
 0xebf   :  { %v2843_v23 = vmul.f32 %v2833_v46, %v2819_v45  ;;  %v2846_v24 = vadd.f32 %v2842_v34, %v7627_v8 }
 0xec1   :  { %v2847_v29 = vadd.f32 %v2843_v23, %v7619_v53 }
 0xec3   :  { %v2850_v35 = vpack.c.bf16 %v2847_v29, %v2846_v24 }
 0xec5   :  { %5178 = vmatmul.mubr.msk.bf16.vlgmr.msra.gmra.mrb[56].mxu0 %vm456_vm1, %v2850_v35  ;;  %5628 = vmatprep.mubr.msk.bf16.mxu1 %vm456_vm1, %v2850_v35  ;;  %v6190_v35 = vld [vmem:[#allocation6] sm:$0xff] }
 0xec6   :  { %2981 = vmatprep.mubr.bf16.mxu0 %v6518_v0 }
 0xec7   :  { %v6090_v41 = vpop.eup %6089 }
 0xec8   :  { %v2810_v53 = vmul.f32 %v6090_v41, %v7613_v4  ;;  %v7705_v4 = vpop.f32.mrb[64].mxu1 }
 0xeca   :  { %v2820_v7 = vmul.f32 %v5149_v32, %v2810_v53 }
 0xecc   :  { %v2844_v25 = vmul.f32 %v2835_v39, %v2820_v7 }
 0xece   :  { %v2848_v10 = vadd.f32 %v2844_v25, %v7621_v59 }
 0xee4   :  { %v2795_v55 = vpop.xlane.xlu1 %2794 }
 0xee5   :  { %v2799_v12 = vmul.f32 0.015625, %v2795_v55 }
 0xee7   :  { %v2803_v9 = vadd.f32 1e-05, %v2799_v12 }
 0xee8   :  { %v2837_v14 = vpop.permute.xlu1 %2836 }
 0xee9   :  { %6091 = vrsqrt.f32 %v2803_v9 }
 0xef3   :  { %v6092_v8 = vpop.eup %6091 }
 0xef4   :  { %v2811_v6 = vmul.f32 %v6092_v8, %v2779_v13  ;;  %v7707_v13 = vpop.f32.mrb[65].mxu1 }
 0xef5   :  { %v7709_v20 = vpop.f32.mrb[66].mxu1 }
 0xef6   :  { %v2821_v38 = vmul.f32 %v5149_v32, %v2811_v6  ;;  %v7711_v28 = vpop.f32.mrb[67].mxu1 }
 0xef8   :  { %v2845_v43 = vmul.f32 %v2837_v14, %v2821_v38 }
 0xefa   :  { %v2849_v17 = vadd.f32 %v2845_v43, %v2705_v54  ;;  %v6192_v43 = vld [vmem:[#allocation6 + $0x10] sm:$0xff] }
 0xefc   :  { %v2851_v37 = vpack.c.bf16 %v2849_v17, %v2848_v10  ;;  %v6193_v17 = vld [vmem:[#allocation6 + $0x18] sm:$0xff] }
 0xefe   :  { %5179 = vmatmul.mubr.msk.bf16.gmra.mrb[60].mxu0 %vm456_vm1, %v2851_v37  ;;  %5629 = vmatmul.mubr.msk.bf16.vlgmr.msra.gmra.mrb[68].mxu1 %vm456_vm1, %v2851_v37 }
 0xeff   :  { %5634 = vmatprep.mubr.msk.bf16.mxu1 %vm6520_vm2, %v6519_v11  ;;  %5640 = vmatprep.mubr.msk.bf16.mxu0 %vm6520_vm2, %v6519_v11 }
 0xf98   :  { %v2973_v59 = vpop.f32.mrb[56].mxu0 }
 0xf99   :  { %v2975_v54 = vpop.f32.mrb[57].mxu0  ;;  %v3045_v57 = vmul.f32 %v2973_v59, %v7023_v30  ;;  %v3041_v41 = vmul.f32 %v6190_v35, %v2973_v59 }
 0xf9a   :  { %v3075_v26 = vmul.f32 %v2975_v54, %v7023_v30  ;;  %v2977_v3 = vpop.f32.mrb[58].mxu0  ;;  %v3071_v62 = vmul.f32 %v6190_v35, %v2975_v54 }
 0xf9b   :  { %v2979_v1 = vpop.f32.mrb[59].mxu0  ;;  %v3046_v44 = vmul.f32 %v2977_v3, %v7025_v33  ;;  %v3042_v53 = vmul.f32 %v6191_v16, %v2977_v3 }
 0xf9c   :  { %v3076_v27 = vmul.f32 %v2979_v1, %v7025_v33  ;;  %3083 = vrot.lane.b32.xlu0 %v3075_v26, %s6504_s15  ;;  %v3072_v39 = vmul.f32 %v6191_v16, %v2979_v1 }
 0xf9e   :  { %3085 = vrot.lane.b32.xlu1 %v3076_v27, %s6504_s15 }
 0xfa0   :  { %3053 = vrot.lane.b32.xlu0 %v3045_v57, %s6504_s15 }
 0xfa2   :  { %3055 = vrot.lane.b32.xlu1 %v3046_v44, %s6504_s15 }
 0xfd1   :  { %v2983_v48 = vpop.f32.mrb[60].mxu0  ;;  %v5630_v32 = vpop.f32.mrb[68].mxu1 }
 0xfd2   :  { %v2985_v47 = vpop.f32.mrb[61].mxu0  ;;  %v3026_v58 = vpop.f32.mrb[69].mxu1  ;;  %v3047_v33 = vmul.f32 %v2983_v48, %v7038_v51  ;;  %v3043_v1 = vmul.f32 %v6192_v43, %v2983_v48 }
 0xfd3   :  { %v3077_v50 = vmul.f32 %v2985_v47, %v7038_v51  ;;  %v2987_v21 = vpop.f32.mrb[62].mxu0  ;;  %v5631_v52 = vpop.f32.mrb[70].mxu1  ;;  %v3073_v10 = vmul.f32 %v6192_v43, %v2985_v47 }
 0xfd4   :  { %v7722_v45 = vpack.c.bf16 %v5631_v52, %v5630_v32  ;;  %v2989_v34 = vpop.f32.mrb[63].mxu0  ;;  %v3029_v30 = vpop.f32.mrb[71].mxu1  ;;  %v3048_v29 = vmul.f32 %v2987_v21, %v7044_v56  ;;  %v3044_v27 = vmul.f32 %v6193_v17, %v2987_v21 }
 0xfd5   :  { %v3078_v46 = vmul.f32 %v2989_v34, %v7044_v56  ;;  %v7725_v23 = vpack.c.bf16 %v3029_v30, %v3026_v58  ;;  %3087 = vrot.lane.b32.xlu0 %v3077_v50, %s6504_s15  ;;  %v3074_v37 = vmul.f32 %v6193_v17, %v2989_v34 }
 0xfd7   :  { %5639 = vmatpush3.bf16.msra.mxu0 %v7725_v23  ;;  %3089 = vrot.lane.b32.xlu1 %v3078_v46, %s6504_s15 }
 0xfd8   :  { %5650 = vmatprep.subr.bf16.mxu0 %v6519_v11 }
 0xfd9   :  { %3057 = vrot.lane.b32.xlu0 %v3047_v33, %s6504_s15 }
 0xfdb   :  { %3059 = vrot.lane.b32.xlu1 %v3048_v29, %s6504_s15 }
0x100e   :  { %v3084_v24 = vpop.permute.xlu0 %3083 }
0x100f   :  { %v3095_v12 = vadd.f32 %v3084_v24, %v3071_v62 }
0x1010   :  { %v3086_v55 = vpop.permute.xlu1 %3085 }
0x1011   :  { %v3096_v51 = vadd.f32 %v3086_v55, %v3072_v39 }
0x1012   :  { %v3054_v9 = vpop.permute.xlu0 %3053 }
0x1013   :  { %v3099_v7 = vpack.c.bf16 %v3096_v51, %v3095_v12  ;;  %v3065_v6 = vadd.f32 %v3054_v9, %v3041_v41 }
0x1014   :  { %v3056_v8 = vpop.permute.xlu1 %3055 }
0x1015   :  { %v3066_v25 = vadd.f32 %v3056_v8, %v3042_v53  ;;  %3221 = vrot.lane.b32.xlu0 %v3099_v7, %s6521_s19  ;;  %v3107_v56 = vsel %vm925_vm3, %v3099_v7, 0 }
0x1016   :  { %5633 = vmatpush3.bf16.xpose.msra.mxu1 %v3107_v56 }
0x1017   :  { %v3069_v38 = vpack.c.bf16 %v3066_v25, %v3065_v6  ;;  %5644 = vmatprep.subr.bf16.mxu1 %v6519_v11 }
0x1019   :  { %3343 = vrot.lane.b32.xlu0 %v3099_v7, %s6522_s16  ;;  %3218 = vrot.lane.b32.xlu1 %v3069_v38, %s6521_s19 }
0x101d   :  { %3464 = vrot.lane.b32.xlu0 %v3099_v7, %s6523_s24  ;;  %3341 = vrot.lane.b32.xlu1 %v3069_v38, %s6522_s16 }
0x101e   :  { %5635 = vmatmul.mubr.msk.bf16.vlgmr.msra.gmra.mrb[72].mxu1 %vm925_vm3, %v3069_v38 }
0x101f   :  { %5646 = vmatprep.mubr.msk.bf16.mxu1 %vm6520_vm2, %v6519_v11 }
0x1021   :  { %3462 = vrot.lane.b32.xlu1 %v3069_v38, %s6523_s24 }
0x1047   :  { %v3088_v14 = vpop.permute.xlu0 %3087 }
0x1048   :  { %v3097_v54 = vadd.f32 %v3088_v14, %v3073_v10 }
0x1049   :  { %v3090_v59 = vpop.permute.xlu1 %3089 }
0x104a   :  { %v3098_v26 = vadd.f32 %v3090_v59, %v3074_v37 }
0x104b   :  { %v3058_v3 = vpop.permute.xlu0 %3057 }
0x104c   :  { %v3100_v57 = vpack.c.bf16 %v3098_v26, %v3097_v54  ;;  %v3067_v32 = vadd.f32 %v3058_v3, %v3043_v1 }
0x104d   :  { %v3060_v44 = vpop.permute.xlu1 %3059 }
0x104e   :  { %v3068_v58 = vadd.f32 %v3060_v44, %v3044_v27  ;;  %3731 = vrot.lane.b32.xlu0 %v3100_v57, %s6521_s19  ;;  %v3617_v24 = vsel %vm925_vm3, %v3100_v57, 0 }
0x1050   :  { %v3070_v50 = vpack.c.bf16 %v3068_v58, %v3067_v32 }
0x1052   :  { %3853 = vrot.lane.b32.xlu0 %v3100_v57, %s6522_s16  ;;  %3728 = vrot.lane.b32.xlu1 %v3070_v50, %s6521_s19 }
0x1056   :  { %3974 = vrot.lane.b32.xlu0 %v3100_v57, %s6523_s24  ;;  %3851 = vrot.lane.b32.xlu1 %v3070_v50, %s6522_s16 }
0x105a   :  { %3972 = vrot.lane.b32.xlu1 %v3070_v50, %s6523_s24 }
0x1087   :  { %v3222_v47 = vpop.permute.xlu0 %3221 }
0x1088   :  { %v3227_v48 = vsel %vm925_vm3, %v3222_v47, 0 }
0x1089   :  { %5645 = vmatpush3.bf16.xpose.msra.mxu1 %v3227_v48 }
0x108a   :  { %5656 = vmatprep.subr.bf16.mxu1 %v6519_v11 }
0x108b   :  { %v3344_v21 = vpop.permute.xlu0 %3343  ;;  %v3219_v52 = vpop.permute.xlu1 %3218 }
0x108c   :  { %v3349_v34 = vsel %vm925_vm3, %v3344_v21, 0 }
0x108f   :  { %v3465_v30 = vpop.permute.xlu0 %3464  ;;  %v3342_v46 = vpop.permute.xlu1 %3341 }
0x1090   :  { %5647 = vmatmul.mubr.msk.bf16.vlgmr.msra.gmra.mrb[76].mxu1 %vm925_vm3, %v3219_v52  ;;  %v3470_v33 = vsel %vm925_vm3, %v3465_v30, 0 }
0x1091   :  { %5657 = vmatpush3.bf16.xpose.msra.mxu1 %v3349_v34  ;;  %5658 = vmatprep.mubr.msk.bf16.mxu1 %vm6520_vm2, %v6519_v11 }
0x1092   :  { %5668 = vmatprep.subr.bf16.mxu1 %v6519_v11 }
0x1093   :  { %v3463_v29 = vpop.permute.xlu1 %3462 }
0x1098   :  { %5659 = vmatmul.mubr.msk.bf16.vlgmr.msra.gmra.mrb[80].mxu1 %vm925_vm3, %v3342_v46 }
0x1099   :  { %5669 = vmatpush3.bf16.xpose.msra.mxu1 %v3470_v33  ;;  %5670 = vmatprep.mubr.msk.bf16.mxu1 %vm6520_vm2, %v6519_v11 }
0x109a   :  { %5680 = vmatprep.subr.bf16.mxu1 %v6519_v11 }
0x10a0   :  { %5671 = vmatmul.mubr.msk.bf16.vlgmr.msra.gmra.mrb[84].mxu1 %vm925_vm3, %v3463_v29 }
0x10a1   :  { %5681 = vmatpush3.bf16.xpose.msra.mxu1 %v3617_v24  ;;  %5682 = vmatprep.mubr.msk.bf16.mxu1 %vm6520_vm2, %v6519_v11 }
0x10a2   :  { %5692 = vmatprep.subr.bf16.mxu1 %v6519_v11 }
0x10a8   :  { %5683 = vmatmul.mubr.msk.bf16.vlgmr.msra.gmra.mrb[88].mxu1 %vm925_vm3, %v3070_v50 }
0x10a9   :  { %5694 = vmatprep.mubr.msk.bf16.mxu1 %vm6520_vm2, %v6519_v11 }
0x10c0   :  { %v3732_v35 = vpop.permute.xlu0 %3731 }
0x10c1   :  { %v3737_v62 = vsel %vm925_vm3, %v3732_v35, 0 }
0x10c2   :  { %5693 = vmatpush3.bf16.xpose.msra.mxu1 %v3737_v62 }
0x10c3   :  { %5704 = vmatprep.subr.bf16.mxu1 %v6519_v11 }
0x10c4   :  { %v3854_v16 = vpop.permute.xlu0 %3853  ;;  %v3729_v39 = vpop.permute.xlu1 %3728 }
0x10c5   :  { %v3859_v55 = vsel %vm925_vm3, %v3854_v16, 0 }
0x10c8   :  { %v3975_v12 = vpop.permute.xlu0 %3974  ;;  %v3852_v51 = vpop.permute.xlu1 %3851 }
0x10c9   :  { %5695 = vmatmul.mubr.msk.bf16.vlgmr.msra.gmra.mrb[92].mxu1 %vm925_vm3, %v3729_v39  ;;  %v3980_v9 = vsel %vm925_vm3, %v3975_v12, 0 }
0x10ca   :  { %5705 = vmatpush3.bf16.xpose.msra.mxu1 %v3859_v55  ;;  %5706 = vmatprep.mubr.msk.bf16.mxu1 %vm6520_vm2, %v6519_v11 }
0x10cb   :  { %5716 = vmatprep.subr.bf16.mxu1 %v6519_v11 }
0x10cc   :  { %v3973_v41 = vpop.permute.xlu1 %3972 }
0x10d1   :  { %5707 = vmatmul.mubr.msk.bf16.vlgmr.msra.gmra.mrb[96].mxu1 %vm925_vm3, %v3852_v51 }
0x10d2   :  { %5717 = vmatpush3.bf16.xpose.msra.mxu1 %v3980_v9  ;;  %5718 = vmatprep.mubr.msk.bf16.mxu1 %vm6520_vm2, %v6519_v11 }
0x10d9   :  { %5719 = vmatmul.mubr.msk.bf16.vlgmr.msra.gmra.mrb[100].mxu1 %vm925_vm3, %v3973_v41 }
0x10f1   :  { %v3143_v53 = vpop.f32.mrb[72].mxu1 }
0x10f2   :  { %v5636_v7 = vpop.f32.mrb[73].mxu1  ;;  %v3150_v8 = vsel %vm925_vm3, %v3143_v53, -inf }
0x10f3   :  { %v3146_v6 = vpop.f32.mrb[74].mxu1  ;;  %3151 = vmax.xlane.f32.xlu0 %v3150_v8 }
0x10f4   :  { %v5637_v25 = vpop.f32.mrb[75].mxu1  ;;  %v3153_v56 = vsel %vm925_vm3, %v3146_v6, -inf }
0x10f5   :  { %3154 = vmax.xlane.f32.xlu1 %v3153_v56 }
0x1163   :  { %v7786_v38 = vpop.f32.mrb[76].mxu1 }
0x1164   :  { %v5648_v14 = vpop.f32.mrb[77].mxu1  ;;  %v3270_v43 = vsel %vm925_vm3, %v7786_v38, -inf }
0x1165   :  { %3271 = vmax.xlane.f32.xlu0 %v3270_v43  ;;  %v7790_v10 = vpop.f32.mrb[78].mxu1 }
0x1166   :  { %v5649_v17 = vpop.f32.mrb[79].mxu1  ;;  %v3273_v37 = vsel %vm925_vm3, %v7790_v10, -inf }
0x1169   :  { %3274 = vmax.xlane.f32.xlu0 %v3273_v37 }
0x116b   :  { %v7794_v59 = vpop.f32.mrb[80].mxu1 }
0x116c   :  { %v5660_v54 = vpop.f32.mrb[81].mxu1  ;;  %v3392_v26 = vsel %vm925_vm3, %v7794_v59, -inf }
0x116d   :  { %3393 = vmax.xlane.f32.xlu0 %v3392_v26  ;;  %v7798_v3 = vpop.f32.mrb[82].mxu1 }
0x116e   :  { %v5661_v1 = vpop.f32.mrb[83].mxu1  ;;  %v3395_v27 = vsel %vm925_vm3, %v7798_v3, -inf }
0x116f   :  { %3396 = vmax.xlane.f32.xlu1 %v3395_v27 }
0x1173   :  { %v7802_v57 = vpop.f32.mrb[84].mxu1 }
0x1174   :  { %v5672_v44 = vpop.f32.mrb[85].mxu1  ;;  %v3513_v32 = vsel %vm925_vm3, %v7802_v57, -inf }
0x1175   :  { %3514 = vmax.xlane.f32.xlu0 %v3513_v32  ;;  %v7806_v58 = vpop.f32.mrb[86].mxu1 }
0x1176   :  { %v5673_v50 = vpop.f32.mrb[87].mxu1  ;;  %v3516_v47 = vsel %vm925_vm3, %v7806_v58, -inf }
0x1177   :  { %3517 = vmax.xlane.f32.xlu1 %v3516_v47 }
0x117b   :  { %v7810_v48 = vpop.f32.mrb[88].mxu1 }
0x117c   :  { %v5684_v21 = vpop.f32.mrb[89].mxu1  ;;  %v3660_v52 = vsel %vm925_vm3, %v7810_v48, -inf }
0x117d   :  { %3661 = vmax.xlane.f32.xlu0 %v3660_v52  ;;  %v7814_v34 = vpop.f32.mrb[90].mxu1 }
0x117e   :  { %v5685_v30 = vpop.f32.mrb[91].mxu1  ;;  %v3663_v46 = vsel %vm925_vm3, %v7814_v34, -inf }
0x117f   :  { %3664 = vmax.xlane.f32.xlu1 %v3663_v46 }
0x1180   :  { %v3152_v33 = vpop.xlane.xlu0 %3151 }
0x1181   :  { %v3156_v24 = vsub.f32 %v3143_v53, %v3152_v33 }
0x1182   :  { %v3155_v29 = vpop.xlane.xlu1 %3154 }
0x1183   :  { %v3157_v35 = vsub.f32 %v3146_v6, %v3155_v29  ;;  %v3158_v62 = vmul.f32 1.442695, %v3156_v24 }
0x1185   :  { %v3160_v16 = vmul.f32 1.442695, %v3157_v35  ;;  %6093 = vpow2.f32 %v3158_v62 }
0x1187   :  { %6095 = vpow2.f32 %v3160_v16 }
0x118f   :  { %v7830_v6 = vpop.eup %6093 }
0x1190   :  { %v3162_v17 = vsel %vm925_vm3, %v7830_v6, 0.0 }
0x1191   :  { %v7836_v43 = vpop.eup %6095 }
0x1192   :  { %v3165_v37 = vsel %vm925_vm3, %v7836_v43, 0.0 }
0x119c   :  { %v7818_v39 = vpop.f32.mrb[92].mxu1 }
0x119d   :  { %v5696_v55 = vpop.f32.mrb[93].mxu1  ;;  %v3780_v12 = vsel %vm925_vm3, %v7818_v39, -inf }
0x119e   :  { %3781 = vmax.xlane.f32.xlu0 %v3780_v12  ;;  %v7822_v51 = vpop.f32.mrb[94].mxu1 }
0x119f   :  { %v5697_v9 = vpop.f32.mrb[95].mxu1  ;;  %v3783_v41 = vsel %vm925_vm3, %v7822_v51, -inf }
0x11a0   :  { %3784 = vmax.xlane.f32.xlu1 %v3783_v41 }
0x11a4   :  { %v7826_v53 = vpop.f32.mrb[96].mxu1 }
0x11a5   :  { %v5708_v7 = vpop.f32.mrb[97].mxu1  ;;  %v3902_v8 = vsel %vm925_vm3, %v7826_v53, -inf }
0x11a6   :  { %3903 = vmax.xlane.f32.xlu0 %v3902_v8  ;;  %v7832_v25 = vpop.f32.mrb[98].mxu1 }
0x11a7   :  { %v5709_v56 = vpop.f32.mrb[99].mxu1  ;;  %v3905_v14 = vsel %vm925_vm3, %v7832_v25, -inf }
0x11a8   :  { %3906 = vmax.xlane.f32.xlu1 %v3905_v14 }
0x11aa   :  { %3163 = vadd.xlane.f32.xlu0 %v3162_v17 }
0x11ac   :  { %v7842_v54 = vpop.f32.mrb[100].mxu1  ;;  %3166 = vadd.xlane.f32.xlu1 %v3165_v37 }
0x11ad   :  { %v5720_v26 = vpop.f32.mrb[101].mxu1  ;;  %v4023_v1 = vsel %vm925_vm3, %v7842_v54, -inf }
0x11ae   :  { %4024 = vmax.xlane.f32.xlu0 %v4023_v1  ;;  %v7846_v27 = vpop.f32.mrb[102].mxu1 }
0x11af   :  { %v5721_v44 = vpop.f32.mrb[103].mxu1  ;;  %v4026_v32 = vsel %vm925_vm3, %v7846_v27, -inf }
0x11b0   :  { %4027 = vmax.xlane.f32.xlu1 %v4026_v32 }
0x11c1   :  { %3415 = vrot.lane.b32.xlu1 %v7725_v23, %s6522_s16 }
0x11c4   :  { %3294 = vrot.lane.b32.xlu0 %v7725_v23, %s6521_s19 }
0x11f2   :  { %v3272_v50 = vpop.xlane.xlu0 %3271 }
0x11f3   :  { %v3276_v47 = vsub.f32 %v7786_v38, %v3272_v50 }
0x11f5   :  { %v3278_v21 = vmul.f32 1.442695, %v3276_v47 }
0x11f6   :  { %v3275_v52 = vpop.xlane.xlu0 %3274 }
0x11f7   :  { %6097 = vpow2.f32 %v3278_v21  ;;  %v3277_v30 = vsub.f32 %v7790_v10, %v3275_v52 }
0x11f9   :  { %v3280_v46 = vmul.f32 1.442695, %v3277_v30 }
0x11fa   :  { %v3394_v33 = vpop.xlane.xlu0 %3393 }
0x11fb   :  { %6099 = vpow2.f32 %v3280_v46  ;;  %v3398_v29 = vsub.f32 %v7794_v59, %v3394_v33 }
0x11fc   :  { %v3397_v24 = vpop.xlane.xlu1 %3396 }
0x11fd   :  { %v3400_v35 = vmul.f32 1.442695, %v3398_v29  ;;  %v3399_v62 = vsub.f32 %v7798_v3, %v3397_v24 }
0x11ff   :  { %6101 = vpow2.f32 %v3400_v35  ;;  %v3402_v16 = vmul.f32 1.442695, %v3399_v62 }
0x1201   :  { %v7858_v55 = vpop.eup %6097  ;;  %6103 = vpow2.f32 %v3402_v16 }
0x1202   :  { %v3515_v38 = vpop.xlane.xlu0 %3514  ;;  %v3282_v12 = vsel %vm925_vm3, %v7858_v55, 0.0 }
0x1203   :  { %v3519_v10 = vsub.f32 %v7802_v57, %v3515_v38  ;;  %3283 = vadd.xlane.f32.xlu0 %v3282_v12 }
0x1204   :  { %v3518_v9 = vpop.xlane.xlu1 %3517 }
0x1205   :  { %v7863_v41 = vpop.eup %6099  ;;  %v3521_v59 = vmul.f32 1.442695, %v3519_v10  ;;  %v3520_v7 = vsub.f32 %v7806_v58, %v3518_v9 }
0x1206   :  { %v3285_v3 = vsel %vm925_vm3, %v7863_v41, 0.0 }
0x1207   :  { %6105 = vpow2.f32 %v3521_v59  ;;  %v3523_v8 = vmul.f32 1.442695, %v3520_v7  ;;  %3286 = vadd.xlane.f32.xlu1 %v3285_v3 }
0x1209   :  { %v7868_v56 = vpop.eup %6101  ;;  %6107 = vpow2.f32 %v3523_v8 }
0x120a   :  { %v3662_v14 = vpop.xlane.xlu0 %3661  ;;  %v3404_v57 = vsel %vm925_vm3, %v7868_v56, 0.0 }
0x120b   :  { %v7872_v17 = vpop.eup %6103  ;;  %v3666_v37 = vsub.f32 %v7810_v48, %v3662_v14  ;;  %3405 = vadd.xlane.f32.xlu0 %v3404_v57 }
0x120c   :  { %v3665_v26 = vpop.xlane.xlu1 %3664  ;;  %v3407_v58 = vsel %vm925_vm3, %v7872_v17, 0.0 }
0x120d   :  { %v3668_v1 = vmul.f32 1.442695, %v3666_v37  ;;  %v3667_v44 = vsub.f32 %v7814_v34, %v3665_v26  ;;  %3408 = vadd.xlane.f32.xlu1 %v3407_v58 }
0x120f   :  { %6109 = vpow2.f32 %v3668_v1  ;;  %v3670_v32 = vmul.f32 1.442695, %v3667_v44 }
0x1211   :  { %v7878_v50 = vpop.eup %6105  ;;  %6111 = vpow2.f32 %v3670_v32 }
0x1212   :  { %v3525_v47 = vsel %vm925_vm3, %v7878_v50, 0.0 }
0x1213   :  { %v7882_v21 = vpop.eup %6107  ;;  %3526 = vadd.xlane.f32.xlu0 %v3525_v47 }
0x1214   :  { %v3528_v48 = vsel %vm925_vm3, %v7882_v21, 0.0 }
0x1215   :  { %3529 = vadd.xlane.f32.xlu1 %v3528_v48 }
0x1219   :  { %v7886_v52 = vpop.eup %6109 }
0x121a   :  { %v3672_v34 = vsel %vm925_vm3, %v7886_v52, 0.0 }
0x121b   :  { %v7890_v30 = vpop.eup %6111  ;;  %3673 = vadd.xlane.f32.xlu0 %v3672_v34 }
0x121c   :  { %v3675_v46 = vsel %vm925_vm3, %v7890_v30, 0.0 }
0x121d   :  { %3676 = vadd.xlane.f32.xlu1 %v3675_v46 }
0x122b   :  { %v3782_v33 = vpop.xlane.xlu0 %3781 }
0x122c   :  { %v3786_v29 = vsub.f32 %v7818_v39, %v3782_v33 }
0x122d   :  { %v3785_v24 = vpop.xlane.xlu1 %3784 }
0x122e   :  { %v3788_v35 = vmul.f32 1.442695, %v3786_v29  ;;  %v3787_v62 = vsub.f32 %v7822_v51, %v3785_v24 }
0x1230   :  { %6113 = vpow2.f32 %v3788_v35  ;;  %v3790_v16 = vmul.f32 1.442695, %v3787_v62 }
0x1231   :  { %3536 = vrot.lane.b32.xlu0 %v7725_v23, %s6523_s24 }
0x1232   :  { %6115 = vpow2.f32 %v3790_v16 }
0x1233   :  { %v3904_v38 = vpop.xlane.xlu0 %3903 }
0x1234   :  { %v3908_v7 = vsub.f32 %v7826_v53, %v3904_v38 }
0x1235   :  { %v3907_v12 = vpop.xlane.xlu1 %3906 }
0x1236   :  { %v3909_v10 = vsub.f32 %v7832_v25, %v3907_v12  ;;  %v3910_v25 = vmul.f32 1.442695, %v3908_v7 }
0x1237   :  { %v3164_v9 = vpop.xlane.xlu0 %3163 }
0x1238   :  { %v3912_v59 = vmul.f32 1.442695, %v3909_v10  ;;  %6117 = vrcp.f32 %v3164_v9 }
0x1239   :  { %v3167_v39 = vpop.xlane.xlu1 %3166 }
0x123a   :  { %v7900_v3 = vpop.eup %6113  ;;  %6119 = vpow2.f32 %v3912_v59 }
0x123b   :  { %6121 = vrcp.f32 %v3167_v39  ;;  %v4025_v51 = vpop.xlane.xlu0 %4024  ;;  %v3792_v8 = vsel %vm925_vm3, %v7900_v3, 0.0 }
0x123c   :  { %v7904_v23 = vpop.eup %6115  ;;  %v4029_v14 = vsub.f32 %v7842_v54, %v4025_v51  ;;  %3793 = vadd.xlane.f32.xlu1 %v3792_v8 }
0x123d   :  { %v4028_v57 = vpop.xlane.xlu1 %4027  ;;  %v3795_v26 = vsel %vm925_vm3, %v7904_v23, 0.0 }
0x123e   :  { %v4031_v37 = vmul.f32 1.442695, %v4029_v14  ;;  %v4030_v53 = vsub.f32 %v7846_v27, %v4028_v57 }
0x123f   :  { %v3295_v46 = vpop.permute.xlu0 %3294 }
0x1240   :  { %6123 = vpow2.f32 %v4031_v37  ;;  %v4033_v58 = vmul.f32 1.442695, %v4030_v53  ;;  %3796 = vadd.xlane.f32.xlu1 %v3795_v26 }
0x1241   :  { %6125 = vpow2.f32 %v3910_v25  ;;  %v3416_v35 = vpop.permute.xlu1 %3415 }
0x1242   :  { %6127 = vpow2.f32 %v4033_v58  ;;  %v6118_v1 = vpop.eup %6117 }
0x1243   :  { %v3170_v47 = vmul.f32 %v6118_v1, %v7830_v6 }
0x1244   :  { %v7910_v44 = vpop.eup %6119 }
0x1245   :  { %v6122_v32 = vpop.eup %6121  ;;  %v3917_v54 = vsel %vm925_vm3, %v7910_v44, 0.0 }
0x1246   :  { %v3171_v48 = vmul.f32 %v6122_v32, %v7836_v43  ;;  %3918 = vadd.xlane.f32.xlu1 %v3917_v54 }
0x1248   :  { %v3172_v27 = vpack.c.bf16 %v3171_v48, %v3170_v47 }
0x124a   :  { %v7916_v34 = vpop.eup %6123  ;;  %5641 = vmatmul.mubr.msk.bf16.vlgmr.msra.gmra.mrb[64].mxu0 %vm925_vm3, %v3172_v27 }
0x124b   :  { %v7919_v33 = vpop.eup %6125  ;;  %5651 = vmatpush3.bf16.msra.mxu0 %v3295_v46  ;;  %v4035_v29 = vsel %vm925_vm3, %v7916_v34, 0.0  ;;  %5652 = vmatprep.mubr.msk.bf16.mxu0 %vm6520_vm2, %v6519_v11 }
0x124c   :  { %v7925_v24 = vpop.eup %6127  ;;  %4036 = vadd.xlane.f32.xlu1 %v4035_v29  ;;  %5662 = vmatprep.subr.bf16.mxu0 %v6519_v11  ;;  %v3914_v6 = vsel %vm925_vm3, %v7919_v33, 0.0 }
0x124d   :  { %v4038_v43 = vsel %vm925_vm3, %v7925_v24, 0.0 }
0x1250   :  { %3915 = vadd.xlane.f32.xlu0 %v3914_v6  ;;  %4039 = vadd.xlane.f32.xlu1 %v4038_v43 }
0x1261   :  { %3804 = vrot.lane.b32.xlu1 %v7722_v45, %s6521_s19 }
0x1266   :  { %3925 = vrot.lane.b32.xlu0 %v7722_v45, %s6522_s16 }
0x126a   :  { %4046 = vrot.lane.b32.xlu0 %v7722_v45, %s6523_s24 }
0x1290   :  { %v3284_v62 = vpop.xlane.xlu0 %3283 }
0x1291   :  { %6129 = vrcp.f32 %v3284_v62 }
0x1294   :  { %v3287_v16 = vpop.xlane.xlu1 %3286 }
0x1295   :  { %6131 = vrcp.f32 %v3287_v16 }
0x1298   :  { %v3406_v38 = vpop.xlane.xlu0 %3405 }
0x1299   :  { %6133 = vrcp.f32 %v3406_v38 }
0x129a   :  { %v3409_v12 = vpop.xlane.xlu1 %3408 }
0x129b   :  { %6135 = vrcp.f32 %v3409_v12  ;;  %v6130_v10 = vpop.eup %6129 }
0x129c   :  { %v3290_v59 = vmul.f32 %v6130_v10, %v7858_v55 }
0x129f   :  { %v6132_v9 = vpop.eup %6131 }
0x12a0   :  { %v3291_v7 = vmul.f32 %v6132_v9, %v7863_v41  ;;  %v3527_v39 = vpop.xlane.xlu0 %3526 }
0x12a1   :  { %6137 = vrcp.f32 %v3527_v39 }
0x12a2   :  { %v3530_v51 = vpop.xlane.xlu1 %3529  ;;  %v3292_v8 = vpack.c.bf16 %v3291_v7, %v3290_v59 }
0x12a3   :  { %6139 = vrcp.f32 %v3530_v51  ;;  %v6134_v14 = vpop.eup %6133 }
0x12a4   :  { %5653 = vmatmul.mubr.msk.bf16.vlgmr.msra.gmra.mrb[68].mxu0 %vm925_vm3, %v3292_v8  ;;  %v3412_v55 = vmul.f32 %v6134_v14, %v7868_v56 }
0x12a5   :  { %v6136_v25 = vpop.eup %6135  ;;  %5663 = vmatpush3.bf16.msra.mxu0 %v3416_v35  ;;  %5664 = vmatprep.mubr.msk.bf16.mxu0 %vm6520_vm2, %v6519_v11 }
0x12a6   :  { %v3413_v57 = vmul.f32 %v6136_v25, %v7872_v17  ;;  %5674 = vmatprep.subr.bf16.mxu0 %v6519_v11 }
0x12a8   :  { %v3674_v41 = vpop.xlane.xlu0 %3673  ;;  %v3414_v53 = vpack.c.bf16 %v3413_v57, %v3412_v55 }
0x12a9   :  { %6141 = vrcp.f32 %v3674_v41 }
0x12aa   :  { %v3677_v37 = vpop.xlane.xlu1 %3676 }
0x12ab   :  { %6143 = vrcp.f32 %v3677_v37  ;;  %v6138_v26 = vpop.eup %6137 }
0x12ac   :  { %v3537_v58 = vpop.permute.xlu0 %3536  ;;  %5665 = vmatmul.mubr.msk.bf16.vlgmr.msra.gmra.mrb[72].mxu0 %vm925_vm3, %v3414_v53  ;;  %v3533_v56 = vmul.f32 %v6138_v26, %v7878_v50 }
0x12ad   :  { %v6140_v1 = vpop.eup %6139  ;;  %5675 = vmatpush3.bf16.msra.mxu0 %v3537_v58  ;;  %5676 = vmatprep.mubr.msk.bf16.mxu0 %vm6520_vm2, %v6519_v11 }
0x12ae   :  { %v3534_v17 = vmul.f32 %v6140_v1, %v7882_v21  ;;  %5686 = vmatprep.subr.bf16.mxu0 %v6519_v11 }
0x12b0   :  { %v3535_v32 = vpack.c.bf16 %v3534_v17, %v3533_v56 }
0x12b3   :  { %v6142_v54 = vpop.eup %6141 }
0x12b4   :  { %5677 = vmatmul.mubr.msk.bf16.vlgmr.msra.gmra.mrb[76].mxu0 %vm925_vm3, %v3535_v32  ;;  %v3680_v21 = vmul.f32 %v6142_v54, %v7886_v52 }
0x12b5   :  { %v6144_v47 = vpop.eup %6143  ;;  %5687 = vmatpush3.bf16.msra.mxu0 %v7722_v45  ;;  %5688 = vmatprep.mubr.msk.bf16.mxu0 %vm6520_vm2, %v6519_v11 }
0x12b6   :  { %v3681_v48 = vmul.f32 %v6144_v47, %v7890_v30  ;;  %5698 = vmatprep.subr.bf16.mxu0 %v6519_v11 }
0x12b8   :  { %v3682_v27 = vpack.c.bf16 %v3681_v48, %v3680_v21 }
0x12bc   :  { %5689 = vmatmul.mubr.msk.bf16.vlgmr.msra.gmra.mrb[80].mxu0 %vm925_vm3, %v3682_v27 }
0x12bd   :  { %5700 = vmatprep.mubr.msk.bf16.mxu0 %vm6520_vm2, %v6519_v11 }
0x12c9   :  { %v3794_v50 = vpop.xlane.xlu1 %3793 }
0x12cd   :  { %v3797_v46 = vpop.xlane.xlu1 %3796 }
0x12ce   :  { %6145 = vrcp.f32 %v3797_v46 }
0x12cf   :  { %6147 = vrcp.f32 %v3794_v50 }
0x12d3   :  { %v3919_v45 = vpop.xlane.xlu1 %3918 }
0x12d4   :  { %6149 = vrcp.f32 %v3919_v45  ;;  %v5949_v45 = vld [vmem:[%s8261_s10 + $0x20] sm:$0xff]  }
0x12d5   :  { %5728 = vmatprep.subr.bf16.mxu1 %v5949_v45 }
0x12d6   :  { %5729 = vmatpush3.bf16.msra.mxu1 %v5949_v45 }
0x12d8   :  { %v6146_v6 = vpop.eup %6145 }
0x12d9   :  { %v4037_v29 = vpop.xlane.xlu1 %4036  ;;  %v6148_v35 = vpop.eup %6147  ;;  %v3801_v52 = vmul.f32 %v6146_v6, %v7904_v23 }
0x12da   :  { %v3800_v62 = vmul.f32 %v6148_v35, %v7900_v3  ;;  %v5951_v35 = vld [vmem:[%s8261_s10 + $0x30] sm:$0xff]  }
0x12dc   :  { %v3802_v38 = vpack.c.bf16 %v3801_v52, %v3800_v62 }
0x12dd   :  { %v3916_v43 = vpop.xlane.xlu0 %3915  ;;  %v4040_v30 = vpop.xlane.xlu1 %4039 }
0x12de   :  { %6151 = vrcp.f32 %v3916_v43  ;;  %v6150_v10 = vpop.eup %6149 }
0x12df   :  { %6153 = vrcp.f32 %v4040_v30  ;;  %v3923_v3 = vmul.f32 %v6150_v10, %v7910_v44  ;;  %v5950_v30 = vld [vmem:[%s8261_s10 + $0x28] sm:$0xff]  }
0x12e0   :  { %6155 = vrcp.f32 %v4037_v29  ;;  %5730 = vmatprep.subr.bf16.mxu1 %v5950_v30 }
0x12e1   :  { %v3805_v16 = vpop.permute.xlu1 %3804  ;;  %v3926_v12 = vpop.permute.xlu0 %3925  ;;  %5731 = vmatpush3.bf16.msra.mxu1 %v5950_v30 }
0x12e2   :  { %5699 = vmatpush3.bf16.msra.mxu0 %v3805_v16  ;;  %5732 = vmatprep.subr.bf16.mxu1 %v5951_v35 }
0x12e3   :  { %5710 = vmatprep.subr.bf16.mxu0 %v6519_v11 }
0x12e5   :  { %5701 = vmatmul.mubr.msk.bf16.vlgmr.msra.gmra.mrb[84].mxu0 %vm925_vm3, %v3802_v38  ;;  %v4047_v39 = vpop.permute.xlu0 %4046  ;;  %5733 = vmatpush3.bf16.msra.mxu1 %v5951_v35 }
0x12e6   :  { %5711 = vmatpush3.bf16.msra.mxu0 %v3926_v12  ;;  %5712 = vmatprep.mubr.msk.bf16.mxu0 %vm6520_vm2, %v6519_v11 }
0x12e7   :  { %5722 = vmatprep.subr.bf16.mxu0 %v6519_v11 }
0x12e8   :  { %v6152_v23 = vpop.eup %6151 }
0x12e9   :  { %v3922_v9 = vmul.f32 %v6152_v23, %v7919_v33  ;;  %v6154_v7 = vpop.eup %6153 }
0x12ea   :  { %v6156_v51 = vpop.eup %6155  ;;  %v4044_v8 = vmul.f32 %v6154_v7, %v7925_v24 }
0x12eb   :  { %v3924_v59 = vpack.c.bf16 %v3923_v3, %v3922_v9  ;;  %v4043_v14 = vmul.f32 %v6156_v51, %v7916_v34  ;;  %v5952_v3 = vld [vmem:[%s8261_s10 + $0x38] sm:$0xff]  }
0x12ec   :  { %5734 = vmatprep.subr.bf16.mxu1 %v5952_v3 }
0x12ed   :  { %5713 = vmatmul.mubr.msk.bf16.vlgmr.msra.gmra.mrb[88].mxu0 %vm925_vm3, %v3924_v59  ;;  %v4045_v25 = vpack.c.bf16 %v4044_v8, %v4043_v14  ;;  %5735 = vmatpush3.bf16.msra.mxu1 %v5952_v3 }
0x12ee   :  { %5723 = vmatpush3.bf16.msra.mxu0 %v4047_v39  ;;  %5724 = vmatprep.mubr.msk.bf16.mxu0 %vm6520_vm2, %v6519_v11 }
0x12f5   :  { %5725 = vmatmul.mubr.msk.bf16.vlgmr.msra.gmra.mrb[92].mxu0 %vm925_vm3, %v4045_v25 }
0x12f6   :  { %4415 = vmatprep.mubr.bf16.mxu0 %v6518_v0 }
0x131d   :  { %v7978_v44 = vpop.f32.mrb[64].mxu0 }
0x131e   :  { %v5642_v33 = vpop.f32.mrb[65].mxu0 }
0x131f   :  { %v3213_v57 = vpop.f32.mrb[66].mxu0 }
0x1320   :  { %v5643_v55 = vpop.f32.mrb[67].mxu0 }
0x1377   :  { %v3334_v41 = vpop.f32.mrb[68].mxu0 }
0x1378   :  { %v5654_v37 = vpop.f32.mrb[69].mxu0 }
0x1379   :  { %v3337_v53 = vpop.f32.mrb[70].mxu0 }
0x137a   :  { %v5823_v26 = vpack.i.bf16 %v3337_v53, %v3334_v41  ;;  %v5655_v58 = vpop.f32.mrb[71].mxu0 }
0x137c   :  { %5824 = vrot.lane.b32.xlu0 %v5823_v26, %s6500_s2 }
0x137f   :  { %v3455_v11 = vpop.f32.mrb[72].mxu0 }
0x1380   :  { %v5666_v24 = vpop.f32.mrb[73].mxu0 }
0x1381   :  { %v3458_v34 = vpop.f32.mrb[74].mxu0 }
0x1382   :  { %v5828_v1 = vpack.i.bf16 %v3458_v34, %v3455_v11  ;;  %v5667_v17 = vpop.f32.mrb[75].mxu0 }
0x1384   :  { %5829 = vrot.lane.b32.xlu1 %v5828_v1, %s6513_s7 }
0x1387   :  { %v3576_v56 = vpop.f32.mrb[76].mxu0 }
0x1388   :  { %v5678_v32 = vpop.f32.mrb[77].mxu0 }
0x1389   :  { %v3579_v54 = vpop.f32.mrb[78].mxu0 }
0x138a   :  { %v5833_v47 = vpack.i.bf16 %v3579_v54, %v3576_v56  ;;  %v5679_v48 = vpop.f32.mrb[79].mxu0 }
0x138c   :  { %5834 = vrot.lane.b32.xlu1 %v5833_v47, %s6510_s29 }
0x138f   :  { %v3720_v21 = vpop.f32.mrb[80].mxu0 }
0x1390   :  { %v5690_v27 = vpop.f32.mrb[81].mxu0 }
0x1391   :  { %v3723_v50 = vpop.f32.mrb[82].mxu0 }
0x1392   :  { %v5691_v46 = vpop.f32.mrb[83].mxu0 }
0x13b8   :  { %v3844_v29 = vpop.f32.mrb[84].mxu0 }
0x13b9   :  { %v5702_v6 = vpop.f32.mrb[85].mxu0 }
0x13ba   :  { %v3847_v43 = vpop.f32.mrb[86].mxu0 }
0x13bb   :  { %v5838_v52 = vpack.i.bf16 %v3847_v43, %v3844_v29  ;;  %v5703_v62 = vpop.f32.mrb[87].mxu0 }
0x13bd   :  { %5839 = vrot.lane.b32.xlu0 %v5838_v52, %s6500_s2 }
0x13c0   :  { %v3965_v16 = vpop.f32.mrb[88].mxu0 }
0x13c1   :  { %v5714_v38 = vpop.f32.mrb[89].mxu0 }
0x13c2   :  { %v3968_v12 = vpop.f32.mrb[90].mxu0 }
0x13c3   :  { %v5843_v10 = vpack.i.bf16 %v3968_v12, %v3965_v16  ;;  %v5715_v23 = vpop.f32.mrb[91].mxu0  ;;  %v8013_v16 = vld [vmem:[#allocation9 + $0x3] sm:$0x7] }
0x13c5   :  { %5844 = vrot.lane.b32.xlu0 %v5843_v10, %s6513_s7 }
0x13c8   :  { %v4086_v9 = vpop.f32.mrb[92].mxu0 }
0x13c9   :  { %v5726_v59 = vpop.f32.mrb[93].mxu0 }
0x13ca   :  { %v4089_v7 = vpop.f32.mrb[94].mxu0 }
0x13cb   :  { %v5848_v39 = vpack.i.bf16 %v4089_v7, %v4086_v9  ;;  %v5727_v51 = vpop.f32.mrb[95].mxu0 }
0x13cd   :  { %5849 = vrot.lane.b32.xlu1 %v5848_v39, %s6510_s29 }
0x13ee   :  { %v5825_v8 = vpop.permute.xlu0 %5824 }
0x13ef   :  { %v5827_v25 = vunpack.i.h.bf16 %v5825_v8  ;;  %v5826_v33 = vunpack.i.l.bf16 %v5825_v8 }
0x13f1   :  { %v3608_v53 = vsel %vm925_vm3, %v3213_v57, %v5827_v25  ;;  %v3607_v26 = vsel %vm925_vm3, %v7978_v44, %v5826_v33 }
0x13f6   :  { %v5830_v14 = vpop.permute.xlu1 %5829 }
0x13f7   :  { %v5832_v55 = vunpack.i.h.bf16 %v5830_v14  ;;  %v5831_v41 = vunpack.i.l.bf16 %v5830_v14 }
0x13f9   :  { %v3610_v24 = vsel %vm1432_vm4, %v3608_v53, %v5832_v55  ;;  %v3609_v34 = vsel %vm1432_vm4, %v3607_v26, %v5831_v41 }
0x13fe   :  { %v5835_v37 = vpop.permute.xlu1 %5834 }
0x13ff   :  { %v5837_v58 = vunpack.i.h.bf16 %v5835_v37  ;;  %v5836_v11 = vunpack.i.l.bf16 %v5835_v37 }
0x1401   :  { %v3611_v1 = vsel %vm1435_vm5, %v3609_v34, %v5836_v11  ;;  %v3612_v17 = vsel %vm1435_vm5, %v3610_v24, %v5837_v58 }
0x1402   :  { %v4123_v56 = vpack.c.bf16 %v3612_v17, %v3611_v1 }
0x1404   :  { %5736 = vmatprep.mubr.msk.bf16.mxu1 %vm456_vm1, %v4123_v56 }
0x142f   :  { %v5840_v32 = vpop.permute.xlu0 %5839 }
0x1430   :  { %v5842_v47 = vunpack.i.h.bf16 %v5840_v32  ;;  %v5841_v57 = vunpack.i.l.bf16 %v5840_v32 }
0x1432   :  { %v4118_v46 = vsel %vm925_vm3, %v3723_v50, %v5842_v47  ;;  %v4117_v45 = vsel %vm925_vm3, %v3720_v21, %v5841_v57  ;;  %v2584_v50 = vrot.slane %v8013_v16, %v7339_v42 }
0x1434   :  { %v2693_v21 = vadd.f32 %v7590_v5, %v2584_v50  ;;  %v2703_v38 = vadd.f32 %v7594_v18, %v2584_v50  ;;  %v2697_v23 = vadd.f32 %v7592_v22, %v2584_v50  ;;  %v2707_v39 = vadd.f32 %v7598_v40, %v2584_v50 }
0x1437   :  { %v5845_v54 = vpop.permute.xlu0 %5844 }
0x1438   :  { %v5847_v48 = vunpack.i.h.bf16 %v5845_v54  ;;  %v5846_v27 = vunpack.i.l.bf16 %v5845_v54 }
0x143a   :  { %v4120_v43 = vsel %vm1432_vm4, %v4118_v46, %v5847_v48  ;;  %v4119_v30 = vsel %vm1432_vm4, %v4117_v45, %v5846_v27  ;;  %v5955_v27 = vld [vmem:[%s8263_s12 + $0x44] ss:$8 sps:$4 sm:$0xff]   ;;  %v5958_v46 = vld [vmem:[%s8263_s12 + $0x54] ss:$8 sps:$4 sm:$0xff]   ;;  %v5956_v45 = vld [vmem:[%s8263_s12 + $0x50] ss:$8 sps:$4 sm:$0xff]  }
0x143b   :  { %4383 = vmatprep.subr.bf16.mxu0 %v5955_v27 }
0x143f   :  { %v5850_v44 = vpop.permute.xlu1 %5849 }
0x1440   :  { %v5852_v29 = vunpack.i.h.bf16 %v5850_v44  ;;  %v5851_v6 = vunpack.i.l.bf16 %v5850_v44  ;;  %v5953_v44 = vld [vmem:[%s8263_s12 + $0x40] ss:$8 sps:$4 sm:$0xff]  }
0x1441   :  { %4384 = vmatpush1.bf16.msra.mxu0 %v5953_v44  ;;  %v5965_v44 = vld [vmem:[%s8265_s14 + $0xc0] sm:$0xff]  }
0x1442   :  { %v4122_v35 = vsel %vm1435_vm5, %v4120_v43, %v5852_v29  ;;  %v4121_v52 = vsel %vm1435_vm5, %v4119_v30, %v5851_v6  ;;  %4385 = vmatprep.subr.bf16.mxu0 %v5958_v46  ;;  %v5961_v29 = vld [vmem:[%s8263_s12 + $0x64] ss:$8 sps:$4 sm:$0xff]   ;;  %v5959_v6 = vld [vmem:[%s8263_s12 + $0x60] ss:$8 sps:$4 sm:$0xff]   ;;  %v5964_v43 = vld [vmem:[%s8263_s12 + $0x74] ss:$8 sps:$4 sm:$0xff]   ;;  %5428 = vmatprep.subr.bf16.mxu1 %v5965_v44 }
0x1443   :  { %v4124_v62 = vpack.c.bf16 %v4122_v35, %v4121_v52  ;;  %v5962_v30 = vld [vmem:[%s8263_s12 + $0x70] ss:$8 sps:$4 sm:$0xff]   ;;  %v5966_v46 = vld [vmem:[%s8265_s14 + $0x80] sm:$0xff]  }
0x1445   :  { %5737 = vmatmul.mubr.msk.bf16.vlgmr.msra.gmra.mrb[104].mxu1 %vm456_vm1, %v4124_v62  ;;  %4386 = vmatpush1.bf16.msra.mxu0 %v5956_v45  ;;  %v5968_v45 = vld [vmem:[%s8265_s14 + $0x88] sm:$0xff]  }
0x1446   :  { %4387 = vmatprep.subr.bf16.mxu0 %v5961_v29  ;;  %5429 = vmatpush3.bf16.msra.mxu1 %v5966_v46  ;;  %v5970_v29 = vld [vmem:[%s8265_s14 + $0x90] sm:$0xff]  }
0x1449   :  { %4388 = vmatpush1.bf16.msra.mxu0 %v5959_v6  ;;  %v5971_v6 = vld [vmem:[%s8265_s14 + $0xd8] sm:$0xff]  }
0x144a   :  { %4389 = vmatprep.subr.bf16.mxu0 %v5964_v43  ;;  %v5972_v43 = vld [vmem:[%s8265_s14 + $0x98] sm:$0xff]  }
0x144d   :  { %4390 = vmatpush1.bf16.msra.mxu0 %v5962_v30  ;;  %v5973_v30 = vld [vmem:[%s8265_s14 + $0xe0] sm:$0xff]  }
0x1518   :  { %v5738_v12 = vpop.f32.mrb[104].mxu1 }
0x1519   :  { %v4198_v10 = vpop.f32.mrb[105].mxu1  ;;  %v4215_v3 = vmul.f32 %v5738_v12, %v2703_v38 }
0x151a   :  { %v4213_v9 = vmul.f32 %v4198_v10, %v2693_v21  ;;  %v5739_v59 = vpop.f32.mrb[106].mxu1 }
0x151b   :  { %v4201_v7 = vpop.f32.mrb[107].mxu1  ;;  %v8025_v14 = vadd.f32 %v4215_v3, %v7581_v49  ;;  %v4216_v5 = vmul.f32 %v5739_v59, %v2707_v39 }
0x151c   :  { %v8022_v51 = vadd.f32 %v4213_v9, %v7571_v31  ;;  %v4214_v8 = vmul.f32 %v4201_v7, %v2697_v23 }
0x151d   :  { %v8035_v40 = vadd.f32 %v4216_v5, %v7584_v60  ;;  %v4229_v31 = vsel %vm456_vm1, %v8025_v14, 0.0  ;;  %v5212_v5 = vld [vmem:[#allocation10 + $0x1] ss:$0 sm:$0xff] }
0x151e   :  { %v8028_v18 = vadd.f32 %v4214_v8, %v7574_v2  ;;  %v4223_v22 = vsel %vm456_vm1, %v8022_v51, 0.0 }
0x151f   :  { %4224 = vadd.xlane.f32.xlu0 %v4223_v22  ;;  %v4232_v49 = vsel %vm456_vm1, %v8035_v40, 0.0 }
0x1520   :  { %v4226_v25 = vsel %vm456_vm1, %v8028_v18, 0.0 }
0x1521   :  { %4227 = vadd.xlane.f32.xlu1 %v4226_v25 }
0x1523   :  { %4230 = vadd.xlane.f32.xlu0 %v4229_v31 }
0x1527   :  { %4233 = vadd.xlane.f32.xlu0 %v4232_v49 }
0x15ac   :  { %v4225_v2 = vpop.xlane.xlu0 %4224 }
0x15ad   :  { %v4235_v33 = vmul.f32 0.015625, %v4225_v2 }
0x15ae   :  { %v4228_v41 = vpop.xlane.xlu1 %4227 }
0x15af   :  { %v4239_v55 = vsub.f32 %v8022_v51, %v4235_v33  ;;  %v4236_v58 = vmul.f32 0.015625, %v4228_v41 }
0x15b0   :  { %v4231_v37 = vpop.xlane.xlu0 %4230 }
0x15b1   :  { %v4237_v53 = vmul.f32 0.015625, %v4231_v37  ;;  %v4243_v26 = vmul.f32 %v4239_v55, %v4239_v55  ;;  %v4240_v17 = vsub.f32 %v8028_v18, %v4236_v58 }
0x15b3   :  { %v8043_v60 = vsub.f32 %v8025_v14, %v4237_v53  ;;  %v4247_v11 = vsel %vm456_vm1, %v4243_v26, 0.0  ;;  %v4244_v57 = vmul.f32 %v4240_v17, %v4240_v17 }
0x15b4   :  { %4248 = vadd.xlane.f32.xlu0 %v4247_v11  ;;  %v4234_v24 = vpop.xlane.xlu0 %4233 }
0x15b5   :  { %v4238_v34 = vmul.f32 0.015625, %v4234_v24  ;;  %v4245_v1 = vmul.f32 %v8043_v60, %v8043_v60  ;;  %v4250_v48 = vsel %vm456_vm1, %v4244_v57, 0.0 }
0x15b7   :  { %v4242_v56 = vsub.f32 %v8035_v40, %v4238_v34  ;;  %v4253_v32 = vsel %vm456_vm1, %v4245_v1, 0.0 }
0x15b8   :  { %4254 = vadd.xlane.f32.xlu0 %v4253_v32 }
0x15b9   :  { %v4246_v54 = vmul.f32 %v4242_v56, %v4242_v56 }
0x15bb   :  { %v4256_v47 = vsel %vm456_vm1, %v4246_v54, 0.0 }
0x15bc   :  { %4257 = vadd.xlane.f32.xlu1 %v4256_v47 }
0x15c0   :  { %4251 = vadd.xlane.f32.xlu1 %v4250_v48 }
0x15ce   :  { %4297 = vrot.lane.b32.xlu0 %v2693_v21, %s6504_s15 }
0x15d1   :  { %4299 = vrot.lane.b32.xlu1 %v2697_v23, %s6504_s15 }
0x15d5   :  { %4301 = vrot.lane.b32.xlu1 %v2703_v38, %s6504_s15 }
0x15d9   :  { %4303 = vrot.lane.b32.xlu1 %v2707_v39, %s6504_s15  ;;  %v2588_v39 = vrot.slane %v8013_v16, %v387_v36 }
0x15db   :  { %v8085_v22 = vadd.f32 %v7707_v13, %v2588_v39  ;;  %v8088_v49 = vadd.f32 %v7711_v28, %v2588_v39  ;;  %v8092_v61 = vadd.f32 %v7709_v20, %v2588_v39  ;;  %v8097_v58 = vadd.f32 %v7705_v4, %v2588_v39 }
0x15dd   :  { %v4285_v37 = vadd.f32 1.0, %v8085_v22  ;;  %v4286_v36 = vadd.f32 1.0, %v8088_v49  ;;  %v4288_v1 = vadd.f32 1.0, %v8092_v61  ;;  %v4287_v20 = vadd.f32 1.0, %v8097_v58 }
0x1641   :  { %v4249_v35 = vpop.xlane.xlu0 %4248 }
0x1642   :  { %v4259_v52 = vmul.f32 0.015625, %v4249_v35  ;;  %v5974_v35 = vld [vmem:[%s8265_s14 + $0xa0] sm:$0xff]  }
0x1644   :  { %v4263_v62 = vadd.f32 1e-05, %v4259_v52  ;;  %v5975_v52 = vld [vmem:[%s8265_s14 + $0xe8] sm:$0xff]  }
0x1645   :  { %v4255_v50 = vpop.xlane.xlu0 %4254 }
0x1646   :  { %v4261_v21 = vmul.f32 0.015625, %v4255_v50  ;;  %6157 = vrsqrt.f32 %v4263_v62  ;;  %v5976_v62 = vld [vmem:[%s8265_s14 + $0xa8] sm:$0xff]   ;;  %v5977_v50 = vld [vmem:[%s8265_s14 + $0xf0] sm:$0xff]  }
0x1648   :  { %v4265_v23 = vadd.f32 1e-05, %v4261_v21  ;;  %v5978_v21 = vld [vmem:[%s8265_s14 + $0xb0] sm:$0xff]  }
0x1649   :  { %v4258_v38 = vpop.xlane.xlu1 %4257  ;;  %v4298_v24 = vpop.permute.xlu0 %4297 }
0x164a   :  { %v4262_v12 = vmul.f32 0.015625, %v4258_v38  ;;  %v5979_v38 = vld [vmem:[%s8265_s14 + $0xf8] sm:$0xff]  }
0x164c   :  { %v4266_v10 = vadd.f32 1e-05, %v4262_v12  ;;  %v5980_v12 = vld [vmem:[%s8265_s14 + $0xb8] sm:$0xff]  }
0x164d   :  { %v4252_v3 = vpop.xlane.xlu1 %4251 }
0x164e   :  { %v4260_v9 = vmul.f32 0.015625, %v4252_v3  ;;  %6159 = vrsqrt.f32 %v4266_v10  ;;  %v4325_v10 = vld [vmem:[#allocation12 + $0x2] sm:$0x3] }
0x164f   :  { %6161 = vrsqrt.f32 %v4265_v23  ;;  %v4330_v23 = vrot.slane %v4325_v10, %v6924_v63  ;;  %v4334_v3 = vrot.slane %v4325_v10, %v7339_v42 }
0x1650   :  { %v4264_v59 = vadd.f32 1e-05, %v4260_v9  ;;  %v6158_v7 = vpop.eup %6157 }
0x1651   :  { %v4271_v8 = vmul.f32 %v6158_v7, %v4239_v55  ;;  %v4300_v41 = vpop.permute.xlu1 %4299 }
0x1652   :  { %6163 = vrsqrt.f32 %v4264_v59 }
0x1653   :  { %v4281_v2 = vmul.f32 %v5212_v5, %v4271_v8 }
0x1655   :  { %v4289_v16 = vmul.f32 %v4285_v37, %v4281_v2  ;;  %v4302_v34 = vpop.permute.xlu1 %4301 }
0x1658   :  { %v6160_v25 = vpop.eup %6159 }
0x1659   :  { %v6162_v31 = vpop.eup %6161  ;;  %v4274_v26 = vmul.f32 %v6160_v25, %v4242_v56 }
0x165a   :  { %v4273_v55 = vmul.f32 %v6162_v31, %v8043_v60  ;;  %v4304_v60 = vpop.permute.xlu1 %4303 }
0x165b   :  { %v4284_v11 = vmul.f32 %v5212_v5, %v4274_v26 }
0x165c   :  { %v6164_v33 = vpop.eup %6163  ;;  %v4283_v32 = vmul.f32 %v5212_v5, %v4273_v55 }
0x165d   :  { %v4272_v53 = vmul.f32 %v6164_v33, %v4240_v17  ;;  %v4309_v17 = vadd.f32 %v4298_v24, %v4289_v16  ;;  %v4292_v47 = vmul.f32 %v4288_v1, %v4284_v11 }
0x165e   :  { %v4291_v57 = vmul.f32 %v4287_v20, %v4283_v32 }
0x165f   :  { %v4282_v13 = vmul.f32 %v5212_v5, %v4272_v53  ;;  %v4312_v4 = vadd.f32 %v4304_v60, %v4292_v47 }
0x1660   :  { %v4311_v48 = vadd.f32 %v4302_v34, %v4291_v57 }
0x1661   :  { %v4290_v28 = vmul.f32 %v4286_v36, %v4282_v13 }
0x1662   :  { %v4314_v27 = vpack.c.bf16 %v4312_v4, %v4311_v48 }
0x1663   :  { %v4310_v56 = vadd.f32 %v4300_v41, %v4290_v28 }
0x1665   :  { %v4313_v54 = vpack.c.bf16 %v4310_v56, %v4309_v17 }
0x1667   :  { %5229 = vmatmul.mubr.msk.bf16.vlgmr.msra.gmra.mrb[96].mxu0 %vm456_vm1, %v4313_v54 }
0x1668   :  { %4425 = vmatprep.mubr.bf16.mxu0 %v6518_v0  ;;  %v5967_v0 = vld [vmem:[%s8265_s14 + $0xc8] sm:$0xff]  }
0x1669   :  { %5430 = vmatprep.subr.bf16.mxu1 %v5967_v0 }
0x166a   :  { %5431 = vmatpush3.bf16.msra.mxu1 %v5968_v45 }
0x166f   :  { %5230 = vmatmul.mubr.msk.bf16.gmra.mrb[100].mxu0 %vm456_vm1, %v4314_v27 }
0x1670   :  { %5748 = vmatprep.mubr.msk.bf16.mxu0 %vm456_vm1, %v6852_v15  ;;  %v5969_v15 = vld [vmem:[%s8265_s14 + $0xd0] sm:$0xff]  }
0x1671   :  { %5432 = vmatprep.subr.bf16.mxu1 %v5969_v15 }
0x1672   :  { %5433 = vmatpush3.bf16.msra.mxu1 %v5970_v29 }
0x1673   :  { %5434 = vmatprep.subr.bf16.mxu1 %v5971_v6 }
0x1676   :  { %5435 = vmatpush3.bf16.msra.mxu1 %v5972_v43 }
0x1677   :  { %5436 = vmatprep.subr.bf16.mxu1 %v5973_v30 }
0x167a   :  { %5437 = vmatpush3.bf16.msra.mxu1 %v5974_v35 }
0x167b   :  { %5438 = vmatprep.subr.bf16.mxu1 %v5975_v52 }
0x167e   :  { %5439 = vmatpush3.bf16.msra.mxu1 %v5976_v62 }
0x167f   :  { %5440 = vmatprep.subr.bf16.mxu1 %v5977_v50 }
0x1682   :  { %5441 = vmatpush3.bf16.msra.mxu1 %v5978_v21 }
0x1683   :  { %5442 = vmatprep.subr.bf16.mxu1 %v5979_v38 }
0x1686   :  { %5443 = vmatpush3.bf16.msra.mxu1 %v5980_v12 }
0x173a   :  { %v4417_v9 = vpop.f32.mrb[96].mxu0 }
0x173b   :  { %v8156_v59 = vadd.f32 %v4417_v9, %v4330_v23  ;;  %v4419_v7 = vpop.f32.mrb[97].mxu0 }
0x173c   :  { %v8158_v39 = vadd.f32 %v4419_v7, %v4334_v3  ;;  %v4421_v8 = vpop.f32.mrb[98].mxu0 }
0x173d   :  { %v4444_v5 = vmul.f32 0.044715, %v8156_v59  ;;  %v8161_v25 = vadd.f32 %v4421_v8, %v4330_v23  ;;  %v4423_v31 = vpop.f32.mrb[99].mxu0 }
0x173e   :  { %v4445_v2 = vmul.f32 0.044715, %v8158_v39  ;;  %v8164_v33 = vadd.f32 %v4423_v31, %v4334_v3 }
0x173f   :  { %v4452_v63 = vmul.f32 %v4444_v5, %v8156_v59  ;;  %v4446_v42 = vmul.f32 0.044715, %v8161_v25 }
0x1740   :  { %v4453_v41 = vmul.f32 %v4445_v2, %v8158_v39  ;;  %v4447_v37 = vmul.f32 0.044715, %v8164_v33 }
0x1741   :  { %v4460_v53 = vmul.f32 %v4452_v63, %v8156_v59  ;;  %v4454_v26 = vmul.f32 %v4446_v42, %v8161_v25  ;;  %v4436_v42 = vmul.f32 0.5, %v8156_v59 }
0x1742   :  { %v4461_v36 = vmul.f32 %v4453_v41, %v8158_v39  ;;  %v4455_v16 = vmul.f32 %v4447_v37, %v8164_v33  ;;  %v4427_v13 = vpop.f32.mrb[100].mxu0  ;;  %v4438_v41 = vmul.f32 0.5, %v8161_v25 }
0x1743   :  { %v4468_v55 = vadd.f32 %v4460_v53, %v8156_v59  ;;  %v4462_v28 = vmul.f32 %v4454_v26, %v8161_v25  ;;  %v8176_v11 = vadd.f32 %v4427_v13, %v4330_v23  ;;  %v4429_v24 = vpop.f32.mrb[101].mxu0  ;;  %v4437_v53 = vmul.f32 0.5, %v8158_v39 }
0x1744   :  { %v4463_v34 = vmul.f32 %v4455_v16, %v8164_v33  ;;  %v8179_v1 = vadd.f32 %v4429_v24, %v4334_v3  ;;  %v4431_v17 = vpop.f32.mrb[102].mxu0  ;;  %v4469_v56 = vadd.f32 %v4461_v36, %v8158_v39  ;;  %v4439_v26 = vmul.f32 0.5, %v8164_v33 }
0x1745   :  { %v4476_v32 = vmul.f32 0.7978846, %v4468_v55  ;;  %v4470_v20 = vadd.f32 %v4462_v28, %v8161_v25  ;;  %v4448_v54 = vmul.f32 0.044715, %v8176_v11  ;;  %v4432_v47 = vadd.f32 %v4431_v17, %v4330_v23  ;;  %v4433_v57 = vpop.f32.mrb[103].mxu0 }
0x1746   :  { %v4449_v60 = vmul.f32 0.044715, %v8179_v1  ;;  %v4434_v4 = vadd.f32 %v4433_v57, %v4334_v3  ;;  %v4471_v48 = vadd.f32 %v4463_v34, %v8164_v33  ;;  %v4477_v27 = vmul.f32 0.7978846, %v4469_v56 }
0x1747   :  { %6165 = vtanh.f32 %v4476_v32  ;;  %v4478_v44 = vmul.f32 0.7978846, %v4470_v20  ;;  %v4456_v46 = vmul.f32 %v4448_v54, %v8176_v11  ;;  %v4450_v0 = vmul.f32 0.044715, %v4432_v47 }
0x1748   :  { %v4457_v45 = vmul.f32 %v4449_v60, %v8179_v1  ;;  %v4451_v15 = vmul.f32 0.044715, %v4434_v4  ;;  %v4479_v29 = vmul.f32 0.7978846, %v4471_v48  ;;  %6167 = vtanh.f32 %v4477_v27 }
0x1749   :  { %6169 = vtanh.f32 %v4478_v44  ;;  %v4464_v6 = vmul.f32 %v4456_v46, %v8176_v11  ;;  %v4458_v43 = vmul.f32 %v4450_v0, %v4432_v47  ;;  %v4440_v25 = vmul.f32 0.5, %v8176_v11 }
0x174a   :  { %v4465_v30 = vmul.f32 %v4457_v45, %v8179_v1  ;;  %v4459_v35 = vmul.f32 %v4451_v15, %v4434_v4  ;;  %6171 = vtanh.f32 %v4479_v29  ;;  %v4442_v39 = vmul.f32 0.5, %v4432_v47 }
0x174b   :  { %v4466_v52 = vmul.f32 %v4458_v43, %v4432_v47  ;;  %v4472_v62 = vadd.f32 %v4464_v6, %v8176_v11  ;;  %v4441_v33 = vmul.f32 0.5, %v8179_v1  ;;  %v4443_v60 = vmul.f32 0.5, %v4434_v4  ;;  %v5263_v6 = vld [vmem:[#allocation13 + $0x1] ss:$0 sm:$0xff] }
0x174c   :  { %v4467_v50 = vmul.f32 %v4459_v35, %v4434_v4  ;;  %v4473_v21 = vadd.f32 %v4465_v30, %v8179_v1  ;;  %v5982_v1 = vld [vmem:[#allocation16 + $0x8] sm:$0xff]  }
0x174d   :  { %v4474_v38 = vadd.f32 %v4466_v52, %v4432_v47  ;;  %v4480_v12 = vmul.f32 0.7978846, %v4472_v62  ;;  %v5981_v62 = vld [vmem:[#allocation16] sm:$0xff]  }
0x174e   :  { %v4475_v10 = vadd.f32 %v4467_v50, %v4434_v4  ;;  %v4481_v23 = vmul.f32 0.7978846, %v4473_v21  ;;  %5740 = vmatprep.subr.bf16.mxu0 %v5981_v62 }
0x174f   :  { %v4482_v3 = vmul.f32 0.7978846, %v4474_v38  ;;  %6173 = vtanh.f32 %v4480_v12  ;;  %5741 = vmatpush3.bf16.msra.mxu0 %v5981_v62  ;;  %v5983_v38 = vld [vmem:[#allocation16 + $0x10] sm:$0xff]  }
0x1750   :  { %v4483_v9 = vmul.f32 0.7978846, %v4475_v10  ;;  %6175 = vtanh.f32 %v4481_v23  ;;  %5742 = vmatprep.subr.bf16.mxu0 %v5982_v1 }
0x1751   :  { %v6166_v7 = vpop.eup %6165  ;;  %6177 = vtanh.f32 %v4482_v3 }
0x1752   :  { %v6168_v8 = vpop.eup %6167  ;;  %v4492_v5 = vadd.f32 1.0, %v6166_v7  ;;  %6179 = vtanh.f32 %v4483_v9  ;;  %v5984_v7 = vld [vmem:[#allocation16 + $0x18] sm:$0xff]  }
0x1753   :  { %v6170_v31 = vpop.eup %6169  ;;  %v4493_v2 = vadd.f32 1.0, %v6168_v8  ;;  %5743 = vmatpush3.bf16.msra.mxu0 %v5982_v1 }
0x1754   :  { %v6172_v63 = vpop.eup %6171  ;;  %v4494_v37 = vadd.f32 1.0, %v6170_v31  ;;  %v4500_v16 = vmul.f32 %v4492_v5, %v4436_v42  ;;  %5744 = vmatprep.subr.bf16.mxu0 %v5983_v38 }
0x1755   :  { %v4495_v36 = vadd.f32 1.0, %v6172_v63  ;;  %v4501_v55 = vmul.f32 %v4493_v2, %v4437_v53 }
0x1756   :  { %v4502_v13 = vmul.f32 %v4494_v37, %v4438_v41 }
0x1757   :  { %v4503_v28 = vmul.f32 %v4495_v36, %v4439_v26  ;;  %5745 = vmatpush3.bf16.msra.mxu0 %v5983_v38  ;;  %v5988_v38 = vld [vmem:[#allocation19 + $0x18] sm:$0xff]  }
0x1758   :  { %v4508_v24 = vpack.c.bf16 %v4502_v13, %v4500_v16  ;;  %5746 = vmatprep.subr.bf16.mxu0 %v5984_v7 }
0x1759   :  { %v6174_v34 = vpop.eup %6173  ;;  %v4509_v17 = vpack.c.bf16 %v4503_v28, %v4501_v55 }
0x175a   :  { %v6176_v56 = vpop.eup %6175  ;;  %v4496_v32 = vadd.f32 1.0, %v6174_v34 }
0x175b   :  { %v6178_v20 = vpop.eup %6177  ;;  %4681 = vmatprep.mubr.bf16.mxu1 %v4509_v17  ;;  %v4497_v59 = vadd.f32 1.0, %v6176_v56  ;;  %5747 = vmatpush3.bf16.msra.mxu0 %v5984_v7 }
0x175c   :  { %v6180_v54 = vpop.eup %6179  ;;  %4682 = vmatmul.mubr.bf16.vlgmr.msra.gmra.mrb[108].mxu1 %v4508_v24  ;;  %v4498_v57 = vadd.f32 1.0, %v6178_v20  ;;  %v4504_v27 = vmul.f32 %v4496_v32, %v4440_v25 }
0x175d   :  { %v4499_v48 = vadd.f32 1.0, %v6180_v54  ;;  %v4505_v46 = vmul.f32 %v4497_v59, %v4441_v33 }
0x175e   :  { %v4506_v44 = vmul.f32 %v4498_v57, %v4442_v39  ;;  %5749 = vmatmul.mubr.msk.bf16.vlgmr.msra.gmra.mrb[104].mxu0 %vm456_vm1, %v6868_v19 }
0x175f   :  { %v4507_v0 = vmul.f32 %v4499_v48, %v4443_v60 }
0x1760   :  { %v4510_v45 = vpack.c.bf16 %v4506_v44, %v4504_v27 }
0x1761   :  { %v4511_v15 = vpack.c.bf16 %v4507_v0, %v4505_v46  ;;  %v5280_v46 = vld [vmem:[#allocation18] ss:$0 sm:$0xff] }
0x1763   :  { %4689 = vmatprep.mubr.bf16.mxu1 %v4511_v15 }
0x1764   :  { %4690 = vmatmul.mubr.bf16.gmra.mrb[112].mxu1 %v4510_v45 }
0x182f   :  { %v5444_v29 = vpop.f32.mrb[108].mxu1 }
0x1830   :  { %v5445_v43 = vpop.f32.mrb[109].mxu1 }
0x1831   :  { %v5446_v30 = vadd.f32 %v5445_v43, %v5444_v29  ;;  %v5447_v35 = vpop.f32.mrb[110].mxu1  ;;  %v5750_v24 = vpop.f32.mrb[104].mxu0 }
0x1832   :  { %v5448_v11 = vpop.f32.mrb[111].mxu1  ;;  %v8227_v45 = vadd.f32 %v5750_v24, %v5280_v46 }
0x1833   :  { %v4684_v47 = vadd.f32 %v5446_v30, %v5263_v6  ;;  %v5449_v52 = vadd.f32 %v5448_v11, %v5447_v35 }
0x1834   :  { %v4891_v29 = vadd.f32 1.0, %v8227_v45 }
0x1835   :  { %v4687_v4 = vadd.f32 %v5449_v52, %v5263_v6  ;;  %4702 = vrot.lane.b32.xlu0 %v4684_v47, %s6504_s15 }
0x1837   :  { %4704 = vrot.lane.b32.xlu1 %v4687_v4, %s6504_s15  ;;  %v5450_v50 = vpop.f32.mrb[112].mxu1  ;;  %v5985_v4 = vld [vmem:[#allocation19] sm:$0xff]  }
0x1838   :  { %v5451_v21 = vpop.f32.mrb[113].mxu1  ;;  %5752 = vmatprep.subr.bf16.mxu0 %v5985_v4 }
0x1839   :  { %v5452_v12 = vadd.f32 %v5451_v21, %v5450_v50  ;;  %v5453_v10 = vpop.f32.mrb[114].mxu1  ;;  %5753 = vmatpush3.bf16.msra.mxu0 %v5985_v4  ;;  %v5986_v50 = vld [vmem:[#allocation19 + $0x8] sm:$0xff]   ;;  %v5987_v21 = vld [vmem:[#allocation19 + $0x10] sm:$0xff]  }
0x183a   :  { %v5454_v23 = vpop.f32.mrb[115].mxu1  ;;  %5754 = vmatprep.subr.bf16.mxu0 %v5986_v50 }
0x183b   :  { %v4692_v3 = vadd.f32 %v5452_v12, %v5263_v6  ;;  %v5455_v9 = vadd.f32 %v5454_v23, %v5453_v10 }
0x183d   :  { %v4695_v8 = vadd.f32 %v5455_v9, %v5263_v6  ;;  %4706 = vrot.lane.b32.xlu0 %v4692_v3, %s6504_s15  ;;  %5755 = vmatpush3.bf16.msra.mxu0 %v5986_v50 }
0x183e   :  { %5756 = vmatprep.subr.bf16.mxu0 %v5987_v21 }
0x183f   :  { %4708 = vrot.lane.b32.xlu1 %v4695_v8, %s6504_s15 }
0x1841   :  { %5757 = vmatpush3.bf16.msra.mxu0 %v5987_v21 }
0x1842   :  { %5758 = vmatprep.subr.bf16.mxu0 %v5988_v38 }
0x1845   :  { %5759 = vmatpush3.bf16.msra.mxu0 %v5988_v38 }
0x18a7   :  { %v4703_v5 = vpop.permute.xlu0 %4702 }
0x18a8   :  { %v4714_v31 = vmul.f32 %v4703_v5, %v8085_v22 }
0x18a9   :  { %v4705_v2 = vpop.permute.xlu1 %4704 }
0x18aa   :  { %v4715_v63 = vmul.f32 %v4705_v2, %v8088_v49  ;;  %4722 = vrot.lane.b32.xlu0 %v4714_v31, %s6504_s15  ;;  %v5287_v31 = vld [vmem:[#allocation15] ss:$0 sm:$0xff] }
0x18ac   :  { %4724 = vrot.lane.b32.xlu1 %v4715_v63, %s6504_s15 }
0x18af   :  { %v4707_v42 = vpop.permute.xlu0 %4706 }
0x18b0   :  { %v4716_v41 = vmul.f32 %v4707_v42, %v8097_v58 }
0x18b1   :  { %v4709_v37 = vpop.permute.xlu1 %4708 }
0x18b2   :  { %v4717_v53 = vmul.f32 %v4709_v37, %v8092_v61  ;;  %4726 = vrot.lane.b32.xlu0 %v4716_v41, %s6504_s15 }
0x18b4   :  { %4728 = vrot.lane.b32.xlu1 %v4717_v53, %s6504_s15 }
0x191c   :  { %v4723_v19 = vpop.permute.xlu0 %4722 }
0x191d   :  { %v4734_v22 = vadd.f32 %v4723_v19, %v8022_v51 }
0x191e   :  { %v4725_v26 = vpop.permute.xlu1 %4724 }
0x191f   :  { %v4735_v49 = vadd.f32 %v4725_v26, %v8028_v18  ;;  %v4827_v36 = vsel %vm456_vm1, %v4734_v22, 0.0  ;;  %v4811_v18 = vpop.f32.mrb[105].mxu0 }
0x1920   :  { %4828 = vadd.xlane.f32.xlu0 %v4827_v36  ;;  %v5751_v34 = vpop.f32.mrb[106].mxu0  ;;  %v4812_v6 = vadd.f32 %v5280_v46, %v4811_v18 }
0x1921   :  { %v4830_v16 = vsel %vm456_vm1, %v4735_v49, 0.0  ;;  %v4814_v17 = vpop.f32.mrb[107].mxu0  ;;  %v4823_v62 = vadd.f32 %v5751_v34, %v5280_v46 }
0x1922   :  { %4831 = vadd.xlane.f32.xlu1 %v4830_v16  ;;  %v4815_v0 = vadd.f32 %v5280_v46, %v4814_v17  ;;  %v4889_v43 = vadd.f32 1.0, %v4812_v6 }
0x1923   :  { %v4892_v1 = vadd.f32 1.0, %v4823_v62 }
0x1924   :  { %v4727_v58 = vpop.permute.xlu0 %4726  ;;  %v4890_v15 = vadd.f32 1.0, %v4815_v0 }
0x1925   :  { %v4736_v13 = vadd.f32 %v4727_v58, %v8025_v14 }
0x1926   :  { %v4729_v61 = vpop.permute.xlu1 %4728 }
0x1927   :  { %v4737_v55 = vadd.f32 %v4729_v61, %v8035_v40  ;;  %v4833_v28 = vsel %vm456_vm1, %v4736_v13, 0.0 }
0x1928   :  { %4834 = vadd.xlane.f32.xlu0 %v4833_v28 }
0x1929   :  { %v4836_v51 = vsel %vm456_vm1, %v4737_v55, 0.0 }
0x192c   :  { %4837 = vadd.xlane.f32.xlu0 %v4836_v51 }
0x19ad   :  { %v4829_v56 = vpop.xlane.xlu0 %4828 }
0x19ae   :  { %v4839_v32 = vmul.f32 0.015625, %v4829_v56 }
0x19af   :  { %v4832_v20 = vpop.xlane.xlu1 %4831 }
0x19b0   :  { %v4843_v59 = vsub.f32 %v4734_v22, %v4839_v32  ;;  %v4840_v54 = vmul.f32 0.015625, %v4832_v20 }
0x19b2   :  { %v4844_v25 = vsub.f32 %v4735_v49, %v4840_v54  ;;  %v4847_v14 = vmul.f32 %v4843_v59, %v4843_v59 }
0x19b4   :  { %v4851_v39 = vsel %vm456_vm1, %v4847_v14, 0.0  ;;  %v4848_v40 = vmul.f32 %v4844_v25, %v4844_v25 }
0x19b5   :  { %v4835_v57 = vpop.xlane.xlu0 %4834  ;;  %4852 = vadd.xlane.f32.xlu0 %v4851_v39 }
0x19b6   :  { %v4841_v33 = vmul.f32 0.015625, %v4835_v57  ;;  %v4854_v60 = vsel %vm456_vm1, %v4848_v40, 0.0  ;;  %v5288_v40 = vld [vmem:[#allocation21] ss:$0 sm:$0xff] }
0x19b7   :  { %4855 = vadd.xlane.f32.xlu1 %v4854_v60 }
0x19b8   :  { %v8222_v48 = vsub.f32 %v4736_v13, %v4841_v33 }
0x19b9   :  { %v4838_v30 = vpop.xlane.xlu0 %4837 }
0x19ba   :  { %v4849_v27 = vmul.f32 %v8222_v48, %v8222_v48  ;;  %v4842_v35 = vmul.f32 0.015625, %v4838_v30 }
0x19bc   :  { %v4857_v44 = vsel %vm456_vm1, %v4849_v27, 0.0  ;;  %v4846_v11 = vsub.f32 %v4737_v55, %v4842_v35 }
0x19bd   :  { %4858 = vadd.xlane.f32.xlu0 %v4857_v44 }
0x19be   :  { %v4850_v47 = vmul.f32 %v4846_v11, %v4846_v11 }
0x19c0   :  { %v4860_v52 = vsel %vm456_vm1, %v4850_v47, 0.0 }
0x19c8   :  { %4899 = vrot.lane.b32.xlu1 %v4890_v15, %s6504_s15 }
0x19cc   :  { %4901 = vrot.lane.b32.xlu1 %v4891_v29, %s6504_s15 }
0x19d3   :  { %4897 = vrot.lane.b32.xlu0 %v4889_v43, %s6504_s15 }
0x19f0   :  { %4861 = vadd.xlane.f32.xlu1 %v4860_v52 }
0x1a01   :  { %4903 = vrot.lane.b32.xlu1 %v4892_v1, %s6504_s15 }
0x1a42   :  { %v4853_v12 = vpop.xlane.xlu0 %4852 }
0x1a43   :  { %v4863_v10 = vmul.f32 0.015625, %v4853_v12 }
0x1a44   :  { %v4856_v23 = vpop.xlane.xlu1 %4855 }
0x1a45   :  { %v4867_v3 = vadd.f32 1e-05, %v4863_v10  ;;  %v4864_v9 = vmul.f32 0.015625, %v4856_v23 }
0x1a47   :  { %6181 = vrsqrt.f32 %v4867_v3  ;;  %v4868_v7 = vadd.f32 1e-05, %v4864_v9 }
0x1a48   :  { %v4900_v22 = vpop.permute.xlu1 %4899 }
0x1a49   :  { %6183 = vrsqrt.f32 %v4868_v7 }
0x1a4a   :  { %v4859_v8 = vpop.xlane.xlu0 %4858 }
0x1a4b   :  { %v4865_v58 = vmul.f32 0.015625, %v4859_v8 }
0x1a4c   :  { %v4902_v61 = vpop.permute.xlu1 %4901 }
0x1a4d   :  { %v4869_v13 = vadd.f32 1e-05, %v4865_v58 }
0x1a4e   :  { %v4898_v37 = vpop.permute.xlu0 %4897 }
0x1a4f   :  { %6185 = vrsqrt.f32 %v4869_v13 }
0x1a51   :  { %v6182_v5 = vpop.eup %6181 }
0x1a52   :  { %v4875_v2 = vmul.f32 %v6182_v5, %v4843_v59 }
0x1a53   :  { %v6184_v63 = vpop.eup %6183 }
0x1a54   :  { %v4876_v42 = vmul.f32 %v6184_v63, %v4844_v25  ;;  %v4885_v41 = vmul.f32 %v5287_v31, %v4875_v2 }
0x1a56   :  { %v4886_v53 = vmul.f32 %v5287_v31, %v4876_v42  ;;  %v4909_v19 = vmul.f32 %v4898_v37, %v4885_v41 }
0x1a58   :  { %v4910_v26 = vmul.f32 %v4900_v22, %v4886_v53  ;;  %v4913_v36 = vadd.f32 %v4909_v19, %v4812_v6 }
0x1a59   :  { %v6186_v24 = vpop.eup %6185 }
0x1a5a   :  { %v4914_v49 = vadd.f32 %v4910_v26, %v4815_v0  ;;  %v4877_v18 = vmul.f32 %v6186_v24, %v8222_v48 }
0x1a5c   :  { %v4917_v16 = vpack.c.bf16 %v4914_v49, %v4913_v36  ;;  %v4887_v34 = vmul.f32 %v5287_v31, %v4877_v18 }
0x1a5e   :  { %5760 = vmatprep.mubr.msk.bf16.mxu0 %vm456_vm1, %v4917_v16  ;;  %v4911_v32 = vmul.f32 %v4902_v61, %v4887_v34 }
0x1a60   :  { %v4915_v25 = vadd.f32 %v4911_v32, %v8227_v45 }
0x1a7d   :  { %v4862_v55 = vpop.xlane.xlu1 %4861 }
0x1a7e   :  { %v4866_v28 = vmul.f32 0.015625, %v4862_v55 }
0x1a80   :  { %v4870_v51 = vadd.f32 1e-05, %v4866_v28 }
0x1a81   :  { %v4904_v59 = vpop.permute.xlu1 %4903 }
0x1a82   :  { %6187 = vrsqrt.f32 %v4870_v51 }
0x1a8c   :  { %v6188_v17 = vpop.eup %6187 }
0x1a8d   :  { %v4878_v56 = vmul.f32 %v6188_v17, %v4846_v11 }
0x1a8f   :  { %v4888_v20 = vmul.f32 %v5287_v31, %v4878_v56 }
0x1a91   :  { %v4912_v54 = vmul.f32 %v4904_v59, %v4888_v20 }
0x1a93   :  { %v4916_v14 = vadd.f32 %v4912_v54, %v4823_v62 }
0x1a95   :  { %v4918_v39 = vpack.c.bf16 %v4916_v14, %v4915_v25 }
0x1a97   :  { %5761 = vmatmul.mubr.msk.bf16.vlgmr.msra.gmra.mrb[108].mxu0 %vm456_vm1, %v4918_v39 }
0x1b6a   :  { %v5762_v57 = vpop.f32.mrb[108].mxu0 }
0x1b6b   :  { %v5007_v33 = vadd.f32 %v5762_v57, %v5288_v40  ;;  %v4998_v60 = vpop.f32.mrb[109].mxu0 }
0x1b6c   :  { %v4999_v27 = vadd.f32 %v5288_v40, %v4998_v60  ;;  %v5763_v44 = vpop.f32.mrb[110].mxu0 }
0x1b6d   :  { %5015 = vst [vmem:[%s8297_s20 + $0x10] sm:$0xff] %v5007_v33  ;;  %v5010_v48 = vadd.f32 %v5763_v44, %v5288_v40  ;;  %v5001_v46 = vpop.f32.mrb[111].mxu0 }
0x1b6e   :  { %5013 = vst [vmem:[%s8297_s20] sm:$0xff] %v4999_v27  ;;  %v5002_v0 = vadd.f32 %v5288_v40, %v5001_v46 }
0x1b6f   :  { %5016 = vst [vmem:[%s8297_s20 + $0x18] sm:$0xff] %v5010_v48 }
0x1b70   :  { %5014 = vst [vmem:[%s8297_s20 + $0x8] sm:$0xff] %v5002_v0 }
0x1b71   :  { %5021 = vsyncpa [#allocation3], 1 }
0x1b72   :  { %5022 = vsyncpa [#allocation5], 1 }
0x1b73   :  { %5023 = vsyncpa [#allocation8], 1 }
0x1b74   :  { %5024 = vsyncpa [#allocation11], 1 }
0x1b75   :  { %5025 = vsyncpa [#allocation14], 1 }
0x1b76   :  { %5026 = vsyncpa [#allocation17], 1 }
0x1b77   :  { %5027 = vsyncpa [#allocation20], 1 }

</bundles_post_ra>
